<compile_context>
chip_gen: v5e
topology: v5e:2x2
jax: 0.10.0
libtpu: 0.0.40
codegen_flags: <defaults>
</compile_context>

<pallas_src>
import numpy as np
import jax
import jax.numpy as jnp
from jax import lax
from jax.experimental import pallas as pl
from jax.experimental.pallas import tpu as pltpu

F32 = jnp.float32
BF16 = jnp.bfloat16

# Channel widths fixed by the module.
_CH = (8, 16, 32, 64)


# --------------------------------------------------------------------------
# Pallas kernel: B batch elements per grid step, stacked along sublanes.
# Activation tile is (B*H_l, W_l*C_l), channel minor in the lane dim.
# --------------------------------------------------------------------------
def _make_kernel(H):
    """Builds the per-grid-step kernel for input spatial size H (== W)."""

    def conv3x3(a_bf16, w_ref, b_ref, h):
        # a_bf16: (B*h, W*Cin) bf16.  w_ref: (W*Cin, 3*W*Cout) bf16 -- one
        # dx-pre-summed, column-shift-folded block-diagonal slab per dy,
        # concatenated along COLUMNS so one matmul yields all three partials.
        rows = a_bf16.shape[0]
        nco = w_ref.shape[1] // 3                                   # = W*Cout
        p = jnp.dot(a_bf16, w_ref[...], preferred_element_type=F32)
        p0 = p[:, :nco]            # uses in[h-1] -> roll down, zero top row of each sample
        p1 = p[:, nco:2 * nco]     # uses in[h]
        p2 = p[:, 2 * nco:]        # uses in[h+1] -> roll up, zero bottom row of each sample
        hpos = lax.broadcasted_iota(jnp.int32, (rows, nco), 0) & (h - 1)
        up = jnp.where(hpos == 0, 0.0, pltpu.roll(p0, shift=1, axis=0))
        dn = jnp.where(hpos == h - 1, 0.0, pltpu.roll(p2, shift=rows - 1, axis=0))
        return jnp.maximum(up + p1 + dn + b_ref[...], 0.0)          # fused bias + relu

    def maxpool2(a, t_ref, c, pool_ref):
        # a: (rows, W*c) f32.  Row pair-max + even-row decimation via a VMEM
        # scratch round trip with two stride-2 sublane reads (no MXU, no B^2
        # operands).  Column pair-max via a lane roll (wrapped lanes only feed
        # odd spatial columns that t discards); column decimation via the
        # small B-independent 0/1 select matrix t on the MXU.
        rows, wc = a.shape
        half = rows // 2
        pool_ref[pl.ds(0, rows), :] = a
        a_even = pool_ref[pl.ds(0, half, stride=2), :]
        a_odd = pool_ref[pl.ds(1, half, stride=2), :]
        m = jnp.maximum(a_even, a_odd)
        m = jnp.maximum(m, pltpu.roll(m, shift=wc - c, axis=1))
        out = jnp.dot(m.astype(BF16), t_ref[...], preferred_element_type=F32)
        return out.astype(BF16)     # exact: 0/1 selection of bf16 values

    def kernel(x_ref, ext_ref,
               w1_ref, b1_ref, w2_ref, b2_ref, w3_ref, b3_ref, w4_ref, b4_ref,
               t1_ref, t2_ref, t3_ref,
               ph_ref, gm_ref, wlb_ref, bl_ref,
               y_ref, pool_ref):
        a = x_ref[0]                                              # (B*H,   H)    bf16, C=1
        a = conv3x3(a, w1_ref, b1_ref, H)                         # (B*H,   8H)   f32, C=8
        a = maxpool2(a, t1_ref, _CH[0], pool_ref)                 # (B*H/2, 4H)   bf16
        a = conv3x3(a, w2_ref, b2_ref, H // 2)                    # (B*H/2, 8H)   C=16
        a = maxpool2(a, t2_ref, _CH[1], pool_ref)                 # (B*H/4, 4H)
        a = conv3x3(a, w3_ref, b3_ref, H // 4)                    # (B*H/4, 8H)   C=32
        a = maxpool2(a, t3_ref, _CH[2], pool_ref)                 # (B*H/8, 4H)
        a = conv3x3(a, w4_ref, b4_ref, H // 8)                    # (B*H/8, 8H)   C=64, f32

        # adaptive avg-pool(1,1) + linear head, folded:
        #   ph = wl[:, :64] tiled across spatial columns, pre-scaled by 1/(H4*W4)
        #   gm groups the per-row partial sums by sample -> lane-dense (1, B) row.
        t = jnp.sum(a * ph_ref[...], axis=1, keepdims=True)              # (B*H4, 1)  lane reduce
        y_head = jnp.sum(t * gm_ref[...], axis=0, keepdims=True)         # (1, B)     sublane reduce
        y_ext = jnp.sum(ext_ref[0] * wlb_ref[...], axis=0, keepdims=True)  # (1, B)   VPU only
        y_ref[0] = (y_head + y_ext + bl_ref[...]).astype(y_ref.dtype)

    return kernel


# --------------------------------------------------------------------------
# Host-side (numpy) construction of the folded weights / selection matrices.
# --------------------------------------------------------------------------
def _expand_conv_cat(w, b, w_sp):
    """w: (Cout, Cin, 3, 3), b: (Cout,) -> (W*Cin, 3*W*Cout), (1, W*Cout).

    One dx-pre-summed block-diagonal slab per dy, concatenated along columns
    so the kernel needs exactly ONE matmul per conv."""
    cout, cin = int(w.shape[0]), int(w.shape[1])
    wcin = w_sp * cin
    slabs = []
    for ky in range(3):                                  # dy = ky - 1
        slab = np.zeros((wcin, w_sp * cout), np.float32)
        for kx in range(3):
            dx = kx - 1
            wk = np.asarray(w[:, :, ky, kx], dtype=np.float32).T        # (Cin, Cout)
            wblk = np.kron(np.eye(w_sp, dtype=np.float32), wk)          # (W*Cin, W*Cout)
            eshift = np.zeros((wcin, wcin), dtype=np.float32)           # fold dx column shift
            for j in range(wcin):
                src = j + dx * cin
                if 0 <= src < wcin:
                    eshift[src, j] = 1.0
            slab += eshift @ wblk
        slabs.append(slab)
    wcat = np.concatenate(slabs, axis=1)                                 # (W*Cin, 3*W*Cout)
    bexp = np.tile(np.asarray(b, dtype=np.float32), w_sp)[None, :]       # (1, W*Cout)
    return wcat, bexp


def _col_select(w_sp, c):  # (m @ T)[:, w'*c + ch] = m[:, 2*w'*c + ch]
    t = np.zeros((w_sp * c, (w_sp // 2) * c), np.float32)
    for wp in range(w_sp // 2):
        for ch in range(c):
            t[2 * wp * c + ch, wp * c + ch] = 1.0
    return t


def init_params(key):
    ks = jax.random.split(key, 10)

    def nrm(k, shape, scale):
        return scale * jax.random.normal(k, shape, dtype=F32)

    return {
        "w1": nrm(ks[0], (8, 1, 3, 3), 1.0 / np.sqrt(9.0)),     "b1": nrm(ks[1], (8,), 0.1),
        "w2": nrm(ks[2], (16, 8, 3, 3), 1.0 / np.sqrt(72.0)),   "b2": nrm(ks[3], (16,), 0.1),
        "w3": nrm(ks[4], (32, 16, 3, 3), 1.0 / np.sqrt(144.0)), "b3": nrm(ks[5], (32,), 0.1),
        "w4": nrm(ks[6], (64, 32, 3, 3), 1.0 / np.sqrt(288.0)), "b4": nrm(ks[7], (64,), 0.1),
        "wl": nrm(ks[8], (1, 67), 1.0 / np.sqrt(67.0)),          "bl": nrm(ks[9], (1,), 0.1),
    }


def _pack_kernel_params(p, H, B):
    convs = [("w1", "b1", _CH[0]), ("w2", "b2", _CH[1]),
             ("w3", "b3", _CH[2]), ("w4", "b4", _CH[3])]
    bf16 = lambda a: jnp.asarray(a, dtype=BF16)
    f32 = lambda a: jnp.asarray(a, dtype=F32)

    conv_args, pool_args = [], []
    h = H
    for li, (wn, bn, cout) in enumerate(convs):
        wcat, bexp = _expand_conv_cat(np.asarray(p[wn]), np.asarray(p[bn]), h)
        conv_args += [bf16(wcat), f32(bexp)]
        if li < 3:
            pool_args.append(bf16(_col_select(h, cout)))
            h //= 2

    # Folded adaptive avg-pool + 64-wide half of the final linear.
    wl = np.asarray(p["wl"], dtype=np.float32)                      # (1, 67)
    h4, c4 = h, _CH[3]                                              # spatial after 3 pools, 64
    ph = np.tile(wl[0, :c4], h4)[None, :] / float(h4 * h4)          # (1, h4*64)
    gm = np.kron(np.eye(B, dtype=np.float32), np.ones((h4, 1), np.float32))  # (B*h4, B)
    wlb = wl[0, c4:].reshape(-1, 1)                                 # (n_ext, 1)
    bl = np.asarray(p["bl"], np.float32).reshape(1, 1)              # (1, 1)
    return conv_args + pool_args + [f32(ph), f32(gm), f32(wlb), f32(bl)]


# --------------------------------------------------------------------------
# Wrapper
# --------------------------------------------------------------------------
def estimator_forward(x_nchw, ext, params, block_batch=64):
    """x_nchw: (N,1,H,W), ext: (N,3) -> (N,1) float32.

    block_batch (B) samples are stacked along sublanes per grid step.  Prefer
    B in [32, 128] and keep N/B >= 2 so the "parallel" batch axis can feed
    v7x's second TensorCore."""
    n, c, h, w = x_nchw.shape
    assert c == 1 and h == w and h % 8 == 0
    B = int(block_batch)
    assert B % 4 == 0
    n_pad = ((n + B - 1) // B) * B
    g = n_pad // B
    n_ext = ext.shape[1]
    kparams = _pack_kernel_params(params, h, B)

    x2 = x_nchw[:, 0, :, :].astype(BF16)            # consumed in bf16 anyway; halves DMA
    ext_f = ext.astype(F32)
    if n_pad != n:
        x2 = jnp.pad(x2, ((0, n_pad - n), (0, 0), (0, 0)))
        ext_f = jnp.pad(ext_f, ((0, n_pad - n), (0, 0)))
    # Sample-major stacking along sublanes: row b*H + r of block i is sample i*B+b.
    x_blk = x2.reshape(g, B * h, w)
    ext_blk = jnp.transpose(ext_f.reshape(g, B, n_ext), (0, 2, 1))  # (g, n_ext, B)

    in_specs = [
        pl.BlockSpec((1, B * h, w), lambda i: (i, 0, 0)),
        pl.BlockSpec((1, n_ext, B), lambda i: (i, 0, 0)),
    ]
    for kp in kparams:
        in_specs.append(pl.BlockSpec(kp.shape, lambda i, nd=kp.ndim: (0,) * nd))

    out = pl.pallas_call(
        _make_kernel(h),
        out_shape=jax.ShapeDtypeStruct((g, 1, B), F32),
        grid=(g,),
        in_specs=in_specs,
        out_specs=pl.BlockSpec((1, 1, B), lambda i: (i, 0, 0)),
        scratch_shapes=[pltpu.VMEM((B * h, 8 * h), F32)],   # max-pool row-decimation buffer
        compiler_params=pltpu.CompilerParams(
            dimension_semantics=("parallel",)),   # lets v7x shard the batch grid over its 2 TCs
    )(x_blk, ext_blk, *kparams)
    return out.reshape(n_pad, 1)[:n]


# --------------------------------------------------------------------------
# Pure-JAX reference (mirrors the PyTorch forward) for validation.
# --------------------------------------------------------------------------
def reference_forward(x, ext, p):
    prec = lax.Precision.HIGHEST

    def conv(a, w, b):
        o = lax.conv_general_dilated(a, w, (1, 1), [(1, 1), (1, 1)],
                                     dimension_numbers=("NCHW", "OIHW", "NCHW"),
                                     precision=prec)
        return o + b[None, :, None, None]

    def mp(a):
        return lax.reduce_window(a, -jnp.inf, lax.max, (1, 1, 2, 2), (1, 1, 2, 2), "VALID")

    a = mp(jax.nn.relu(conv(x, p["w1"], p["b1"])))
    a = mp(jax.nn.relu(conv(a, p["w2"], p["b2"])))
    a = mp(jax.nn.relu(conv(a, p["w3"], p["b3"])))
    a = jax.nn.relu(conv(a, p["w4"], p["b4"]))
    feat = jnp.mean(a, axis=(2, 3))                       # (N, 64)
    cat = jnp.concatenate([feat, ext], axis=1)            # (N, 67)
    return jnp.dot(cat, p["wl"].T, precision=prec) + p["bl"]


if __name__ == "__main__":
    key = jax.random.PRNGKey(0)
    kp, kx, ke = jax.random.split(key, 3)
    params = init_params(kp)

    N, H, W = 80, 16, 16
    x = jax.random.normal(kx, (N, 1, H, W), dtype=F32)    # NCHW like PyTorch
    ext = jax.random.normal(ke, (N, 3), dtype=F32)        # 64 + 3 = 67 linear inputs

    # block_batch=32 -> 3 grid steps (exercises the batch grid + tail padding).
    y = jax.block_until_ready(estimator_forward(x, ext, params, block_batch=32))
    y_ref = jax.block_until_ready(reference_forward(x, ext, params))
    # bf16 MXU inputs (f32 accumulate) -> ~1% relative error budget.
    np.testing.assert_allclose(np.asarray(y), np.asarray(y_ref), rtol=2e-2, atol=3e-2)
    print("KERNEL_OK")
</pallas_src>

<mosaic_0001>
module attributes {stable_mosaic.version = 11 : i64} {
  func.func @kernel(%arg0: i32, %arg1: memref<1x512x16xbf16, #tpu.memory_space<vmem>>, %arg2: memref<1x3x32xf32, #tpu.memory_space<vmem>>, %arg3: memref<16x384xbf16, #tpu.memory_space<vmem>>, %arg4: memref<1x128xf32, #tpu.memory_space<vmem>>, %arg5: memref<64x384xbf16, #tpu.memory_space<vmem>>, %arg6: memref<1x128xf32, #tpu.memory_space<vmem>>, %arg7: memref<64x384xbf16, #tpu.memory_space<vmem>>, %arg8: memref<1x128xf32, #tpu.memory_space<vmem>>, %arg9: memref<64x384xbf16, #tpu.memory_space<vmem>>, %arg10: memref<1x128xf32, #tpu.memory_space<vmem>>, %arg11: memref<128x64xbf16, #tpu.memory_space<vmem>>, %arg12: memref<128x64xbf16, #tpu.memory_space<vmem>>, %arg13: memref<128x64xbf16, #tpu.memory_space<vmem>>, %arg14: memref<1x128xf32, #tpu.memory_space<vmem>>, %arg15: memref<64x32xf32, #tpu.memory_space<vmem>>, %arg16: memref<3x1xf32, #tpu.memory_space<vmem>>, %arg17: memref<1x1xf32, #tpu.memory_space<vmem>>, %arg18: memref<1x1x32xf32, #tpu.memory_space<vmem>>, %arg19: memref<512x128xf32, #tpu.memory_space<vmem>>) attributes {dimension_semantics = [#tpu.dimension_semantics<parallel>], iteration_bounds = array<i64: 3>, scalar_prefetch = 0 : i64, scratch_operands = 1 : i64, tpu.core_type = #tpu.core_type<tc>, window_params = [{transform_indices = @transform_0, window_bounds = array<i64: 1, 512, 16>}, {transform_indices = @transform_1, window_bounds = array<i64: 1, 3, 32>}, {pipeline_mode = #tpu.pipeline_mode<synchronous>, transform_indices = @transform_2, window_bounds = array<i64: 16, 384>}, {pipeline_mode = #tpu.pipeline_mode<synchronous>, transform_indices = @transform_3, window_bounds = array<i64: 1, 128>}, {pipeline_mode = #tpu.pipeline_mode<synchronous>, transform_indices = @transform_4, window_bounds = array<i64: 64, 384>}, {pipeline_mode = #tpu.pipeline_mode<synchronous>, transform_indices = @transform_5, window_bounds = array<i64: 1, 128>}, {pipeline_mode = #tpu.pipeline_mode<synchronous>, transform_indices = @transform_6, window_bounds = array<i64: 64, 384>}, {pipeline_mode = #tpu.pipeline_mode<synchronous>, transform_indices = @transform_7, window_bounds = array<i64: 1, 128>}, {pipeline_mode = #tpu.pipeline_mode<synchronous>, transform_indices = @transform_8, window_bounds = array<i64: 64, 384>}, {pipeline_mode = #tpu.pipeline_mode<synchronous>, transform_indices = @transform_9, window_bounds = array<i64: 1, 128>}, {pipeline_mode = #tpu.pipeline_mode<synchronous>, transform_indices = @transform_10, window_bounds = array<i64: 128, 64>}, {pipeline_mode = #tpu.pipeline_mode<synchronous>, transform_indices = @transform_11, window_bounds = array<i64: 128, 64>}, {pipeline_mode = #tpu.pipeline_mode<synchronous>, transform_indices = @transform_12, window_bounds = array<i64: 128, 64>}, {pipeline_mode = #tpu.pipeline_mode<synchronous>, transform_indices = @transform_13, window_bounds = array<i64: 1, 128>}, {pipeline_mode = #tpu.pipeline_mode<synchronous>, transform_indices = @transform_14, window_bounds = array<i64: 64, 32>}, {pipeline_mode = #tpu.pipeline_mode<synchronous>, transform_indices = @transform_15, window_bounds = array<i64: 3, 1>}, {pipeline_mode = #tpu.pipeline_mode<synchronous>, transform_indices = @transform_16, window_bounds = array<i64: 1, 1>}, {transform_indices = @transform_17, window_bounds = array<i64: 1, 1, 32>}]} {
    %c0 = arith.constant 0 : index
    %c0_0 = arith.constant 0 : index
    %c0_1 = arith.constant 0 : index
    %0 = vector.load %arg1[%c0, %c0_0, %c0_1] : memref<1x512x16xbf16, #tpu.memory_space<vmem>>, vector<1x512x16xbf16>
    %1 = vector.shape_cast %0 : vector<1x512x16xbf16> to vector<512x16xbf16>
    %c0_2 = arith.constant 0 : index
    %c0_3 = arith.constant 0 : index
    %2 = vector.load %arg3[%c0_2, %c0_3] : memref<16x384xbf16, #tpu.memory_space<vmem>>, vector<16x384xbf16>
    %cst = arith.constant dense<0.000000e+00> : vector<512x384xf32>
    %3 = tpu.matmul %1, %2, %cst {dimension_numbers = #tpu.dot_dimension_numbers<[1], [0], [0], [1], [0, 0, 1, 1], [], []>} : vector<512x16xbf16>, vector<16x384xbf16>, vector<512x384xf32> -> vector<512x384xf32>
    %4 = vector.extract_strided_slice %3 {offsets = [0, 0], sizes = [512, 128], strides = [1, 1]} : vector<512x384xf32> to vector<512x128xf32>
    %5 = vector.extract_strided_slice %3 {offsets = [0, 128], sizes = [512, 128], strides = [1, 1]} : vector<512x384xf32> to vector<512x128xf32>
    %6 = vector.extract_strided_slice %3 {offsets = [0, 256], sizes = [512, 128], strides = [1, 1]} : vector<512x384xf32> to vector<512x128xf32>
    %7 = tpu.iota {dimensions = array<i32: 0>} : vector<512x128xi32>
    %c15_i32 = arith.constant 15 : i32
    %8 = vector.broadcast %c15_i32 : i32 to vector<512x128xi32>
    %9 = arith.andi %7, %8 : vector<512x128xi32>
    %c0_i32 = arith.constant 0 : i32
    %10 = vector.broadcast %c0_i32 : i32 to vector<512x128xi32>
    %11 = arith.cmpi eq, %9, %10 : vector<512x128xi32>
    %c1_i32 = arith.constant 1 : i32
    %12 = tpu.dynamic_rotate %4 by %c1_i32 dim 0 : vector<512x128xf32>, i32 -> vector<512x128xf32>
    %cst_4 = arith.constant 0.000000e+00 : f32
    %13 = vector.broadcast %cst_4 : f32 to vector<512x128xf32>
    %14 = arith.select %11, %13, %12 : vector<512x128xi1>, vector<512x128xf32>
    %c15_i32_5 = arith.constant 15 : i32
    %15 = vector.broadcast %c15_i32_5 : i32 to vector<512x128xi32>
    %16 = arith.cmpi eq, %9, %15 : vector<512x128xi32>
    %c511_i32 = arith.constant 511 : i32
    %17 = tpu.dynamic_rotate %6 by %c511_i32 dim 0 : vector<512x128xf32>, i32 -> vector<512x128xf32>
    %cst_6 = arith.constant 0.000000e+00 : f32
    %18 = vector.broadcast %cst_6 : f32 to vector<512x128xf32>
    %19 = arith.select %16, %18, %17 : vector<512x128xi1>, vector<512x128xf32>
    %20 = arith.addf %14, %5 : vector<512x128xf32>
    %21 = arith.addf %20, %19 : vector<512x128xf32>
    %c0_7 = arith.constant 0 : index
    %c0_8 = arith.constant 0 : index
    %22 = vector.load %arg4[%c0_7, %c0_8] : memref<1x128xf32, #tpu.memory_space<vmem>>, vector<1x128xf32>
    %23 = vector.broadcast %22 : vector<1x128xf32> to vector<512x128xf32>
    %24 = arith.addf %21, %23 : vector<512x128xf32>
    %cst_9 = arith.constant 0.000000e+00 : f32
    %25 = vector.broadcast %cst_9 : f32 to vector<512x128xf32>
    %26 = arith.maximumf %24, %25 : vector<512x128xf32>
    %c0_10 = arith.constant 0 : index
    %c0_11 = arith.constant 0 : index
    %27 = vector.load %arg19[%c0_10, %c0_11] : memref<512x128xf32, #tpu.memory_space<vmem>>, vector<512x128xf32>
    tpu.vector_store %arg19[%c0_10, %c0_11], %26 {strides = array<i32>} : memref<512x128xf32, #tpu.memory_space<vmem>>, vector<512x128xf32>,
    %c0_12 = arith.constant 0 : index
    %c0_13 = arith.constant 0 : index
    %28 = tpu.strided_load %arg19[%c0_12, %c0_13] {strides = array<i32: 2, 1>} : memref<512x128xf32, #tpu.memory_space<vmem>>, vector<256x128xf32>
    %c1 = arith.constant 1 : index
    %c0_14 = arith.constant 0 : index
    %29 = tpu.strided_load %arg19[%c1, %c0_14] {strides = array<i32: 2, 1>} : memref<512x128xf32, #tpu.memory_space<vmem>>, vector<256x128xf32>
    %30 = arith.maximumf %28, %29 : vector<256x128xf32>
    %c120_i32 = arith.constant 120 : i32
    %31 = tpu.dynamic_rotate %30 by %c120_i32 dim 1 : vector<256x128xf32>, i32 -> vector<256x128xf32>
    %32 = arith.maximumf %30, %31 : vector<256x128xf32>
    %33 = arith.truncf %32 : vector<256x128xf32> to vector<256x128xbf16>
    %c0_15 = arith.constant 0 : index
    %c0_16 = arith.constant 0 : index
    %34 = vector.load %arg11[%c0_15, %c0_16] : memref<128x64xbf16, #tpu.memory_space<vmem>>, vector<128x64xbf16>
    %cst_17 = arith.constant dense<0.000000e+00> : vector<256x64xf32>
    %35 = tpu.matmul %33, %34, %cst_17 {dimension_numbers = #tpu.dot_dimension_numbers<[1], [0], [0], [1], [0, 0, 1, 1], [], []>} : vector<256x128xbf16>, vector<128x64xbf16>, vector<256x64xf32> -> vector<256x64xf32>
    %36 = arith.truncf %35 : vector<256x64xf32> to vector<256x64xbf16>
    %c0_18 = arith.constant 0 : index
    %c0_19 = arith.constant 0 : index
    %37 = vector.load %arg5[%c0_18, %c0_19] : memref<64x384xbf16, #tpu.memory_space<vmem>>, vector<64x384xbf16>
    %cst_20 = arith.constant dense<0.000000e+00> : vector<256x384xf32>
    %38 = tpu.matmul %36, %37, %cst_20 {dimension_numbers = #tpu.dot_dimension_numbers<[1], [0], [0], [1], [0, 0, 1, 1], [], []>} : vector<256x64xbf16>, vector<64x384xbf16>, vector<256x384xf32> -> vector<256x384xf32>
    %39 = vector.extract_strided_slice %38 {offsets = [0, 0], sizes = [256, 128], strides = [1, 1]} : vector<256x384xf32> to vector<256x128xf32>
    %40 = vector.extract_strided_slice %38 {offsets = [0, 128], sizes = [256, 128], strides = [1, 1]} : vector<256x384xf32> to vector<256x128xf32>
    %41 = vector.extract_strided_slice %38 {offsets = [0, 256], sizes = [256, 128], strides = [1, 1]} : vector<256x384xf32> to vector<256x128xf32>
    %42 = tpu.iota {dimensions = array<i32: 0>} : vector<256x128xi32>
    %c7_i32 = arith.constant 7 : i32
    %43 = vector.broadcast %c7_i32 : i32 to vector<256x128xi32>
    %44 = arith.andi %42, %43 : vector<256x128xi32>
    %c0_i32_21 = arith.constant 0 : i32
    %45 = vector.broadcast %c0_i32_21 : i32 to vector<256x128xi32>
    %46 = arith.cmpi eq, %44, %45 : vector<256x128xi32>
    %c1_i32_22 = arith.constant 1 : i32
    %47 = tpu.dynamic_rotate %39 by %c1_i32_22 dim 0 : vector<256x128xf32>, i32 -> vector<256x128xf32>
    %cst_23 = arith.constant 0.000000e+00 : f32
    %48 = vector.broadcast %cst_23 : f32 to vector<256x128xf32>
    %49 = arith.select %46, %48, %47 : vector<256x128xi1>, vector<256x128xf32>
    %c7_i32_24 = arith.constant 7 : i32
    %50 = vector.broadcast %c7_i32_24 : i32 to vector<256x128xi32>
    %51 = arith.cmpi eq, %44, %50 : vector<256x128xi32>
    %c255_i32 = arith.constant 255 : i32
    %52 = tpu.dynamic_rotate %41 by %c255_i32 dim 0 : vector<256x128xf32>, i32 -> vector<256x128xf32>
    %cst_25 = arith.constant 0.000000e+00 : f32
    %53 = vector.broadcast %cst_25 : f32 to vector<256x128xf32>
    %54 = arith.select %51, %53, %52 : vector<256x128xi1>, vector<256x128xf32>
    %55 = arith.addf %49, %40 : vector<256x128xf32>
    %56 = arith.addf %55, %54 : vector<256x128xf32>
    %c0_26 = arith.constant 0 : index
    %c0_27 = arith.constant 0 : index
    %57 = vector.load %arg6[%c0_26, %c0_27] : memref<1x128xf32, #tpu.memory_space<vmem>>, vector<1x128xf32>
    %58 = vector.broadcast %57 : vector<1x128xf32> to vector<256x128xf32>
    %59 = arith.addf %56, %58 : vector<256x128xf32>
    %cst_28 = arith.constant 0.000000e+00 : f32
    %60 = vector.broadcast %cst_28 : f32 to vector<256x128xf32>
    %61 = arith.maximumf %59, %60 : vector<256x128xf32>
    %c0_29 = arith.constant 0 : index
    %c0_30 = arith.constant 0 : index
    %62 = vector.load %arg19[%c0_29, %c0_30] : memref<512x128xf32, #tpu.memory_space<vmem>>, vector<256x128xf32>
    tpu.vector_store %arg19[%c0_29, %c0_30], %61 {strides = array<i32>} : memref<512x128xf32, #tpu.memory_space<vmem>>, vector<256x128xf32>,
    %c0_31 = arith.constant 0 : index
    %c0_32 = arith.constant 0 : index
    %63 = tpu.strided_load %arg19[%c0_31, %c0_32] {strides = array<i32: 2, 1>} : memref<512x128xf32, #tpu.memory_space<vmem>>, vector<128x128xf32>
    %c1_33 = arith.constant 1 : index
    %c0_34 = arith.constant 0 : index
    %64 = tpu.strided_load %arg19[%c1_33, %c0_34] {strides = array<i32: 2, 1>} : memref<512x128xf32, #tpu.memory_space<vmem>>, vector<128x128xf32>
    %65 = arith.maximumf %63, %64 : vector<128x128xf32>
    %c112_i32 = arith.constant 112 : i32
    %66 = tpu.dynamic_rotate %65 by %c112_i32 dim 1 : vector<128x128xf32>, i32 -> vector<128x128xf32>
    %67 = arith.maximumf %65, %66 : vector<128x128xf32>
    %68 = arith.truncf %67 : vector<128x128xf32> to vector<128x128xbf16>
    %c0_35 = arith.constant 0 : index
    %c0_36 = arith.constant 0 : index
    %69 = vector.load %arg12[%c0_35, %c0_36] : memref<128x64xbf16, #tpu.memory_space<vmem>>, vector<128x64xbf16>
    %cst_37 = arith.constant dense<0.000000e+00> : vector<128x64xf32>
    %70 = tpu.matmul %68, %69, %cst_37 {dimension_numbers = #tpu.dot_dimension_numbers<[1], [0], [0], [1], [0, 0, 1, 1], [], []>} : vector<128x128xbf16>, vector<128x64xbf16>, vector<128x64xf32> -> vector<128x64xf32>
    %71 = arith.truncf %70 : vector<128x64xf32> to vector<128x64xbf16>
    %c0_38 = arith.constant 0 : index
    %c0_39 = arith.constant 0 : index
    %72 = vector.load %arg7[%c0_38, %c0_39] : memref<64x384xbf16, #tpu.memory_space<vmem>>, vector<64x384xbf16>
    %cst_40 = arith.constant dense<0.000000e+00> : vector<128x384xf32>
    %73 = tpu.matmul %71, %72, %cst_40 {dimension_numbers = #tpu.dot_dimension_numbers<[1], [0], [0], [1], [0, 0, 1, 1], [], []>} : vector<128x64xbf16>, vector<64x384xbf16>, vector<128x384xf32> -> vector<128x384xf32>
    %74 = vector.extract_strided_slice %73 {offsets = [0, 0], sizes = [128, 128], strides = [1, 1]} : vector<128x384xf32> to vector<128x128xf32>
    %75 = vector.extract_strided_slice %73 {offsets = [0, 128], sizes = [128, 128], strides = [1, 1]} : vector<128x384xf32> to vector<128x128xf32>
    %76 = vector.extract_strided_slice %73 {offsets = [0, 256], sizes = [128, 128], strides = [1, 1]} : vector<128x384xf32> to vector<128x128xf32>
    %77 = tpu.iota {dimensions = array<i32: 0>} : vector<128x128xi32>
    %c3_i32 = arith.constant 3 : i32
    %78 = vector.broadcast %c3_i32 : i32 to vector<128x128xi32>
    %79 = arith.andi %77, %78 : vector<128x128xi32>
    %c0_i32_41 = arith.constant 0 : i32
    %80 = vector.broadcast %c0_i32_41 : i32 to vector<128x128xi32>
    %81 = arith.cmpi eq, %79, %80 : vector<128x128xi32>
    %c1_i32_42 = arith.constant 1 : i32
    %82 = tpu.dynamic_rotate %74 by %c1_i32_42 dim 0 : vector<128x128xf32>, i32 -> vector<128x128xf32>
    %cst_43 = arith.constant 0.000000e+00 : f32
    %83 = vector.broadcast %cst_43 : f32 to vector<128x128xf32>
    %84 = arith.select %81, %83, %82 : vector<128x128xi1>, vector<128x128xf32>
    %c3_i32_44 = arith.constant 3 : i32
    %85 = vector.broadcast %c3_i32_44 : i32 to vector<128x128xi32>
    %86 = arith.cmpi eq, %79, %85 : vector<128x128xi32>
    %c127_i32 = arith.constant 127 : i32
    %87 = tpu.dynamic_rotate %76 by %c127_i32 dim 0 : vector<128x128xf32>, i32 -> vector<128x128xf32>
    %cst_45 = arith.constant 0.000000e+00 : f32
    %88 = vector.broadcast %cst_45 : f32 to vector<128x128xf32>
    %89 = arith.select %86, %88, %87 : vector<128x128xi1>, vector<128x128xf32>
    %90 = arith.addf %84, %75 : vector<128x128xf32>
    %91 = arith.addf %90, %89 : vector<128x128xf32>
    %c0_46 = arith.constant 0 : index
    %c0_47 = arith.constant 0 : index
    %92 = vector.load %arg8[%c0_46, %c0_47] : memref<1x128xf32, #tpu.memory_space<vmem>>, vector<1x128xf32>
    %93 = vector.broadcast %92 : vector<1x128xf32> to vector<128x128xf32>
    %94 = arith.addf %91, %93 : vector<128x128xf32>
    %cst_48 = arith.constant 0.000000e+00 : f32
    %95 = vector.broadcast %cst_48 : f32 to vector<128x128xf32>
    %96 = arith.maximumf %94, %95 : vector<128x128xf32>
    %c0_49 = arith.constant 0 : index
    %c0_50 = arith.constant 0 : index
    %97 = vector.load %arg19[%c0_49, %c0_50] : memref<512x128xf32, #tpu.memory_space<vmem>>, vector<128x128xf32>
    tpu.vector_store %arg19[%c0_49, %c0_50], %96 {strides = array<i32>} : memref<512x128xf32, #tpu.memory_space<vmem>>, vector<128x128xf32>,
    %c0_51 = arith.constant 0 : index
    %c0_52 = arith.constant 0 : index
    %98 = tpu.strided_load %arg19[%c0_51, %c0_52] {strides = array<i32: 2, 1>} : memref<512x128xf32, #tpu.memory_space<vmem>>, vector<64x128xf32>
    %c1_53 = arith.constant 1 : index
    %c0_54 = arith.constant 0 : index
    %99 = tpu.strided_load %arg19[%c1_53, %c0_54] {strides = array<i32: 2, 1>} : memref<512x128xf32, #tpu.memory_space<vmem>>, vector<64x128xf32>
    %100 = arith.maximumf %98, %99 : vector<64x128xf32>
    %c96_i32 = arith.constant 96 : i32
    %101 = tpu.dynamic_rotate %100 by %c96_i32 dim 1 : vector<64x128xf32>, i32 -> vector<64x128xf32>
    %102 = arith.maximumf %100, %101 : vector<64x128xf32>
    %103 = arith.truncf %102 : vector<64x128xf32> to vector<64x128xbf16>
    %c0_55 = arith.constant 0 : index
    %c0_56 = arith.constant 0 : index
    %104 = vector.load %arg13[%c0_55, %c0_56] : memref<128x64xbf16, #tpu.memory_space<vmem>>, vector<128x64xbf16>
    %cst_57 = arith.constant dense<0.000000e+00> : vector<64x64xf32>
    %105 = tpu.matmul %103, %104, %cst_57 {dimension_numbers = #tpu.dot_dimension_numbers<[1], [0], [0], [1], [0, 0, 1, 1], [], []>} : vector<64x128xbf16>, vector<128x64xbf16>, vector<64x64xf32> -> vector<64x64xf32>
    %106 = arith.truncf %105 : vector<64x64xf32> to vector<64x64xbf16>
    %c0_58 = arith.constant 0 : index
    %c0_59 = arith.constant 0 : index
    %107 = vector.load %arg9[%c0_58, %c0_59] : memref<64x384xbf16, #tpu.memory_space<vmem>>, vector<64x384xbf16>
    %cst_60 = arith.constant dense<0.000000e+00> : vector<64x384xf32>
    %108 = tpu.matmul %106, %107, %cst_60 {dimension_numbers = #tpu.dot_dimension_numbers<[1], [0], [0], [1], [0, 0, 1, 1], [], []>} : vector<64x64xbf16>, vector<64x384xbf16>, vector<64x384xf32> -> vector<64x384xf32>
    %109 = vector.extract_strided_slice %108 {offsets = [0, 0], sizes = [64, 128], strides = [1, 1]} : vector<64x384xf32> to vector<64x128xf32>
    %110 = vector.extract_strided_slice %108 {offsets = [0, 128], sizes = [64, 128], strides = [1, 1]} : vector<64x384xf32> to vector<64x128xf32>
    %111 = vector.extract_strided_slice %108 {offsets = [0, 256], sizes = [64, 128], strides = [1, 1]} : vector<64x384xf32> to vector<64x128xf32>
    %112 = tpu.iota {dimensions = array<i32: 0>} : vector<64x128xi32>
    %c1_i32_61 = arith.constant 1 : i32
    %113 = vector.broadcast %c1_i32_61 : i32 to vector<64x128xi32>
    %114 = arith.andi %112, %113 : vector<64x128xi32>
    %c0_i32_62 = arith.constant 0 : i32
    %115 = vector.broadcast %c0_i32_62 : i32 to vector<64x128xi32>
    %116 = arith.cmpi eq, %114, %115 : vector<64x128xi32>
    %c1_i32_63 = arith.constant 1 : i32
    %117 = tpu.dynamic_rotate %109 by %c1_i32_63 dim 0 : vector<64x128xf32>, i32 -> vector<64x128xf32>
    %cst_64 = arith.constant 0.000000e+00 : f32
    %118 = vector.broadcast %cst_64 : f32 to vector<64x128xf32>
    %119 = arith.select %116, %118, %117 : vector<64x128xi1>, vector<64x128xf32>
    %c1_i32_65 = arith.constant 1 : i32
    %120 = vector.broadcast %c1_i32_65 : i32 to vector<64x128xi32>
    %121 = arith.cmpi eq, %114, %120 : vector<64x128xi32>
    %c63_i32 = arith.constant 63 : i32
    %122 = tpu.dynamic_rotate %111 by %c63_i32 dim 0 : vector<64x128xf32>, i32 -> vector<64x128xf32>
    %cst_66 = arith.constant 0.000000e+00 : f32
    %123 = vector.broadcast %cst_66 : f32 to vector<64x128xf32>
    %124 = arith.select %121, %123, %122 : vector<64x128xi1>, vector<64x128xf32>
    %125 = arith.addf %119, %110 : vector<64x128xf32>
    %126 = arith.addf %125, %124 : vector<64x128xf32>
    %c0_67 = arith.constant 0 : index
    %c0_68 = arith.constant 0 : index
    %127 = vector.load %arg10[%c0_67, %c0_68] : memref<1x128xf32, #tpu.memory_space<vmem>>, vector<1x128xf32>
    %128 = vector.broadcast %127 : vector<1x128xf32> to vector<64x128xf32>
    %129 = arith.addf %126, %128 : vector<64x128xf32>
    %cst_69 = arith.constant 0.000000e+00 : f32
    %130 = vector.broadcast %cst_69 : f32 to vector<64x128xf32>
    %131 = arith.maximumf %129, %130 : vector<64x128xf32>
    %c0_70 = arith.constant 0 : index
    %c0_71 = arith.constant 0 : index
    %132 = vector.load %arg14[%c0_70, %c0_71] : memref<1x128xf32, #tpu.memory_space<vmem>>, vector<1x128xf32>
    %133 = vector.broadcast %132 : vector<1x128xf32> to vector<64x128xf32>
    %134 = arith.mulf %131, %133 : vector<64x128xf32>
    %cst_72 = arith.constant dense<0.000000e+00> : vector<64xf32>
    %135 = vector.multi_reduction <add>, %134, %cst_72 [1] : vector<64x128xf32> to vector<64xf32>
    %136 = vector.shape_cast %135 : vector<64xf32> to vector<64x1xf32>
    %c0_73 = arith.constant 0 : index
    %c0_74 = arith.constant 0 : index
    %137 = vector.load %arg15[%c0_73, %c0_74] : memref<64x32xf32, #tpu.memory_space<vmem>>, vector<64x32xf32>
    %138 = vector.broadcast %136 : vector<64x1xf32> to vector<64x32xf32>
    %139 = arith.mulf %138, %137 : vector<64x32xf32>
    %cst_75 = arith.constant dense<0.000000e+00> : vector<32xf32>
    %140 = vector.multi_reduction <add>, %139, %cst_75 [0] : vector<64x32xf32> to vector<32xf32>
    %141 = vector.shape_cast %140 : vector<32xf32> to vector<1x32xf32>
    %c0_76 = arith.constant 0 : index
    %c0_77 = arith.constant 0 : index
    %c0_78 = arith.constant 0 : index
    %142 = vector.load %arg2[%c0_76, %c0_77, %c0_78] : memref<1x3x32xf32, #tpu.memory_space<vmem>>, vector<1x3x32xf32>
    %143 = vector.shape_cast %142 : vector<1x3x32xf32> to vector<3x32xf32>
    %c0_79 = arith.constant 0 : index
    %c0_80 = arith.constant 0 : index
    %144 = vector.load %arg16[%c0_79, %c0_80] : memref<3x1xf32, #tpu.memory_space<vmem>>, vector<3x1xf32>
    %145 = vector.broadcast %144 : vector<3x1xf32> to vector<3x32xf32>
    %146 = arith.mulf %143, %145 : vector<3x32xf32>
    %cst_81 = arith.constant dense<0.000000e+00> : vector<32xf32>
    %147 = vector.multi_reduction <add>, %146, %cst_81 [0] : vector<3x32xf32> to vector<32xf32>
    %148 = vector.shape_cast %147 : vector<32xf32> to vector<1x32xf32>
    %149 = arith.addf %141, %148 : vector<1x32xf32>
    %c0_82 = arith.constant 0 : index
    %c0_83 = arith.constant 0 : index
    %150 = vector.load %arg17[%c0_82, %c0_83] : memref<1x1xf32, #tpu.memory_space<vmem>>, vector<1x1xf32>
    %151 = vector.broadcast %150 : vector<1x1xf32> to vector<1x32xf32>
    %152 = arith.addf %149, %151 : vector<1x32xf32>
    %c0_84 = arith.constant 0 : index
    %c0_85 = arith.constant 0 : index
    %c0_86 = arith.constant 0 : index
    %153 = vector.load %arg18[%c0_84, %c0_85, %c0_86] : memref<1x1x32xf32, #tpu.memory_space<vmem>>, vector<1x1x32xf32>
    %154 = vector.shape_cast %153 : vector<1x1x32xf32> to vector<1x32xf32>
    %155 = vector.shape_cast %152 : vector<1x32xf32> to vector<1x1x32xf32>
    tpu.vector_store %arg18[%c0_84, %c0_85, %c0_86], %155 {strides = array<i32>} : memref<1x1x32xf32, #tpu.memory_space<vmem>>, vector<1x1x32xf32>,
    return
  }
  func.func @transform_0(%arg0: i32) -> (i32, i32, i32) {
    %c0_i32 = arith.constant 0 : i32
    %c0_i32_0 = arith.constant 0 : i32
    %c0_i32_1 = arith.constant 0 : i32
    return %arg0, %c0_i32, %c0_i32_0 : i32, i32, i32
  }
  func.func @transform_1(%arg0: i32) -> (i32, i32, i32) {
    %c0_i32 = arith.constant 0 : i32
    %c0_i32_0 = arith.constant 0 : i32
    %c0_i32_1 = arith.constant 0 : i32
    return %arg0, %c0_i32, %c0_i32_0 : i32, i32, i32
  }
  func.func @transform_2(%arg0: i32) -> (i32, i32) {
    %c0_i32 = arith.constant 0 : i32
    %c0_i32_0 = arith.constant 0 : i32
    %c0_i32_1 = arith.constant 0 : i32
    return %c0_i32, %c0_i32_0 : i32, i32
  }
  func.func @transform_3(%arg0: i32) -> (i32, i32) {
    %c0_i32 = arith.constant 0 : i32
    %c0_i32_0 = arith.constant 0 : i32
    %c0_i32_1 = arith.constant 0 : i32
    return %c0_i32, %c0_i32_0 : i32, i32
  }
  func.func @transform_4(%arg0: i32) -> (i32, i32) {
    %c0_i32 = arith.constant 0 : i32
    %c0_i32_0 = arith.constant 0 : i32
    %c0_i32_1 = arith.constant 0 : i32
    return %c0_i32, %c0_i32_0 : i32, i32
  }
  func.func @transform_5(%arg0: i32) -> (i32, i32) {
    %c0_i32 = arith.constant 0 : i32
    %c0_i32_0 = arith.constant 0 : i32
    %c0_i32_1 = arith.constant 0 : i32
    return %c0_i32, %c0_i32_0 : i32, i32
  }
  func.func @transform_6(%arg0: i32) -> (i32, i32) {
    %c0_i32 = arith.constant 0 : i32
    %c0_i32_0 = arith.constant 0 : i32
    %c0_i32_1 = arith.constant 0 : i32
    return %c0_i32, %c0_i32_0 : i32, i32
  }
  func.func @transform_7(%arg0: i32) -> (i32, i32) {
    %c0_i32 = arith.constant 0 : i32
    %c0_i32_0 = arith.constant 0 : i32
    %c0_i32_1 = arith.constant 0 : i32
    return %c0_i32, %c0_i32_0 : i32, i32
  }
  func.func @transform_8(%arg0: i32) -> (i32, i32) {
    %c0_i32 = arith.constant 0 : i32
    %c0_i32_0 = arith.constant 0 : i32
    %c0_i32_1 = arith.constant 0 : i32
    return %c0_i32, %c0_i32_0 : i32, i32
  }
  func.func @transform_9(%arg0: i32) -> (i32, i32) {
    %c0_i32 = arith.constant 0 : i32
    %c0_i32_0 = arith.constant 0 : i32
    %c0_i32_1 = arith.constant 0 : i32
    return %c0_i32, %c0_i32_0 : i32, i32
  }
  func.func @transform_10(%arg0: i32) -> (i32, i32) {
    %c0_i32 = arith.constant 0 : i32
    %c0_i32_0 = arith.constant 0 : i32
    %c0_i32_1 = arith.constant 0 : i32
    return %c0_i32, %c0_i32_0 : i32, i32
  }
  func.func @transform_11(%arg0: i32) -> (i32, i32) {
    %c0_i32 = arith.constant 0 : i32
    %c0_i32_0 = arith.constant 0 : i32
    %c0_i32_1 = arith.constant 0 : i32
    return %c0_i32, %c0_i32_0 : i32, i32
  }
  func.func @transform_12(%arg0: i32) -> (i32, i32) {
    %c0_i32 = arith.constant 0 : i32
    %c0_i32_0 = arith.constant 0 : i32
    %c0_i32_1 = arith.constant 0 : i32
    return %c0_i32, %c0_i32_0 : i32, i32
  }
  func.func @transform_13(%arg0: i32) -> (i32, i32) {
    %c0_i32 = arith.constant 0 : i32
    %c0_i32_0 = arith.constant 0 : i32
    %c0_i32_1 = arith.constant 0 : i32
    return %c0_i32, %c0_i32_0 : i32, i32
  }
  func.func @transform_14(%arg0: i32) -> (i32, i32) {
    %c0_i32 = arith.constant 0 : i32
    %c0_i32_0 = arith.constant 0 : i32
    %c0_i32_1 = arith.constant 0 : i32
    return %c0_i32, %c0_i32_0 : i32, i32
  }
  func.func @transform_15(%arg0: i32) -> (i32, i32) {
    %c0_i32 = arith.constant 0 : i32
    %c0_i32_0 = arith.constant 0 : i32
    %c0_i32_1 = arith.constant 0 : i32
    return %c0_i32, %c0_i32_0 : i32, i32
  }
  func.func @transform_16(%arg0: i32) -> (i32, i32) {
    %c0_i32 = arith.constant 0 : i32
    %c0_i32_0 = arith.constant 0 : i32
    %c0_i32_1 = arith.constant 0 : i32
    return %c0_i32, %c0_i32_0 : i32, i32
  }
  func.func @transform_17(%arg0: i32) -> (i32, i32, i32) {
    %c0_i32 = arith.constant 0 : i32
    %c0_i32_0 = arith.constant 0 : i32
    %c0_i32_1 = arith.constant 0 : i32
    return %arg0, %c0_i32, %c0_i32_0 : i32, i32, i32
  }
}

</mosaic_0001>

<bundles_post_ra>
// kernel: tpu_custom_call.1
= control target key start
LH: loop header
LB: loop body
LE: loop exit
PB: predicated region body
PF: predicated region fallthrough
CT: control target
= control target key end

     0   :  { %s8082_s0 = inlined_call_operand.vmem [shape: bf16[3,512,16], index: 0, kind: input, shape index: {}]   ;;  %s8083_s1 = inlined_call_operand.vmem [shape: f32[3,3,32], index: 1, kind: input, shape index: {}]   ;;  %s8084_s2 = inlined_call_operand.vmem [shape: bf16[16,384], index: 2, kind: input, shape index: {}]   ;;  %s8085_s3 = inlined_call_operand.vmem [shape: f32[1,128], index: 3, kind: input, shape index: {}]   ;;  %s8086_s4 = inlined_call_operand.vmem [shape: bf16[64,384], index: 4, kind: input, shape index: {}]   ;;  %s8087_s5 = inlined_call_operand.vmem [shape: f32[1,128], index: 5, kind: input, shape index: {}]   ;;  %s8088_s6 = inlined_call_operand.vmem [shape: bf16[64,384], index: 6, kind: input, shape index: {}]   ;;  %s8089_s7 = inlined_call_operand.vmem [shape: f32[1,128], index: 7, kind: input, shape index: {}]   ;;  %s8090_s8 = inlined_call_operand.vmem [shape: bf16[64,384], index: 8, kind: input, shape index: {}]   ;;  %s8091_s9 = inlined_call_operand.vmem [shape: f32[1,128], index: 9, kind: input, shape index: {}]   ;;  %s8092_s10 = inlined_call_operand.vmem [shape: bf16[128,64], index: 10, kind: input, shape index: {}]   ;;  %s8093_s11 = inlined_call_operand.vmem [shape: bf16[128,64], index: 11, kind: input, shape index: {}]   ;;  %s8094_s12 = inlined_call_operand.vmem [shape: bf16[128,64], index: 12, kind: input, shape index: {}]   ;;  %s8095_s13 = inlined_call_operand.vmem [shape: f32[1,128], index: 13, kind: input, shape index: {}]   ;;  %s8096_s14 = inlined_call_operand.vmem [shape: f32[64,32], index: 14, kind: input, shape index: {}]   ;;  %s8097_s15 = inlined_call_operand.vmem [shape: f32[3,1], index: 15, kind: input, shape index: {}]   ;;  %s8098_s16 = inlined_call_operand.<no memory space> [shape: f32[1,1], index: 16, kind: input, shape index: {}]   ;;  %s8099_s17 = inlined_call_operand.hbm [shape: f32[3,1,32], index: 17, kind: output, shape index: {}]  }
   0x1   :  { %8112 = sst [smem:[#allocation15_spill]] %s8082_s0  ;;  %v22_v0 = vstv %s8098_s16 }
   0x2   :  { %8113 = sst [smem:[#allocation16_spill]] %s8083_s1  ;;  %23 = vst [vmem:[#allocation3] sm:$0x1] %v22_v0 }
   0x3   :  { %8114 = sst [smem:[#allocation17_spill]] %s8084_s2 }
   0x4   :  { %8115 = sst [smem:[#allocation18_spill]] %s8085_s3 }
   0x5   :  { %24 = vsyncpa [#allocation5], 0 }
   0x6   :  { %26 = vsyncpa [#allocation5 + $0x1], 0  ;;  %s6024_s26 = smov 0   ;;  %s6026_s27 = smov 0  }
   0x7   :  { %s6028_s28 = smov 0   ;;  %s6030_s29 = smov 0  }
   0x8 LB: > { %8116 = sst [smem:[#allocation7_spill]] %s5921_s28  ;;  %s6045_s16 = sadd.s32 4294967295, %s5925_s29   ;;  %s5925_s29 = sphi %s6030_s29, %s8179_s29   ;;  %s5921_s28 = sphi %s6028_s28, %s8181_s28   ;;  %s5917_s27 = sphi %s6026_s27, %s8183_s27   ;;  %s5913_s26 = sphi %s6024_s26, %s8182_s26  }
   0x9   : > { %s4997_s0 = sadd.s32 4294967294, %s5925_s29   ;;  %s6049_s30 = sadd.s32 1, %s5925_s29  }
   0xa   : > { %8117 = sst [smem:[#allocation8_spill]] %s6049_s30  ;;  %s406_s18 = sadd.s32 1, %s5921_s28 }
   0xb   : > { %s403_s19 = ssub.s32 %s5925_s29, %s6049_s30  ;;  %p416_p0 = scmp.ne.s32.totalorder %s5921_s28, %s5917_s27 }
   0xc   : > { %p404_p1 = scmp.eq.s32.totalorder %s403_s19, 0  ;;  %p417_p2 = scmp.eq.s32.totalorder %s6045_s16, 2 }
   0xd   : > { %p422_p3 = scmp.ne.s32.totalorder %s5917_s27, %s5913_s26  ;;  %p423_p4 = scmp.eq.s32.totalorder %s4997_s0, 2 }
   0xe   : > { %s6060_s1 = scalar_select %p404_p1, %s5921_s28, %s406_s18  }
   0xf   : > { %p6062_p5 = por %p417_p2, %p416_p0  ;;  %p6066_p6 = por %p423_p4, %p422_p3 }
  0x10   : > { %8118 = sst [smem:[#allocation9_spill]] %s6060_s1  ;;  %p5000_p7 = scmp.ge.s32.totalorder %s5925_s29, 1 }
  0x11   : > { %p501_p8 = scmp.lt.s32.totalorder %s5925_s29, 4 }
  0x13   : > { %p502_p9 = pnand %p5000_p7, %p501_p8 }
  0x15   : > { %505 = sbr.rel (%p502_p9) target bundleno = 2580 (0xa14), region = 88 }
  0x1a   : > { %s8121_s2 = sld [smem:[#allocation17_spill]]  ;;  %p556_p10 = scmp.lt.s32.totalorder %s6045_s16, 2  ;;  %vm810_vm0 = vcmask 130048   ;;  %v1414_v24 = vlaneseq }
  0x1b   : > { %s8122_s18 = sld [smem:[#allocation15_spill]]  ;;  %s5927_s22 = smov 120  }
  0x1c   : > { %s6092_s24 = scalar_select %p556_p10, %s6045_s16, 2  ;;  %v6143_v26 = vshrl.u32 %v1414_v24, 7 }
  0x1d   : > { %s8123_s3 = sld [smem:[#allocation18_spill]]  ;;  %s5928_s30 = smov 112  }
  0x1e   : > { %s5566_s25 = sshll.u32 %s6092_s24, 8  ;;  %v6147_v30 = vadd.s32 8, %v6143_v26  ;;  %vm1928_vm1 = vcmp.lt.s32.totalorder %v6143_v26, 7  ;;  %v6157_v35 = vadd.s32 16, %v6143_v26  ;;  %vm1671_vm2 = vcmp.lt.s32.totalorder %v6143_v26, 1  ;;  %s5929_s23 = smov 96  }
  0x1f   : > { %v6182_v57 = vadd.s32 24, %v6143_v26  ;;  %v6187_v0 = vadd.s32 32, %v6143_v26 }
  0x20   : > { %v5134_v1 = vld [vmem:[%s8121_s2] sm:$0xf]  ;;  %v5600_v2 = vld [vmem:[%s8121_s2 + $0x8] sm:$0xf0]  ;;  %v5142_v3 = vld [vmem:[%s8121_s2 + $0x8] sm:$0xf] }
  0x21   : > { %v5135_v4 = vor.u32 %v5600_v2, %v5134_v1  ;;  %v5601_v5 = vld [vmem:[%s8121_s2 + $0x10] sm:$0xf0]  ;;  %v5599_v6 = vld [vmem:[%s8121_s2 + $0x4] sm:$0xf]  ;;  %v5136_v8 = vld [vmem:[%s8121_s2 + $0xc] sm:$0xf0]  ;;  %s6098_s19 = scalar_lea.vmem %s8122_s18, %s5566_s25 }
  0x22   : > { %v5143_v7 = vor.u32 %v5601_v5, %v5142_v3  ;;  %v5139_v9 = vor.u32 %v5599_v6, %v5136_v8  ;;  %v5567_v10 = vld [vmem:[%s6098_s19] sm:$0xff]  ;;  %v5568_v11 = vld [vmem:[%s6098_s19 + $0x8] sm:$0xff]  ;;  %v5569_v12 = vld [vmem:[%s6098_s19 + $0x10] sm:$0xff]  ;;  %v1480_v36 = vand.u32 15, %v6147_v30  ;;  %v1481_v40 = vand.u32 15, %v6157_v35  ;;  %s8178_s18 = sld [smem:[#allocation16_spill]] }
  0x23   : > { %914 = vmatpush.bf16.msra.mxu0 %v5135_v4  ;;  %v5570_v13 = vld [vmem:[%s6098_s19 + $0x18] sm:$0xff]  ;;  %v5571_v14 = vld [vmem:[%s6098_s19 + $0x20] sm:$0xff]  ;;  %v5572_v15 = vld [vmem:[%s6098_s19 + $0x28] sm:$0xff]  ;;  %v1482_v1 = vand.u32 15, %v6182_v57  ;;  %v1483_v6 = vand.u32 15, %v6187_v0 }
  0x24   : > { %1252 = vmatpush.bf16.msra.mxu2 %v5143_v7  ;;  %1083 = vmatpush.bf16.msra.mxu1 %v5139_v9  ;;  %v5573_v16 = vld [vmem:[%s6098_s19 + $0x30] sm:$0xff]  ;;  %v5574_v17 = vld [vmem:[%s6098_s19 + $0x38] sm:$0xff]  ;;  %v5575_v18 = vld [vmem:[%s6098_s19 + $0x40] sm:$0xff]  ;;  %vm1801_vm3 = vcmp.eq.s32.totalorder %v1480_v36, 15  ;;  %vm1545_vm4 = vcmp.eq.s32.totalorder %v1481_v40, 0 }
  0x25   : > { %v5576_v29 = vld [vmem:[%s6098_s19 + $0x48] sm:$0xff]  ;;  %v6175_v46 = vld [vmem:[%s8123_s3] ss:$0 sm:$0xff]  ;;  %v5577_v56 = vld [vmem:[%s6098_s19 + $0x50] sm:$0xff]  ;;  %vm1803_vm5 = vcmp.eq.s32.totalorder %v1482_v1, 15  ;;  %vm1547_vm6 = vcmp.eq.s32.totalorder %v1483_v6, 0 }
  0x26   : > { %5144 = vmatmul.msk.bf16.vlgmr.msra.gmra.mxu0 %vm810_vm0, %v5567_v10  ;;  %v5578_v24 = vld [vmem:[%s6098_s19 + $0x58] sm:$0xff]  ;;  %v6231_v6 = vadd.s32 64, %v6143_v26 }
  0x27   : > { %5208 = vmatmul.msk.bf16.vlgmr.msra.gmra.mxu2 %vm810_vm0, %v5567_v10  ;;  %5176 = vmatmul.msk.bf16.vlgmr.msra.gmra.mxu1 %vm810_vm0, %v5567_v10 }
  0x36   : > { %5145 = vmatmul.msk.bf16.gmra.mxu0 %vm810_vm0, %v5568_v11 }
  0x37   : > { %5209 = vmatmul.msk.bf16.gmra.mxu2 %vm810_vm0, %v5568_v11  ;;  %5177 = vmatmul.msk.bf16.gmra.mxu1 %vm810_vm0, %v5568_v11 }
  0x46   : > { %5146 = vmatmul.msk.bf16.gmra.mxu0 %vm810_vm0, %v5569_v12 }
  0x47   : > { %5210 = vmatmul.msk.bf16.gmra.mxu2 %vm810_vm0, %v5569_v12  ;;  %5178 = vmatmul.msk.bf16.gmra.mxu1 %vm810_vm0, %v5569_v12 }
  0x56   : > { %5147 = vmatmul.msk.bf16.gmra.mxu0 %vm810_vm0, %v5570_v13 }
  0x57   : > { %5211 = vmatmul.msk.bf16.gmra.mxu2 %vm810_vm0, %v5570_v13  ;;  %5179 = vmatmul.msk.bf16.gmra.mxu1 %vm810_vm0, %v5570_v13 }
  0x66   : > { %5148 = vmatmul.msk.bf16.gmra.mxu0 %vm810_vm0, %v5571_v14 }
  0x67   : > { %5212 = vmatmul.msk.bf16.gmra.mxu2 %vm810_vm0, %v5571_v14  ;;  %5180 = vmatmul.msk.bf16.gmra.mxu1 %vm810_vm0, %v5571_v14 }
  0x76   : > { %5149 = vmatmul.msk.bf16.gmra.mxu0 %vm810_vm0, %v5572_v15 }
  0x77   : > { %5213 = vmatmul.msk.bf16.gmra.mxu2 %vm810_vm0, %v5572_v15  ;;  %5181 = vmatmul.msk.bf16.gmra.mxu1 %vm810_vm0, %v5572_v15 }
  0x86   : > { %5150 = vmatmul.msk.bf16.gmra.mxu0 %vm810_vm0, %v5573_v16 }
  0x87   : > { %5214 = vmatmul.msk.bf16.gmra.mxu2 %vm810_vm0, %v5573_v16  ;;  %5182 = vmatmul.msk.bf16.gmra.mxu1 %vm810_vm0, %v5573_v16 }
  0x96   : > { %5151 = vmatmul.msk.bf16.gmra.mxu0 %vm810_vm0, %v5574_v17 }
  0x97   : > { %5215 = vmatmul.msk.bf16.gmra.mxu2 %vm810_vm0, %v5574_v17  ;;  %5183 = vmatmul.msk.bf16.gmra.mxu1 %vm810_vm0, %v5574_v17 }
  0xa3   : > { %v6133_v19 = vpop.f32.mrf.mxu0 }
  0xa4   : > { %v6135_v20 = vpop.f32.mrf.mxu1  ;;  %v8104_v37 = vrot.slane %v6133_v19, 7 }
  0xa6   : > { %5152 = vmatmul.msk.bf16.gmra.mxu0 %vm810_vm0, %v5575_v18 }
  0xa7   : > { %5216 = vmatmul.msk.bf16.gmra.mxu2 %vm810_vm0, %v5575_v18  ;;  %5184 = vmatmul.msk.bf16.gmra.mxu1 %vm810_vm0, %v5575_v18 }
  0xaa   : > { %v6140_v21 = vpop.f32.mrf.mxu2 }
  0xab   : > { %v918_v22 = vpop.f32.mrf.mxu0  ;;  %v8103_v25 = vrot.slane %v6140_v21, 1 }
  0xac   : > { %v1087_v23 = vpop.f32.mrf.mxu1  ;;  %v1608_v34 = vrot.slane %v918_v22, 7 }
  0xae   : > { %v1734_v38 = vsel %vm1671_vm2, %v8104_v37, %v1608_v34 }
  0xaf   : > { %v2058_v44 = vadd.f32 %v1734_v38, %v1087_v23  ;;  %v6209_v38 = vadd.s32 48, %v6143_v26 }
  0xb2   : > { %v1256_v27 = vpop.f32.mrf.mxu2 }
  0xb3   : > { %v1865_v28 = vrot.slane %v1256_v27, 1  ;;  %v921_v31 = vpop.f32.mrf.mxu0  ;;  %v6204_v27 = vadd.s32 40, %v6143_v26 }
  0xb4   : > { %v1090_v33 = vpop.f32.mrf.mxu1  ;;  %v1609_v39 = vrot.slane %v921_v31, 7 }
  0xb5   : > { %v6154_v32 = vsel %vm1928_vm1, %v8103_v25, %v1865_v28 }
  0xb6   : > { %5153 = vmatmul.msk.bf16.gmra.mxu0 %vm810_vm0, %v5576_v29  ;;  %v1733_v48 = vsel %vm1671_vm2, %v1608_v34, %v1609_v39 }
  0xb7   : > { %5217 = vmatmul.msk.bf16.gmra.mxu2 %vm810_vm0, %v5576_v29  ;;  %5185 = vmatmul.msk.bf16.gmra.mxu1 %vm810_vm0, %v5576_v29  ;;  %v1738_v51 = vsel %vm1545_vm4, 0.0, %v1733_v48 }
  0xb8   : > { %v2059_v58 = vadd.f32 %v1738_v51, %v1090_v33 }
  0xba   : > { %v1259_v41 = vpop.f32.mrf.mxu2 }
  0xbb   : > { %v1866_v42 = vrot.slane %v1259_v41, 1  ;;  %v923_v43 = vpop.f32.mrf.mxu0 }
  0xbc   : > { %v1092_v47 = vpop.f32.mrf.mxu1  ;;  %v1610_v62 = vrot.slane %v923_v43, 7 }
  0xbd   : > { %v1990_v45 = vsel %vm1928_vm1, %v1865_v28, %v1866_v42 }
  0xbe   : > { %v1994_v49 = vsel %vm1801_vm3, 0.0, %v1990_v45  ;;  %v1732_v3 = vsel %vm1671_vm2, %v1609_v39, %v1610_v62  ;;  %v1484_v39 = vand.u32 15, %v6204_v27 }
  0xbf   : > { %v2122_v50 = vadd.f32 %v2058_v44, %v1994_v49  ;;  %v2060_v10 = vadd.f32 %v1732_v3, %v1092_v47  ;;  %v1485_v44 = vand.u32 15, %v6209_v38 }
  0xc0   : > { %vm1805_vm7 = vcmp.eq.s32.totalorder %v1484_v39, 15  ;;  %v6248_v39 = vadd.s32 72, %v6143_v26 }
  0xc1   : > { %v2190_v52 = vadd.f32 %v6175_v46, %v2122_v50  ;;  %vm1549_vm8 = vcmp.eq.s32.totalorder %v1485_v44, 0  ;;  %v6253_v44 = vadd.s32 80, %v6143_v26 }
  0xc2   : > { %v1261_v53 = vpop.f32.mrf.mxu2 }
  0xc3   : > { %v2254_v54 = vmax.f32 %v2190_v52, 0.0  ;;  %v1867_v55 = vrot.slane %v1261_v53, 1  ;;  %v926_v59 = vpop.f32.mrf.mxu0 }
  0xc4   : > { %v1095_v61 = vpop.f32.mrf.mxu1  ;;  %v1611_v5 = vrot.slane %v926_v59, 7 }
  0xc5   : > { %2318 = vst [vmem:[#allocation2 + $0x8] sm:$0xff] %v2254_v54  ;;  %v1989_v60 = vsel %vm1928_vm1, %v1866_v42, %v1867_v55 }
  0xc6   : > { %v2123_v63 = vadd.f32 %v2059_v58, %v1989_v60  ;;  %5154 = vmatmul.msk.bf16.gmra.mxu0 %vm810_vm0, %v5577_v56  ;;  %v1731_v13 = vsel %vm1671_vm2, %v1610_v62, %v1611_v5  ;;  %v6226_v62 = vadd.s32 56, %v6143_v26 }
  0xc7   : > { %5218 = vmatmul.msk.bf16.gmra.mxu2 %vm810_vm0, %v5577_v56  ;;  %5186 = vmatmul.msk.bf16.gmra.mxu1 %vm810_vm0, %v5577_v56  ;;  %v1740_v16 = vsel %vm1547_vm6, 0.0, %v1731_v13 }
  0xc8   : > { %v2191_v2 = vadd.f32 %v6175_v46, %v2123_v63  ;;  %v2061_v28 = vadd.f32 %v1740_v16, %v1095_v61  ;;  %v5579_v61 = vld [vmem:[%s6098_s19 + $0x60] sm:$0xff] }
  0xca   : > { %v2255_v4 = vmax.f32 %v2191_v2, 0.0  ;;  %v1264_v7 = vpop.f32.mrf.mxu2 }
  0xcb   : > { %v1868_v8 = vrot.slane %v1264_v7, 1  ;;  %v928_v9 = vpop.f32.mrf.mxu0  ;;  %v1486_v7 = vand.u32 15, %v6226_v62 }
  0xcc   : > { %2319 = vst [vmem:[#allocation2 + $0x10] sm:$0xff] %v2255_v4  ;;  %v1097_v12 = vpop.f32.mrf.mxu1  ;;  %v1612_v34 = vrot.slane %v928_v9, 7 }
  0xcd   : > { %v1988_v11 = vsel %vm1928_vm1, %v1867_v55, %v1868_v8  ;;  %vm1807_vm9 = vcmp.eq.s32.totalorder %v1486_v7, 15 }
  0xce   : > { %v1996_v14 = vsel %vm1803_vm5, 0.0, %v1988_v11  ;;  %v1730_v41 = vsel %vm1671_vm2, %v1611_v5, %v1612_v34 }
  0xcf   : > { %v2124_v15 = vadd.f32 %v2060_v10, %v1996_v14  ;;  %v2062_v49 = vadd.f32 %v1730_v41, %v1097_v12  ;;  %v1487_v12 = vand.u32 15, %v6231_v6 }
  0xd1   : > { %v2192_v17 = vadd.f32 %v6175_v46, %v2124_v15  ;;  %vm1551_vm10 = vcmp.eq.s32.totalorder %v1487_v12, 0 }
  0xd2   : > { %v1266_v18 = vpop.f32.mrf.mxu2 }
  0xd3   : > { %v2256_v22 = vmax.f32 %v2192_v17, 0.0  ;;  %v1869_v23 = vrot.slane %v1266_v18, 1  ;;  %v931_v29 = vpop.f32.mrf.mxu0 }
  0xd4   : > { %v1100_v33 = vpop.f32.mrf.mxu1  ;;  %v1613_v43 = vrot.slane %v931_v29, 7 }
  0xd5   : > { %2320 = vst [vmem:[#allocation2 + $0x18] sm:$0xff] %v2256_v22  ;;  %v1987_v31 = vsel %vm1928_vm1, %v1868_v8, %v1869_v23 }
  0xd6   : > { %v2125_v36 = vadd.f32 %v2061_v28, %v1987_v31  ;;  %5155 = vmatmul.msk.bf16.gmra.mxu0 %vm810_vm0, %v5578_v24  ;;  %v1729_v52 = vsel %vm1671_vm2, %v1612_v34, %v1613_v43 }
  0xd7   : > { %5219 = vmatmul.msk.bf16.gmra.mxu2 %vm810_vm0, %v5578_v24  ;;  %5187 = vmatmul.msk.bf16.gmra.mxu1 %vm810_vm0, %v5578_v24  ;;  %v1742_v55 = vsel %vm1549_vm8, 0.0, %v1729_v52 }
  0xd8   : > { %v2193_v40 = vadd.f32 %v6175_v46, %v2125_v36  ;;  %v2063_v63 = vadd.f32 %v1742_v55, %v1100_v33  ;;  %v5580_v36 = vld [vmem:[%s6098_s19 + $0x68] sm:$0xff] }
  0xda   : > { %v2257_v42 = vmax.f32 %v2193_v40, 0.0  ;;  %v1269_v45 = vpop.f32.mrf.mxu2 }
  0xdb   : > { %v1870_v47 = vrot.slane %v1269_v45, 1  ;;  %v933_v48 = vpop.f32.mrf.mxu0 }
  0xdc   : > { %2321 = vst [vmem:[#allocation2 + $0x20] sm:$0xff] %v2257_v42  ;;  %v1102_v51 = vpop.f32.mrf.mxu1  ;;  %v1614_v4 = vrot.slane %v933_v48, 7  ;;  %v1488_v48 = vand.u32 15, %v6248_v39 }
  0xdd   : > { %v1986_v50 = vsel %vm1928_vm1, %v1869_v23, %v1870_v47 }
  0xde   : > { %v1998_v53 = vsel %vm1805_vm7, 0.0, %v1986_v50  ;;  %v1728_v9 = vsel %vm1671_vm2, %v1613_v43, %v1614_v4  ;;  %v1489_v50 = vand.u32 15, %v6253_v44  ;;  %vm1809_vm11 = vcmp.eq.s32.totalorder %v1488_v48, 15 }
  0xdf   : > { %v2126_v54 = vadd.f32 %v2062_v49, %v1998_v53  ;;  %v2064_v16 = vadd.f32 %v1728_v9, %v1102_v51 }
  0xe0   : > { %vm1553_vm12 = vcmp.eq.s32.totalorder %v1489_v50, 0 }
  0xe1   : > { %v2194_v56 = vadd.f32 %v6175_v46, %v2126_v54 }
  0xe2   : > { %v1271_v58 = vpop.f32.mrf.mxu2 }
  0xe3   : > { %v2258_v59 = vmax.f32 %v2194_v56, 0.0  ;;  %v1871_v60 = vrot.slane %v1271_v58, 1  ;;  %v936_v1 = vpop.f32.mrf.mxu0 }
  0xe4   : > { %v1105_v3 = vpop.f32.mrf.mxu1  ;;  %v1615_v11 = vrot.slane %v936_v1, 7 }
  0xe5   : > { %2322 = vst [vmem:[#allocation2 + $0x28] sm:$0xff] %v2258_v59  ;;  %v1985_v2 = vsel %vm1928_vm1, %v1870_v47, %v1871_v60 }
  0xe6   : > { %v2127_v5 = vadd.f32 %v2063_v63, %v1985_v2  ;;  %5156 = vmatmul.msk.bf16.gmra.mxu0 %vm810_vm0, %v5579_v61  ;;  %v1727_v22 = vsel %vm1671_vm2, %v1614_v4, %v1615_v11 }
  0xe7   : > { %5220 = vmatmul.msk.bf16.gmra.mxu2 %vm810_vm0, %v5579_v61  ;;  %5188 = vmatmul.msk.bf16.gmra.mxu1 %vm810_vm0, %v5579_v61  ;;  %v1744_v28 = vsel %vm1551_vm10, 0.0, %v1727_v22 }
  0xe8   : > { %v2195_v8 = vadd.f32 %v6175_v46, %v2127_v5  ;;  %v2065_v40 = vadd.f32 %v1744_v28, %v1105_v3 }
  0xea   : > { %v2259_v10 = vmax.f32 %v2195_v8, 0.0  ;;  %v1274_v13 = vpop.f32.mrf.mxu2 }
  0xeb   : > { %v1872_v14 = vrot.slane %v1274_v13, 1  ;;  %v938_v15 = vpop.f32.mrf.mxu0 }
  0xec   : > { %2323 = vst [vmem:[#allocation2 + $0x30] sm:$0xff] %v2259_v10  ;;  %v1107_v18 = vpop.f32.mrf.mxu1  ;;  %v1616_v45 = vrot.slane %v938_v15, 7  ;;  %v2385_v55 = vld [vmem:[#allocation2 + $0x20] ss:$2 sm:$0xff]  ;;  %v2449_v56 = vld [vmem:[#allocation2 + $0x21] ss:$2 sm:$0xff] }
  0xed   : > { %v1984_v17 = vsel %vm1928_vm1, %v1871_v60, %v1872_v14  ;;  %v6265_v3 = vmax.f32 %v2385_v55, %v2449_v56  ;;  %v5581_v15 = vld [vmem:[%s6098_s19 + $0x70] sm:$0xff] }
  0xee   : > { %v2000_v23 = vsel %vm1807_vm9, 0.0, %v1984_v17  ;;  %v1726_v51 = vsel %vm1671_vm2, %v1615_v11, %v1616_v45 }
  0xef   : > { %v2128_v24 = vadd.f32 %v2064_v16, %v2000_v23  ;;  %v2066_v63 = vadd.f32 %v1726_v51, %v1107_v18  ;;  %v6277_v16 = vadd.s32 88, %v6143_v26 }
  0xf1   : > { %v2196_v29 = vadd.f32 %v6175_v46, %v2128_v24 }
  0xf2   : > { %v1276_v31 = vpop.f32.mrf.mxu2 }
  0xf3   : > { %v2260_v33 = vmax.f32 %v2196_v29, 0.0  ;;  %v1873_v34 = vrot.slane %v1276_v31, 1  ;;  %v941_v41 = vpop.f32.mrf.mxu0  ;;  %v6282_v29 = vadd.s32 96, %v6143_v26  ;;  %v1490_v31 = vand.u32 15, %v6277_v16 }
  0xf4   : > { %v1110_v43 = vpop.f32.mrf.mxu1  ;;  %v1617_v53 = vrot.slane %v941_v41, 7 }
  0xf5   : > { %2324 = vst [vmem:[#allocation2 + $0x38] sm:$0xff] %v2260_v33  ;;  %v1983_v42 = vsel %vm1928_vm1, %v1872_v14, %v1873_v34  ;;  %v1491_v41 = vand.u32 15, %v6282_v29  ;;  %vm1811_vm13 = vcmp.eq.s32.totalorder %v1490_v31, 15 }
  0xf6   : > { %v2129_v47 = vadd.f32 %v2065_v40, %v1983_v42  ;;  %5157 = vmatmul.msk.bf16.gmra.mxu0 %vm810_vm0, %v5580_v36  ;;  %v1725_v5 = vsel %vm1671_vm2, %v1616_v45, %v1617_v53 }
  0xf7   : > { %5221 = vmatmul.msk.bf16.gmra.mxu2 %vm810_vm0, %v5580_v36  ;;  %5189 = vmatmul.msk.bf16.gmra.mxu1 %vm810_vm0, %v5580_v36  ;;  %v1746_v10 = vsel %vm1553_vm12, 0.0, %v1725_v5  ;;  %vm1555_vm14 = vcmp.eq.s32.totalorder %v1491_v41, 0  ;;  %v6304_v5 = vadd.s32 112, %v6143_v26 }
  0xf8   : > { %v2197_v49 = vadd.f32 %v6175_v46, %v2129_v47  ;;  %v2067_v17 = vadd.f32 %v1746_v10, %v1110_v43 }
  0xfa   : > { %v2261_v52 = vmax.f32 %v2197_v49, 0.0  ;;  %v1279_v54 = vpop.f32.mrf.mxu2 }
  0xfb   : > { %v1874_v58 = vrot.slane %v1279_v54, 1  ;;  %v943_v59 = vpop.f32.mrf.mxu0 }
  0xfc   : > { %2325 = vst [vmem:[#allocation2 + $0x40] sm:$0xff] %v2261_v52  ;;  %v2387_v60 = vld [vmem:[#allocation2 + $0x30] ss:$2 sm:$0xff]  ;;  %v2451_v61 = vld [vmem:[#allocation2 + $0x31] ss:$2 sm:$0xff]  ;;  %v1112_v2 = vpop.f32.mrf.mxu1  ;;  %v1618_v24 = vrot.slane %v943_v59, 7 }
  0xfd   : > { %v1982_v1 = vsel %vm1928_vm1, %v1873_v34, %v1874_v58  ;;  %v6267_v4 = vmax.f32 %v2387_v60, %v2451_v61  ;;  %v5582_v59 = vld [vmem:[%s6098_s19 + $0x78] sm:$0xff]  ;;  %v6299_v60 = vadd.s32 104, %v6143_v26 }
  0xfe   : > { %v2002_v7 = vsel %vm1809_vm11, 0.0, %v1982_v1  ;;  %v1724_v34 = vsel %vm1671_vm2, %v1617_v53, %v1618_v24 }
  0xff   : > { %v2130_v8 = vadd.f32 %v2066_v63, %v2002_v7  ;;  %v5713_v9 = vpack.i.bf16 %v6267_v4, %v6265_v3  ;;  %v2068_v47 = vadd.f32 %v1724_v34, %v1112_v2  ;;  %v5609_v7 = vld [vmem:[%s8092_s10 + $0x38] sm:$0xff]  ;;  %v1492_v10 = vand.u32 15, %v6299_v60 }
 0x100   : > { %2716 = vmatpush.bf16.msrb.mxu0 %v5609_v7  ;;  %5662 = vmatpush.bf16.msra.mxu3 %v5609_v7 }
 0x101   : > { %v2198_v11 = vadd.f32 %v6175_v46, %v2130_v8  ;;  %5714 = vrot.lane.b32.xlu0 %v5713_v9, %s5927_s22  ;;  %vm1813_vm15 = vcmp.eq.s32.totalorder %v1492_v10, 15 }
 0x102   : > { %v1281_v12 = vpop.f32.mrf.mxu2 }
 0x103   : > { %v2262_v13 = vmax.f32 %v2198_v11, 0.0  ;;  %v1875_v14 = vrot.slane %v1281_v12, 1  ;;  %v946_v18 = vpop.f32.mrf.mxu0  ;;  %v1493_v12 = vand.u32 15, %v6304_v5 }
 0x104   : > { %v1115_v23 = vpop.f32.mrf.mxu1  ;;  %v1619_v40 = vrot.slane %v946_v18, 7 }
 0x105   : > { %2326 = vst [vmem:[#allocation2 + $0x48] sm:$0xff] %v2262_v13  ;;  %v1981_v22 = vsel %vm1928_vm1, %v1874_v58, %v1875_v14  ;;  %vm1557_vm3 = vcmp.eq.s32.totalorder %v1493_v12, 0 }
 0x106   : > { %v2131_v28 = vadd.f32 %v2067_v17, %v1981_v22  ;;  %5158 = vmatmul.msk.bf16.gmra.mxu0 %vm810_vm0, %v5581_v15  ;;  %v1723_v50 = vsel %vm1671_vm2, %v1618_v24, %v1619_v40 }
 0x107   : > { %5222 = vmatmul.msk.bf16.gmra.mxu2 %vm810_vm0, %v5581_v15  ;;  %5190 = vmatmul.msk.bf16.gmra.mxu1 %vm810_vm0, %v5581_v15  ;;  %v1748_v53 = vsel %vm1555_vm14, 0.0, %v1723_v50 }
 0x108   : > { %v2199_v33 = vadd.f32 %v6175_v46, %v2131_v28  ;;  %v2069_v61 = vadd.f32 %v1748_v53, %v1115_v23  ;;  %v5583_v53 = vld [vmem:[%s6098_s19 + $0x80] sm:$0xff] }
 0x10a   : > { %v2263_v36 = vmax.f32 %v2199_v33, 0.0  ;;  %v1284_v42 = vpop.f32.mrf.mxu2 }
 0x10b   : > { %v1876_v43 = vrot.slane %v1284_v42, 1  ;;  %v948_v45 = vpop.f32.mrf.mxu0 }
 0x10c   : > { %2327 = vst [vmem:[#allocation2 + $0x50] sm:$0xff] %v2263_v36  ;;  %v1117_v49 = vpop.f32.mrf.mxu1  ;;  %v1620_v8 = vrot.slane %v948_v45, 7  ;;  %v2389_v18 = vld [vmem:[#allocation2 + $0x40] ss:$2 sm:$0xff]  ;;  %v2453_v22 = vld [vmem:[#allocation2 + $0x41] ss:$2 sm:$0xff] }
 0x10d   : > { %v1980_v48 = vsel %vm1928_vm1, %v1875_v14, %v1876_v43  ;;  %v6319_v41 = vmax.f32 %v2389_v18, %v2453_v22 }
 0x10e   : > { %v2004_v51 = vsel %vm1811_vm13, 0.0, %v1980_v48  ;;  %v1722_v13 = vsel %vm1671_vm2, %v1619_v40, %v1620_v8 }
 0x10f   : > { %v2132_v52 = vadd.f32 %v2068_v47, %v2004_v51  ;;  %v2070_v33 = vadd.f32 %v1722_v13, %v1117_v49 }
 0x111   : > { %v2200_v54 = vadd.f32 %v6175_v46, %v2132_v52 }
 0x112   : > { %v1286_v55 = vpop.f32.mrf.mxu2 }
 0x113   : > { %v2264_v56 = vmax.f32 %v2200_v54, 0.0  ;;  %v1877_v58 = vrot.slane %v1286_v55, 1  ;;  %v951_v63 = vpop.f32.mrf.mxu0  ;;  %v6331_v54 = vadd.s32 120, %v6143_v26 }
 0x114   : > { %v1120_v2 = vpop.f32.mrf.mxu1  ;;  %v1621_v15 = vrot.slane %v951_v63, 7 }
 0x115   : > { %2328 = vst [vmem:[#allocation2 + $0x58] sm:$0xff] %v2264_v56  ;;  %v1979_v1 = vsel %vm1928_vm1, %v1876_v43, %v1877_v58  ;;  %v1494_v7 = vand.u32 15, %v6331_v54 }
 0x116   : > { %v2133_v9 = vadd.f32 %v2069_v61, %v1979_v1  ;;  %5159 = vmatmul.msk.bf16.gmra.mxu0 %vm810_vm0, %v5582_v59  ;;  %v1721_v42 = vsel %vm1671_vm2, %v1620_v8, %v1621_v15  ;;  %v6336_v1 = vadd.s32 128, %v6143_v26 }
 0x117   : > { %5223 = vmatmul.msk.bf16.gmra.mxu2 %vm810_vm0, %v5582_v59  ;;  %5191 = vmatmul.msk.bf16.gmra.mxu1 %vm810_vm0, %v5582_v59  ;;  %v1750_v48 = vsel %vm1557_vm3, 0.0, %v1721_v42  ;;  %vm1815_vm4 = vcmp.eq.s32.totalorder %v1494_v7, 15 }
 0x118   : > { %v2201_v11 = vadd.f32 %v6175_v46, %v2133_v9  ;;  %v2071_v55 = vadd.f32 %v1750_v48, %v1120_v2 }
 0x11a   : > { %v2265_v14 = vmax.f32 %v2201_v11, 0.0  ;;  %v1289_v17 = vpop.f32.mrf.mxu2  ;;  %v1495_v11 = vand.u32 15, %v6336_v1 }
 0x11b   : > { %v1878_v23 = vrot.slane %v1289_v17, 1  ;;  %v953_v24 = vpop.f32.mrf.mxu0 }
 0x11c   : > { %2329 = vst [vmem:[#allocation2 + $0x60] sm:$0xff] %v2265_v14  ;;  %v2391_v28 = vld [vmem:[#allocation2 + $0x50] ss:$2 sm:$0xff]  ;;  %v2455_v31 = vld [vmem:[#allocation2 + $0x51] ss:$2 sm:$0xff]  ;;  %v1122_v36 = vpop.f32.mrf.mxu1  ;;  %v1622_v61 = vrot.slane %v953_v24, 7 }
 0x11d   : > { %v1978_v34 = vsel %vm1928_vm1, %v1877_v58, %v1878_v23  ;;  %v6321_v40 = vmax.f32 %v2391_v28, %v2455_v31  ;;  %vm1559_vm5 = vcmp.eq.s32.totalorder %v1495_v11, 0 }
 0x11e   : > { %v2006_v43 = vsel %vm1813_vm15, 0.0, %v1978_v34  ;;  %v1720_v2 = vsel %vm1671_vm2, %v1621_v15, %v1622_v61 }
 0x11f   : > { %v2134_v45 = vadd.f32 %v2070_v33, %v2006_v43  ;;  %v5718_v47 = vpack.i.bf16 %v6321_v40, %v6319_v41  ;;  %v2072_v17 = vadd.f32 %v1720_v2, %v1122_v36  ;;  %v5584_v43 = vld [vmem:[%s6098_s19 + $0x88] sm:$0xff] }
 0x121   : > { %v2202_v49 = vadd.f32 %v6175_v46, %v2134_v45  ;;  %5719 = vrot.lane.b32.xlu0 %v5718_v47, %s5927_s22  ;;  %v6353_v45 = vadd.s32 136, %v6143_v26 }
 0x122   : > { %v1291_v50 = vpop.f32.mrf.mxu2 }
 0x123   : > { %v2266_v51 = vmax.f32 %v2202_v49, 0.0  ;;  %v1879_v52 = vrot.slane %v1291_v50, 1  ;;  %v956_v56 = vpop.f32.mrf.mxu0  ;;  %v6360_v50 = vadd.s32 144, %v6143_v26 }
 0x124   : > { %v1125_v59 = vpop.f32.mrf.mxu1  ;;  %v1623_v10 = vrot.slane %v956_v56, 7 }
 0x125   : > { %2330 = vst [vmem:[#allocation2 + $0x68] sm:$0xff] %v2266_v51  ;;  %v1977_v58 = vsel %vm1928_vm1, %v1878_v23, %v1879_v52  ;;  %v1497_v56 = vand.u32 15, %v6360_v50 }
 0x126   : > { %v2135_v63 = vadd.f32 %v2071_v55, %v1977_v58  ;;  %5160 = vmatmul.msk.bf16.gmra.mxu0 %vm810_vm0, %v5583_v53  ;;  %v1719_v23 = vsel %vm1671_vm2, %v1622_v61, %v1623_v10 }
 0x127   : > { %5224 = vmatmul.msk.bf16.gmra.mxu2 %vm810_vm0, %v5583_v53  ;;  %5192 = vmatmul.msk.bf16.gmra.mxu1 %vm810_vm0, %v5583_v53  ;;  %v1752_v28 = vsel %vm1559_vm5, 0.0, %v1719_v23  ;;  %v1496_v53 = vand.u32 15, %v6353_v45  ;;  %v5608_v23 = vld [vmem:[%s8092_s10 + $0x30] sm:$0xff]  ;;  %vm6380_vm7 = vcmp.eq.s32.totalorder %v1497_v56, 0 }
 0x128   : > { %v2203_v8 = vadd.f32 %v6175_v46, %v2135_v63  ;;  %v2073_v36 = vadd.f32 %v1752_v28, %v1125_v59  ;;  %5663 = vmatpush.bf16.msra.mxu3 %v5608_v23  ;;  %2717 = vmatpush.bf16.msrb.mxu0 %v5608_v23 }
 0x129   : > { %vm1817_vm6 = vcmp.eq.s32.totalorder %v1496_v53, 15 }
 0x12a   : > { %v2267_v9 = vmax.f32 %v2203_v8, 0.0  ;;  %v1294_v12 = vpop.f32.mrf.mxu2 }
 0x12b   : > { %v1880_v13 = vrot.slane %v1294_v12, 1  ;;  %v958_v14 = vpop.f32.mrf.mxu0 }
 0x12c   : > { %2331 = vst [vmem:[#allocation2 + $0x70] sm:$0xff] %v2267_v9  ;;  %v1127_v22 = vpop.f32.mrf.mxu1  ;;  %v1624_v51 = vrot.slane %v958_v14, 7  ;;  %v2393_v7 = vld [vmem:[#allocation2 + $0x60] ss:$2 sm:$0xff]  ;;  %v2457_v8 = vld [vmem:[#allocation2 + $0x61] ss:$2 sm:$0xff] }
 0x12d   : > { %v1976_v18 = vsel %vm1928_vm1, %v1879_v52, %v1880_v13 }
 0x12e   : > { %v2008_v15 = vsel %vm1815_vm4, 0.0, %v1976_v18  ;;  %v1718_v58 = vsel %vm1671_vm2, %v1623_v10, %v1624_v51  ;;  %v6373_v18 = vmax.f32 %v2393_v7, %v2457_v8  ;;  %v6407_v7 = vadd.s32 160, %v6143_v26 }
 0x12f   : > { %v2136_v24 = vadd.f32 %v2072_v17, %v2008_v15 }
 0x131   : > { %v2204_v31 = vadd.f32 %v6175_v46, %v2136_v24 }
 0x132   : > { %v1296_v33 = vpop.f32.mrf.mxu2 }
 0x133   : > { %v2268_v34 = vmax.f32 %v2204_v31, 0.0  ;;  %v1881_v42 = vrot.slane %v1296_v33, 1  ;;  %v6355_v47 = vpop.f32.mrf.mxu0 }
 0x134   : > { %v1130_v49 = vpop.f32.mrf.mxu1  ;;  %v1625_v61 = vrot.slane %v6355_v47, 7 }
 0x135   : > { %2332 = vst [vmem:[#allocation2 + $0x78] sm:$0xff] %v2268_v34  ;;  %v1975_v48 = vsel %vm1928_vm1, %v1880_v13, %v1881_v42  ;;  %v2074_v13 = vadd.f32 %v1718_v58, %v1127_v22  ;;  %v5606_v58 = vld [vmem:[%s8092_s10 + $0x20] sm:$0xff] }
 0x136   : > { %v2137_v52 = vadd.f32 %v2073_v36, %v1975_v48  ;;  %5161 = vmatmul.msk.bf16.gmra.mxu0 %vm810_vm0, %v5584_v43  ;;  %v1717_v22 = vsel %vm1671_vm2, %v1624_v51, %v1625_v61  ;;  %v5585_v48 = vld [vmem:[%s6098_s19 + $0x90] sm:$0xff]  ;;  %v6397_v51 = vadd.s32 152, %v6143_v26 }
 0x137   : > { %5225 = vmatmul.msk.bf16.gmra.mxu2 %vm810_vm0, %v5584_v43  ;;  %5193 = vmatmul.msk.bf16.gmra.mxu1 %vm810_vm0, %v5584_v43  ;;  %v1754_v33 = vsel %vm6380_vm7, 0.0, %v1717_v22 }
 0x138   : > { %v2205_v55 = vadd.f32 %v6175_v46, %v2137_v52  ;;  %v2075_v52 = vadd.f32 %v1754_v33, %v1130_v49  ;;  %v1498_v49 = vand.u32 15, %v6397_v51 }
 0x13a   : > { %v2269_v59 = vmax.f32 %v2205_v55, 0.0  ;;  %v1299_v63 = vpop.f32.mrf.mxu2  ;;  %vm1819_vm8 = vcmp.eq.s32.totalorder %v1498_v49, 15  ;;  %v6441_v49 = vadd.s32 176, %v6143_v26 }
 0x13b   : > { %v1882_v2 = vrot.slane %v1299_v63, 1  ;;  %v963_v9 = vpop.f32.mrf.mxu0 }
 0x13c   : > { %2333 = vst [vmem:[#allocation2 + $0x80] sm:$0xff] %v2269_v59  ;;  %v2395_v11 = vld [vmem:[#allocation2 + $0x70] ss:$2 sm:$0xff]  ;;  %v2459_v12 = vld [vmem:[#allocation2 + $0x71] ss:$2 sm:$0xff]  ;;  %v1132_v17 = vpop.f32.mrf.mxu1  ;;  %v1626_v59 = vrot.slane %v963_v9, 7 }
 0x13d   : > { %v1974_v14 = vsel %vm1928_vm1, %v1881_v42, %v1882_v2  ;;  %v6375_v10 = vmax.f32 %v2395_v11, %v2459_v12  ;;  %v5607_v42 = vld [vmem:[%s8092_s10 + $0x28] sm:$0xff] }
 0x13e   : > { %v2010_v24 = vsel %vm1817_vm6, 0.0, %v1974_v14  ;;  %5664 = vmatpush.bf16.msra.mxu3 %v5607_v42  ;;  %2718 = vmatpush.bf16.msrb.mxu0 %v5607_v42  ;;  %v1716_v9 = vsel %vm1671_vm2, %v1625_v61, %v1626_v59  ;;  %v5604_v61 = vld [vmem:[%s8092_s10 + $0x10] sm:$0xff] }
 0x13f   : > { %v2138_v28 = vadd.f32 %v2074_v13, %v2010_v24  ;;  %v5723_v31 = vpack.i.bf16 %v6375_v10, %v6373_v18  ;;  %v1499_v13 = vand.u32 15, %v6407_v7  ;;  %v2076_v22 = vadd.f32 %v1716_v9, %v1132_v17 }
 0x141   : > { %v2206_v34 = vadd.f32 %v6175_v46, %v2138_v28  ;;  %5724 = vrot.lane.b32.xlu1 %v5723_v31, %s5927_s22  ;;  %vm1563_vm9 = vcmp.eq.s32.totalorder %v1499_v13, 0  ;;  %v1501_v13 = vand.u32 15, %v6441_v49 }
 0x142   : > { %v1301_v43 = vpop.f32.mrf.mxu2  ;;  %5665 = vmatpush.bf16.msra.mxu3 %v5606_v58  ;;  %2719 = vmatpush.bf16.msrb.mxu0 %v5606_v58 }
 0x143   : > { %v2270_v36 = vmax.f32 %v2206_v34, 0.0  ;;  %v1883_v47 = vrot.slane %v1301_v43, 1  ;;  %v6399_v53 = vpop.f32.mrf.mxu0  ;;  %v5603_v43 = vld [vmem:[%s8092_s10 + $0x8] sm:$0xff]  ;;  %vm1565_vm11 = vcmp.eq.s32.totalorder %v1501_v13, 0 }
 0x144   : > { %v1135_v56 = vpop.f32.mrf.mxu1  ;;  %v1627_v12 = vrot.slane %v6399_v53, 7  ;;  %v6434_v53 = vadd.s32 168, %v6143_v26 }
 0x145   : > { %2334 = vst [vmem:[#allocation2 + $0x88] sm:$0xff] %v2270_v36  ;;  %v1973_v55 = vsel %vm1928_vm1, %v1882_v2, %v1883_v47  ;;  %v5605_v2 = vld [vmem:[%s8092_s10 + $0x18] sm:$0xff] }
 0x146   : > { %v2139_v63 = vadd.f32 %v2075_v52, %v1973_v55  ;;  %5162 = vmatmul.msk.bf16.gmra.mxu0 %vm810_vm0, %v5585_v48  ;;  %5666 = vmatpush.bf16.msra.mxu3 %v5605_v2  ;;  %v1715_v31 = vsel %vm1671_vm2, %v1626_v59, %v1627_v12  ;;  %v5586_v52 = vld [vmem:[%s6098_s19 + $0x98] sm:$0xff] }
 0x147   : > { %5226 = vmatmul.msk.bf16.gmra.mxu2 %vm810_vm0, %v5585_v48  ;;  %5194 = vmatmul.msk.bf16.gmra.mxu1 %vm810_vm0, %v5585_v48  ;;  %v1756_v42 = vsel %vm1563_vm9, 0.0, %v1715_v31 }
 0x148   : > { %v2207_v8 = vadd.f32 %v6175_v46, %v2139_v63  ;;  %2720 = vmatpush.bf16.msrb.mxu0 %v5605_v2  ;;  %v2077_v55 = vadd.f32 %v1756_v42, %v1135_v56  ;;  %v1500_v56 = vand.u32 15, %v6434_v53 }
 0x14a   : > { %v2271_v11 = vmax.f32 %v2207_v8, 0.0  ;;  %v1304_v14 = vpop.f32.mrf.mxu2  ;;  %5667 = vmatpush.bf16.msra.mxu3 %v5604_v61  ;;  %v5602_v8 = vld [vmem:[%s8092_s10] sm:$0xff]  ;;  %vm1821_vm10 = vcmp.eq.s32.totalorder %v1500_v56, 15 }
 0x14b   : > { %v1884_v23 = vrot.slane %v1304_v14, 1  ;;  %v968_v15 = vpop.f32.mrf.mxu0 }
 0x14c   : > { %2335 = vst [vmem:[#allocation2 + $0x90] sm:$0xff] %v2271_v11  ;;  %v1137_v28 = vpop.f32.mrf.mxu1  ;;  %2721 = vmatpush.bf16.msrb.mxu0 %v5604_v61  ;;  %v1628_v2 = vrot.slane %v968_v15, 7  ;;  %v2461_v61 = vld [vmem:[#allocation2 + $0x81] ss:$2 sm:$0xff] }
 0x14d   : > { %v1972_v24 = vsel %vm1928_vm1, %v1883_v47, %v1884_v23 }
 0x14e   : > { %v2012_v33 = vsel %vm1819_vm8, 0.0, %v1972_v24  ;;  %5668 = vmatpush.bf16.msra.mxu3 %v5603_v43  ;;  %v1714_v14 = vsel %vm1671_vm2, %v1627_v12, %v1628_v2  ;;  %v2397_v24 = vld [vmem:[#allocation2 + $0x80] ss:$2 sm:$0xff] }
 0x14f   : > { %v2140_v34 = vadd.f32 %v2076_v22, %v2012_v33 }
 0x150   : > { %2722 = vmatpush.bf16.msrb.mxu0 %v5603_v43 }
 0x151   : > { %v2208_v17 = vadd.f32 %v6175_v46, %v2140_v34 }
 0x152   : > { %v1306_v36 = vpop.f32.mrf.mxu2  ;;  %5669 = vmatpush.bf16.msra.mxu3 %v5602_v8 }
 0x153   : > { %v2272_v47 = vmax.f32 %v2208_v17, 0.0  ;;  %v1885_v48 = vrot.slane %v1306_v36, 1  ;;  %v6436_v58 = vpop.f32.mrf.mxu0  ;;  %v2078_v17 = vadd.f32 %v1714_v14, %v1137_v28  ;;  %v6469_v14 = vadd.s32 184, %v6143_v26 }
 0x154   : > { %v1140_v63 = vpop.f32.mrf.mxu1  ;;  %2723 = vmatpush.bf16.msrb.mxu0 %v5602_v8  ;;  %v1629_v15 = vrot.slane %v6436_v58, 7 }
 0x155   : > { %2336 = vst [vmem:[#allocation2 + $0x98] sm:$0xff] %v2272_v47  ;;  %v1971_v59 = vsel %vm1928_vm1, %v1884_v23, %v1885_v48  ;;  %v6457_v47 = vmax.f32 %v2397_v24, %v2461_v61 }
 0x156   : > { %v2141_v9 = vadd.f32 %v2077_v55, %v1971_v59  ;;  %5163 = vmatmul.msk.bf16.gmra.mxu0 %vm810_vm0, %v5586_v52 }
 0x157   : > { %5227 = vmatmul.msk.bf16.gmra.mxu2 %vm810_vm0, %v5586_v52  ;;  %5195 = vmatmul.msk.bf16.gmra.mxu1 %vm810_vm0, %v5586_v52  ;;  %v1713_v52 = vsel %vm1671_vm2, %v1628_v2, %v1629_v15 }
 0x158   : > { %v2209_v11 = vadd.f32 %v6175_v46, %v2141_v9  ;;  %v1758_v8 = vsel %vm1565_vm11, 0.0, %v1713_v52 }
 0x159   : > { %v2079_v13 = vadd.f32 %v1758_v8, %v1140_v63 }
 0x15a   : > { %v2273_v23 = vmax.f32 %v2209_v11, 0.0  ;;  %v1309_v22 = vpop.f32.mrf.mxu2  ;;  %v5587_v11 = vld [vmem:[%s6098_s19 + $0xa0] sm:$0xff] }
 0x15b   : > { %v1886_v31 = vrot.slane %v1309_v22, 1  ;;  %v973_v33 = vpop.f32.mrf.mxu0 }
 0x15c   : > { %2337 = vst [vmem:[#allocation2 + $0xa0] sm:$0xff] %v2273_v23  ;;  %v2399_v34 = vld [vmem:[#allocation2 + $0x90] ss:$2 sm:$0xff]  ;;  %v2463_v42 = vld [vmem:[#allocation2 + $0x91] ss:$2 sm:$0xff]  ;;  %v1142_v36 = vpop.f32.mrf.mxu1  ;;  %v1630_v24 = vrot.slane %v973_v33, 7 }
 0x15d   : > { %v1970_v43 = vsel %vm1928_vm1, %v1885_v48, %v1886_v31  ;;  %v6459_v12 = vmax.f32 %v2399_v34, %v2463_v42  ;;  %v6474_v34 = vadd.s32 192, %v6143_v26  ;;  %v1502_v42 = vand.u32 15, %v6469_v14 }
 0x15e   : > { %v2014_v55 = vsel %vm1821_vm10, 0.0, %v1970_v43  ;;  %v1712_v63 = vsel %vm1671_vm2, %v1629_v15, %v1630_v24 }
 0x15f   : > { %v2142_v58 = vadd.f32 %v2078_v17, %v2014_v55  ;;  %v5728_v59 = vpack.i.bf16 %v6459_v12, %v6457_v47  ;;  %v1503_v33 = vand.u32 15, %v6474_v34  ;;  %vm1823_vm12 = vcmp.eq.s32.totalorder %v1502_v42, 15 }
 0x161   : > { %v2210_v28 = vadd.f32 %v6175_v46, %v2142_v58  ;;  %5729 = vrot.lane.b32.xlu1 %v5728_v59, %s5927_s22  ;;  %v2080_v59 = vadd.f32 %v1712_v63, %v1142_v36  ;;  %vm1567_vm13 = vcmp.eq.s32.totalorder %v1503_v33, 0  ;;  %v6491_v36 = vadd.s32 200, %v6143_v26 }
 0x162   : > { %v1311_v48 = vpop.f32.mrf.mxu2 }
 0x163   : > { %v2274_v9 = vmax.f32 %v2210_v28, 0.0  ;;  %v1887_v56 = vrot.slane %v1311_v48, 1  ;;  %v976_v23 = vpop.f32.mrf.mxu0 }
 0x164   : > { %v1145_v22 = vpop.f32.mrf.mxu1  ;;  %v1631_v43 = vrot.slane %v976_v23, 7 }
 0x165   : > { %2338 = vst [vmem:[#allocation2 + $0xa8] sm:$0xff] %v2274_v9  ;;  %v1969_v2 = vsel %vm1928_vm1, %v1886_v31, %v1887_v56 }
 0x166   : > { %v2143_v61 = vadd.f32 %v2079_v13, %v1969_v2  ;;  %5164 = vmatmul.msk.bf16.gmra.mxu0 %vm810_vm0, %v5587_v11  ;;  %v1711_v48 = vsel %vm1671_vm2, %v1630_v24, %v1631_v43 }
 0x167   : > { %5228 = vmatmul.msk.bf16.gmra.mxu2 %vm810_vm0, %v5587_v11  ;;  %5196 = vmatmul.msk.bf16.gmra.mxu1 %vm810_vm0, %v5587_v11  ;;  %v1760_v11 = vsel %vm1567_vm13, 0.0, %v1711_v48 }
 0x168   : > { %v2211_v17 = vadd.f32 %v6175_v46, %v2143_v61  ;;  %v2081_v63 = vadd.f32 %v1760_v11, %v1145_v22  ;;  %v1504_v22 = vand.u32 15, %v6491_v36 }
 0x16a   : > { %v2275_v31 = vmax.f32 %v2211_v17, 0.0  ;;  %v1314_v52 = vpop.f32.mrf.mxu2  ;;  %v5588_v17 = vld [vmem:[%s6098_s19 + $0xa8] sm:$0xff]  ;;  %vm1825_vm14 = vcmp.eq.s32.totalorder %v1504_v22, 15 }
 0x16b   : > { %v1888_v55 = vrot.slane %v1314_v52, 1  ;;  %v978_v58 = vpop.f32.mrf.mxu0 }
 0x16c   : > { %2339 = vst [vmem:[#allocation2 + $0xb0] sm:$0xff] %v2275_v31  ;;  %v1147_v28 = vpop.f32.mrf.mxu1 }
 0x16d   : > { %v1968_v8 = vsel %vm1928_vm1, %v1887_v56, %v1888_v55 }
 0x16e   : > { %v2016_v15 = vsel %vm1823_vm12, 0.0, %v1968_v8  ;;  %v1632_v8 = vrot.slane %v978_v58, 7 }
 0x16f   : > { %v2144_v9 = vadd.f32 %v2080_v59, %v2016_v15  ;;  %v6498_v59 = vadd.s32 208, %v6143_v26 }
 0x170   : > { %v1710_v58 = vsel %vm1671_vm2, %v1631_v43, %v1632_v8 }
 0x171   : > { %v2212_v13 = vadd.f32 %v6175_v46, %v2144_v9 }
 0x172   : > { %v1316_v23 = vpop.f32.mrf.mxu2 }
 0x173   : > { %v2276_v2 = vmax.f32 %v2212_v13, 0.0  ;;  %v1889_v61 = vrot.slane %v1316_v23, 1  ;;  %v5715_v42 = vpop.permute.xlu0 %5714  ;;  %v6493_v33 = vpop.f32.mrf.mxu0  ;;  %v1505_v13 = vand.u32 15, %v6498_v59 }
 0x174   : > { %v5717_v56 = vunpack.i.h.bf16 %v5715_v42  ;;  %v5716_v31 = vunpack.i.l.bf16 %v5715_v42  ;;  %v1150_v52 = vpop.f32.mrf.mxu1  ;;  %v2465_v42 = vld [vmem:[#allocation2 + $0xa1] ss:$2 sm:$0xff] }
 0x175   : > { %2340 = vst [vmem:[#allocation2 + $0xb8] sm:$0xff] %v2276_v2  ;;  %v1967_v24 = vsel %vm1928_vm1, %v1888_v55, %v1889_v61  ;;  %v2401_v2 = vld [vmem:[#allocation2 + $0xa0] ss:$2 sm:$0xff]  ;;  %vm1569_vm15 = vcmp.eq.s32.totalorder %v1505_v13, 0 }
 0x176   : > { %v2145_v48 = vadd.f32 %v2081_v63, %v1967_v24  ;;  %v2606_v15 = vmax.f32 %v6265_v3, %v5716_v31  ;;  %v2607_v9 = vmax.f32 %v6267_v4, %v5717_v56  ;;  %5165 = vmatmul.msk.bf16.gmra.mxu0 %vm810_vm0, %v5588_v17  ;;  %v1633_v3 = vrot.slane %v6493_v33, 7 }
 0x177   : > { %5229 = vmatmul.msk.bf16.gmra.mxu2 %vm810_vm0, %v5588_v17  ;;  %5197 = vmatmul.msk.bf16.gmra.mxu1 %vm810_vm0, %v5588_v17  ;;  %v2082_v17 = vadd.f32 %v1710_v58, %v1147_v28  ;;  %v6513_v43 = vmax.f32 %v2401_v2, %v2465_v42  ;;  %v5589_v2 = vld [vmem:[%s6098_s19 + $0xb0] sm:$0xff]  ;;  %v6525_v42 = vadd.s32 216, %v6143_v26 }
 0x178   : > { %v2213_v11 = vadd.f32 %v6175_v46, %v2145_v48  ;;  %v2637_v55 = vpack.c.bf16 %v2607_v9, %v2606_v15  ;;  %v1709_v33 = vsel %vm1671_vm2, %v1632_v8, %v1633_v3 }
 0x179   : > { %8126 = vst [vmem:[#allocation10_spill] sm:$0xff] %v6525_v42 }
 0x17a   : > { %v2277_v23 = vmax.f32 %v2213_v11, 0.0  ;;  %v1319_v4 = vpop.f32.mrf.mxu2  ;;  %2729 = vmatmul.bf16.vlgmr.msra.gmra.mxu3 %v2637_v55 }
 0x17b   : > { %v1890_v63 = vrot.slane %v1319_v4, 1  ;;  %v983_v56 = vpop.f32.mrf.mxu0 }
 0x17c   : > { %2341 = vst [vmem:[#allocation2 + $0xc0] sm:$0xff] %v2277_v23  ;;  %v2403_v31 = vld [vmem:[#allocation2 + $0xb0] ss:$2 sm:$0xff]  ;;  %v2467_v24 = vld [vmem:[#allocation2 + $0xb1] ss:$2 sm:$0xff]  ;;  %v1152_v15 = vpop.f32.mrf.mxu1  ;;  %v1762_v23 = vsel %vm1569_vm15, 0.0, %v1709_v33 }
 0x17d   : > { %v1966_v48 = vsel %vm1928_vm1, %v1889_v61, %v1890_v63  ;;  %v6515_v9 = vmax.f32 %v2403_v31, %v2467_v24  ;;  %v2083_v13 = vadd.f32 %v1762_v23, %v1150_v52  ;;  %v1506_v33 = vand.u32 15, %v6525_v42  ;;  %v6538_v52 = vld [vmem:[%s8123_s3] ss:$0 sm:$0xff] }
 0x17e   : > { %v2018_v22 = vsel %vm1825_vm14, 0.0, %v1966_v48 }
 0x17f   : > { %v2146_v11 = vadd.f32 %v2082_v17, %v2018_v22  ;;  %v5733_v55 = vpack.i.bf16 %v6515_v9, %v6513_v43  ;;  %v1634_v17 = vrot.slane %v983_v56, 7  ;;  %vm1827_vm3 = vcmp.eq.s32.totalorder %v1506_v33, 15 }
 0x181   : > { %v2214_v28 = vadd.f32 %v6175_v46, %v2146_v11  ;;  %5734 = vrot.lane.b32.xlu2 %v5733_v55, %s5927_s22  ;;  %v6530_v46 = vadd.s32 224, %v6143_v26 }
 0x182   : > { %v1321_v61 = vpop.f32.mrf.mxu2 }
 0x183   : > { %v2278_v58 = vmax.f32 %v2214_v28, 0.0  ;;  %v1891_v4 = vrot.slane %v1321_v61, 1  ;;  %v986_v31 = vpop.f32.mrf.mxu0  ;;  %8127 = vst [vmem:[#allocation11_spill] sm:$0xff] %v6530_v46  ;;  %v1507_v55 = vand.u32 15, %v6530_v46 }
 0x184   : > { %v1155_v24 = vpop.f32.mrf.mxu1  ;;  %v1635_v11 = vrot.slane %v986_v31, 7 }
 0x185   : > { %2342 = vst [vmem:[#allocation2 + $0xc8] sm:$0xff] %v2278_v58  ;;  %v1965_v8 = vsel %vm1928_vm1, %v1890_v63, %v1891_v4  ;;  %v1708_v63 = vsel %vm1671_vm2, %v1633_v3, %v1634_v17  ;;  %vm1571_vm4 = vcmp.eq.s32.totalorder %v1507_v55, 0 }
 0x186   : > { %v2147_v48 = vadd.f32 %v2083_v13, %v1965_v8  ;;  %5166 = vmatmul.msk.bf16.gmra.mxu0 %vm810_vm0, %v5589_v2  ;;  %v2084_v58 = vadd.f32 %v1708_v63, %v1152_v15  ;;  %v6552_v15 = vadd.s32 232, %v6143_v26 }
 0x187   : > { %5230 = vmatmul.msk.bf16.gmra.mxu2 %vm810_vm0, %v5589_v2  ;;  %5198 = vmatmul.msk.bf16.gmra.mxu1 %vm810_vm0, %v5589_v2  ;;  %v1707_v2 = vsel %vm1671_vm2, %v1634_v17, %v1635_v11 }
 0x188   : > { %v2215_v22 = vadd.f32 %v6538_v52, %v2147_v48  ;;  %v1764_v31 = vsel %vm1571_vm4, 0.0, %v1707_v2  ;;  %8128 = vst [vmem:[#allocation12_spill] sm:$0xff] %v6552_v15 }
 0x189   : > { %v2085_v63 = vadd.f32 %v1764_v31, %v1155_v24 }
 0x18a   : > { %v2279_v56 = vmax.f32 %v2215_v22, 0.0  ;;  %v1324_v23 = vpop.f32.mrf.mxu2 }
 0x18b   : > { %v1892_v28 = vrot.slane %v1324_v23, 1  ;;  %v988_v61 = vpop.f32.mrf.mxu0 }
 0x18c   : > { %2343 = vst [vmem:[#allocation2 + $0xd0] sm:$0xff] %v2279_v56  ;;  %v1157_v8 = vpop.f32.mrf.mxu1  ;;  %v5590_v56 = vld [vmem:[%s6098_s19 + $0xb8] sm:$0xff]  ;;  %v1636_v2 = vrot.slane %v988_v61, 7 }
 0x18d   : > { %v1964_v13 = vsel %vm1928_vm1, %v1891_v4, %v1892_v28 }
 0x18e   : > { %v2020_v3 = vsel %vm1827_vm3, 0.0, %v1964_v13  ;;  %v6557_v13 = vadd.s32 240, %v6143_v26  ;;  %v1706_v61 = vsel %vm1671_vm2, %v1635_v11, %v1636_v2 }
 0x18f   : > { %v2148_v48 = vadd.f32 %v2084_v58, %v2020_v3 }
 0x190   : > { %8129 = vst [vmem:[#allocation13_spill] sm:$0xff] %v6557_v13  ;;  %v1509_v31 = vand.u32 15, %v6557_v13 }
 0x191   : > { %v2216_v22 = vadd.f32 %v6538_v52, %v2148_v48 }
 0x192   : > { %v1326_v25 = vpop.f32.mrf.mxu2  ;;  %vm1573_vm6 = vcmp.eq.s32.totalorder %v1509_v31, 0 }
 0x193   : > { %v2280_v33 = vmax.f32 %v2216_v22, 0.0  ;;  %v1893_v23 = vrot.slane %v1326_v25, 1  ;;  %v5720_v37 = vpop.permute.xlu0 %5719  ;;  %v991_v55 = vpop.f32.mrf.mxu0 }
 0x194   : > { %v5722_v4 = vunpack.i.h.bf16 %v5720_v37  ;;  %v5721_v46 = vunpack.i.l.bf16 %v5720_v37  ;;  %v1160_v58 = vpop.f32.mrf.mxu1  ;;  %v1508_v37 = vand.u32 15, %v6552_v15  ;;  %v2086_v15 = vadd.f32 %v1706_v61, %v1157_v8 }
 0x195   : > { %2344 = vst [vmem:[#allocation2 + $0xd8] sm:$0xff] %v2280_v33  ;;  %v1963_v17 = vsel %vm1928_vm1, %v1892_v28, %v1893_v23  ;;  %v2469_v33 = vld [vmem:[#allocation2 + $0xc1] ss:$2 sm:$0xff] }
 0x196   : > { %v2149_v3 = vadd.f32 %v2085_v63, %v1963_v17  ;;  %v2608_v25 = vmax.f32 %v6319_v41, %v5721_v46  ;;  %v2609_v48 = vmax.f32 %v6321_v40, %v5722_v4  ;;  %5167 = vmatmul.msk.bf16.gmra.mxu0 %vm810_vm0, %v5590_v56  ;;  %v1637_v41 = vrot.slane %v991_v55, 7  ;;  %v2405_v40 = vld [vmem:[#allocation2 + $0xc0] ss:$2 sm:$0xff] }
 0x197   : > { %5231 = vmatmul.msk.bf16.gmra.mxu2 %vm810_vm0, %v5590_v56  ;;  %5199 = vmatmul.msk.bf16.gmra.mxu1 %vm810_vm0, %v5590_v56  ;;  %vm1829_vm5 = vcmp.eq.s32.totalorder %v1508_v37, 15 }
 0x198   : > { %v2217_v24 = vadd.f32 %v6538_v52, %v2149_v3  ;;  %v2638_v28 = vpack.c.bf16 %v2609_v48, %v2608_v25  ;;  %v6571_v48 = vmax.f32 %v2405_v40, %v2469_v33  ;;  %v1705_v55 = vsel %vm1671_vm2, %v1636_v2, %v1637_v41  ;;  %v5591_v40 = vld [vmem:[%s6098_s19 + $0xc0] sm:$0xff] }
 0x199   : > { %v6583_v33 = vadd.s32 248, %v6143_v26 }
 0x19a   : > { %v2281_v22 = vmax.f32 %v2217_v24, 0.0  ;;  %v1329_v46 = vpop.f32.mrf.mxu2  ;;  %2734 = vmatmul.bf16.gmra.mxu3 %v2638_v28 }
 0x19b   : > { %v1894_v63 = vrot.slane %v1329_v46, 1  ;;  %v993_v4 = vpop.f32.mrf.mxu0  ;;  %8130 = vst [vmem:[#allocation14_spill] sm:$0xff] %v6583_v33 }
 0x19c   : > { %2345 = vst [vmem:[#allocation2 + $0xe0] sm:$0xff] %v2281_v22  ;;  %v2407_v17 = vld [vmem:[#allocation2 + $0xd0] ss:$2 sm:$0xff]  ;;  %v2471_v3 = vld [vmem:[#allocation2 + $0xd1] ss:$2 sm:$0xff]  ;;  %v1162_v25 = vpop.f32.mrf.mxu1  ;;  %v1766_v22 = vsel %vm1573_vm6, 0.0, %v1705_v55 }
 0x19d   : > { %v1962_v56 = vsel %vm1928_vm1, %v1893_v23, %v1894_v63  ;;  %v6573_v11 = vmax.f32 %v2407_v17, %v2471_v3  ;;  %v2087_v31 = vadd.f32 %v1766_v22, %v1160_v58  ;;  %v1638_v3 = vrot.slane %v993_v4, 7 }
 0x19e   : > { %v2022_v37 = vsel %vm1829_vm5, 0.0, %v1962_v56  ;;  %v1447_v55 = vadd.s32 256, %v6143_v26 }
 0x19f   : > { %v2150_v24 = vadd.f32 %v2086_v15, %v2022_v37  ;;  %v5738_v28 = vpack.i.bf16 %v6573_v11, %v6571_v48  ;;  %v1510_v37 = vand.u32 15, %v6583_v33  ;;  %v1704_v58 = vsel %vm1671_vm2, %v1637_v41, %v1638_v3 }
 0x1a0   : > { %v1511_v22 = vand.u32 15, %v1447_v55 }
 0x1a1   : > { %v2218_v8 = vadd.f32 %v6538_v52, %v2150_v24  ;;  %5739 = vrot.lane.b32.xlu2 %v5738_v28, %s5927_s22  ;;  %vm1831_vm7 = vcmp.eq.s32.totalorder %v1510_v37, 15 }
 0x1a2   : > { %v1331_v23 = vpop.f32.mrf.mxu2  ;;  %vm1575_vm8 = vcmp.eq.s32.totalorder %v1511_v22, 0 }
 0x1a3   : > { %v2282_v61 = vmax.f32 %v2218_v8, 0.0  ;;  %v1895_v46 = vrot.slane %v1331_v23, 1  ;;  %v996_v17 = vpop.f32.mrf.mxu0 }
 0x1a4   : > { %v1165_v2 = vpop.f32.mrf.mxu1 }
 0x1a5   : > { %2346 = vst [vmem:[#allocation2 + $0xe8] sm:$0xff] %v2282_v61  ;;  %v1961_v15 = vsel %vm1928_vm1, %v1894_v63, %v1895_v46  ;;  %v1639_v63 = vrot.slane %v996_v17, 7  ;;  %v2088_v61 = vadd.f32 %v1704_v58, %v1162_v25  ;;  %v1448_v25 = vadd.s32 264, %v6143_v26 }
 0x1a6   : > { %v2151_v56 = vadd.f32 %v2087_v31, %v1961_v15  ;;  %5168 = vmatmul.msk.bf16.gmra.mxu0 %vm810_vm0, %v5591_v40 }
 0x1a7   : > { %5232 = vmatmul.msk.bf16.gmra.mxu2 %vm810_vm0, %v5591_v40  ;;  %5200 = vmatmul.msk.bf16.gmra.mxu1 %vm810_vm0, %v5591_v40  ;;  %v1703_v40 = vsel %vm1671_vm2, %v1638_v3, %v1639_v63 }
 0x1a8   : > { %v2219_v24 = vadd.f32 %v6538_v52, %v2151_v56 }
 0x1aa   : > { %v2283_v28 = vmax.f32 %v2219_v24, 0.0  ;;  %v1334_v4 = vpop.f32.mrf.mxu2  ;;  %v1768_v24 = vsel %vm1575_vm8, 0.0, %v1703_v40 }
 0x1ab   : > { %v1896_v8 = vrot.slane %v1334_v4, 1  ;;  %v998_v23 = vpop.f32.mrf.mxu0  ;;  %v2089_v58 = vadd.f32 %v1768_v24, %v1165_v2  ;;  %v1512_v2 = vand.u32 15, %v1448_v25 }
 0x1ac   : > { %2347 = vst [vmem:[#allocation2 + $0xf0] sm:$0xff] %v2283_v28  ;;  %v1167_v15 = vpop.f32.mrf.mxu1  ;;  %v5592_v28 = vld [vmem:[%s6098_s19 + $0xc8] sm:$0xff] }
 0x1ad   : > { %v1960_v31 = vsel %vm1928_vm1, %v1895_v46, %v1896_v8  ;;  %vm1833_vm9 = vcmp.eq.s32.totalorder %v1512_v2, 15 }
 0x1ae   : > { %v2024_v56 = vsel %vm1831_vm7, 0.0, %v1960_v31  ;;  %v1640_v31 = vrot.slane %v998_v23, 7 }
 0x1af   : > { %v2152_v41 = vadd.f32 %v2088_v61, %v2024_v56  ;;  %v1449_v61 = vadd.s32 272, %v6143_v26 }
 0x1b1   : > { %v2220_v17 = vadd.f32 %v6538_v52, %v2152_v41 }
 0x1b2   : > { %v1336_v55 = vpop.f32.mrf.mxu2 }
 0x1b3   : > { %v2284_v37 = vmax.f32 %v2220_v17, 0.0  ;;  %v1897_v4 = vrot.slane %v1336_v55, 1  ;;  %v5725_v33 = vpop.permute.xlu1 %5724  ;;  %v1001_v42 = vpop.f32.mrf.mxu0  ;;  %v1702_v17 = vsel %vm1671_vm2, %v1639_v63, %v1640_v31 }
 0x1b4   : > { %v5727_v13 = vunpack.i.h.bf16 %v5725_v33  ;;  %v5726_v46 = vunpack.i.l.bf16 %v5725_v33  ;;  %v1170_v22 = vpop.f32.mrf.mxu1  ;;  %v1641_v55 = vrot.slane %v1001_v42, 7 }
 0x1b5   : > { %2348 = vst [vmem:[#allocation2 + $0xf8] sm:$0xff] %v2284_v37  ;;  %v1959_v3 = vsel %vm1928_vm1, %v1896_v8, %v1897_v4  ;;  %v1513_v8 = vand.u32 15, %v1449_v61 }
 0x1b6   : > { %v2153_v40 = vadd.f32 %v2089_v58, %v1959_v3  ;;  %v2610_v56 = vmax.f32 %v6373_v18, %v5726_v46  ;;  %v2611_v41 = vmax.f32 %v6375_v10, %v5727_v13  ;;  %5169 = vmatmul.msk.bf16.gmra.mxu0 %vm810_vm0, %v5592_v28  ;;  %v2409_v18 = vld [vmem:[#allocation2 + $0xe0] ss:$2 sm:$0xff]  ;;  %v2473_v10 = vld [vmem:[#allocation2 + $0xe1] ss:$2 sm:$0xff]  ;;  %v2090_v3 = vadd.f32 %v1702_v17, %v1167_v15 }
 0x1b7   : > { %5233 = vmatmul.msk.bf16.gmra.mxu2 %vm810_vm0, %v5592_v28  ;;  %5201 = vmatmul.msk.bf16.gmra.mxu1 %vm810_vm0, %v5592_v28  ;;  %vm1577_vm10 = vcmp.eq.s32.totalorder %v1513_v8, 0  ;;  %v1701_v42 = vsel %vm1671_vm2, %v1640_v31, %v1641_v55 }
 0x1b8   : > { %v2221_v33 = vadd.f32 %v6538_v52, %v2153_v40  ;;  %v2639_v24 = vpack.c.bf16 %v2611_v41, %v2610_v56  ;;  %v6615_v40 = vmax.f32 %v2409_v18, %v2473_v10 }
 0x1ba   : > { %v2285_v23 = vmax.f32 %v2221_v33, 0.0  ;;  %v1339_v37 = vpop.f32.mrf.mxu2  ;;  %2739 = vmatmul.bf16.gmra.mxu3 %v2639_v24  ;;  %v1770_v33 = vsel %vm1577_vm10, 0.0, %v1701_v42 }
 0x1bb   : > { %v1898_v13 = vrot.slane %v1339_v37, 1  ;;  %v1003_v58 = vpop.f32.mrf.mxu0  ;;  %v1450_v37 = vadd.s32 280, %v6143_v26  ;;  %v2091_v8 = vadd.f32 %v1770_v33, %v1170_v22 }
 0x1bc   : > { %2349 = vst [vmem:[#allocation2 + $0x100] sm:$0xff] %v2285_v23  ;;  %v2411_v25 = vld [vmem:[#allocation2 + $0xf0] ss:$2 sm:$0xff]  ;;  %v2475_v46 = vld [vmem:[#allocation2 + $0xf1] ss:$2 sm:$0xff]  ;;  %v1172_v61 = vpop.f32.mrf.mxu1 }
 0x1bd   : > { %v1958_v28 = vsel %vm1928_vm1, %v1897_v4, %v1898_v13  ;;  %v6617_v63 = vmax.f32 %v2411_v25, %v2475_v46  ;;  %v5593_v23 = vld [vmem:[%s6098_s19 + $0xd0] sm:$0xff]  ;;  %v1642_v25 = vrot.slane %v1003_v58, 7 }
 0x1be   : > { %v2026_v56 = vsel %vm1833_vm9, 0.0, %v1958_v28  ;;  %v1514_v28 = vand.u32 15, %v1450_v37 }
 0x1bf   : > { %v2154_v41 = vadd.f32 %v2090_v3, %v2026_v56  ;;  %v5743_v2 = vpack.i.bf16 %v6617_v63, %v6615_v40  ;;  %v1451_v3 = vadd.s32 288, %v6143_v26  ;;  %v1700_v22 = vsel %vm1671_vm2, %v1641_v55, %v1642_v25 }
 0x1c0   : > { %vm1835_vm11 = vcmp.eq.s32.totalorder %v1514_v28, 15 }
 0x1c1   : > { %v2222_v15 = vadd.f32 %v6538_v52, %v2154_v41  ;;  %5744 = vrot.lane.b32.xlu0 %v5743_v2, %s5927_s22 }
 0x1c2   : > { %v1341_v4 = vpop.f32.mrf.mxu2 }
 0x1c3   : > { %v2286_v24 = vmax.f32 %v2222_v15, 0.0  ;;  %v1899_v17 = vrot.slane %v1341_v4, 1  ;;  %v1006_v18 = vpop.f32.mrf.mxu0  ;;  %v2092_v15 = vadd.f32 %v1700_v22, %v1172_v61  ;;  %v1452_v61 = vadd.s32 296, %v6143_v26 }
 0x1c4   : > { %v1175_v10 = vpop.f32.mrf.mxu1  ;;  %v1643_v41 = vrot.slane %v1006_v18, 7 }
 0x1c5   : > { %2350 = vst [vmem:[#allocation2 + $0x108] sm:$0xff] %v2286_v24  ;;  %v1957_v31 = vsel %vm1928_vm1, %v1898_v13, %v1899_v17  ;;  %v1515_v13 = vand.u32 15, %v1451_v3 }
 0x1c6   : > { %v2155_v46 = vadd.f32 %v2091_v8, %v1957_v31  ;;  %5170 = vmatmul.msk.bf16.gmra.mxu0 %vm810_vm0, %v5593_v23 }
 0x1c7   : > { %5234 = vmatmul.msk.bf16.gmra.mxu2 %vm810_vm0, %v5593_v23  ;;  %5202 = vmatmul.msk.bf16.gmra.mxu1 %vm810_vm0, %v5593_v23  ;;  %vm1579_vm12 = vcmp.eq.s32.totalorder %v1515_v13, 0  ;;  %v1699_v23 = vsel %vm1671_vm2, %v1642_v25, %v1643_v41 }
 0x1c8   : > { %v2223_v42 = vadd.f32 %v6538_v52, %v2155_v46  ;;  %v1772_v8 = vsel %vm1579_vm12, 0.0, %v1699_v23 }
 0x1c9   : > { %v2093_v22 = vadd.f32 %v1772_v8, %v1175_v10  ;;  %v1516_v10 = vand.u32 15, %v1452_v61 }
 0x1ca   : > { %v2287_v56 = vmax.f32 %v2223_v42, 0.0  ;;  %v1344_v2 = vpop.f32.mrf.mxu2  ;;  %v5594_v42 = vld [vmem:[%s6098_s19 + $0xd8] sm:$0xff] }
 0x1cb   : > { %v1900_v58 = vrot.slane %v1344_v2, 1  ;;  %v1008_v33 = vpop.f32.mrf.mxu0  ;;  %vm1837_vm13 = vcmp.eq.s32.totalorder %v1516_v10, 15 }
 0x1cc   : > { %2351 = vst [vmem:[#allocation2 + $0x110] sm:$0xff] %v2287_v56  ;;  %v1177_v24 = vpop.f32.mrf.mxu1 }
 0x1cd   : > { %v1956_v4 = vsel %vm1928_vm1, %v1899_v17, %v1900_v58 }
 0x1ce   : > { %v2028_v37 = vsel %vm1835_vm11, 0.0, %v1956_v4  ;;  %v1644_v4 = vrot.slane %v1008_v33, 7 }
 0x1cf   : > { %v2156_v55 = vadd.f32 %v2092_v15, %v2028_v37  ;;  %v1453_v15 = vadd.s32 304, %v6143_v26 }
 0x1d1   : > { %v2224_v18 = vadd.f32 %v6538_v52, %v2156_v55 }
 0x1d2   : > { %v1346_v31 = vpop.f32.mrf.mxu2 }
 0x1d3   : > { %v2288_v46 = vmax.f32 %v2224_v18, 0.0  ;;  %v1901_v3 = vrot.slane %v1346_v31, 1  ;;  %v5730_v28 = vpop.permute.xlu1 %5729  ;;  %v6643_v2 = vpop.f32.mrf.mxu0  ;;  %v1698_v31 = vsel %vm1671_vm2, %v1643_v41, %v1644_v4 }
 0x1d4   : > { %v5732_v56 = vunpack.i.h.bf16 %v5730_v28  ;;  %v5731_v17 = vunpack.i.l.bf16 %v5730_v28  ;;  %v1180_v13 = vpop.f32.mrf.mxu1  ;;  %v2477_v28 = vld [vmem:[#allocation2 + $0x101] ss:$2 sm:$0xff] }
 0x1d5   : > { %2352 = vst [vmem:[#allocation2 + $0x118] sm:$0xff] %v2288_v46  ;;  %v1955_v25 = vsel %vm1928_vm1, %v1900_v58, %v1901_v3  ;;  %v1517_v58 = vand.u32 15, %v1453_v15  ;;  %v1645_v46 = vrot.slane %v6643_v2, 7 }
 0x1d6   : > { %v2157_v23 = vadd.f32 %v2093_v22, %v1955_v25  ;;  %v2612_v37 = vmax.f32 %v6457_v47, %v5731_v17  ;;  %v2613_v55 = vmax.f32 %v6459_v12, %v5732_v56  ;;  %5171 = vmatmul.msk.bf16.gmra.mxu0 %vm810_vm0, %v5594_v42  ;;  %v2413_v12 = vld [vmem:[#allocation2 + $0x100] ss:$2 sm:$0xff]  ;;  %v2094_v25 = vadd.f32 %v1698_v31, %v1177_v24 }
 0x1d7   : > { %5235 = vmatmul.msk.bf16.gmra.mxu2 %vm810_vm0, %v5594_v42  ;;  %5203 = vmatmul.msk.bf16.gmra.mxu1 %vm810_vm0, %v5594_v42  ;;  %v6659_v41 = vmax.f32 %v2413_v12, %v2477_v28  ;;  %vm1581_vm14 = vcmp.eq.s32.totalorder %v1517_v58, 0  ;;  %v5595_v28 = vld [vmem:[%s6098_s19 + $0xe0] sm:$0xff]  ;;  %v1454_v58 = vadd.s32 312, %v6143_v26 }
 0x1d8   : > { %v2225_v8 = vadd.f32 %v6538_v52, %v2157_v23  ;;  %v2640_v18 = vpack.c.bf16 %v2613_v55, %v2612_v37  ;;  %v1697_v37 = vsel %vm1671_vm2, %v1644_v4, %v1645_v46 }
 0x1d9   : > { %v1774_v31 = vsel %vm1581_vm14, 0.0, %v1697_v37 }
 0x1da   : > { %v2289_v33 = vmax.f32 %v2225_v8, 0.0  ;;  %v1349_v47 = vpop.f32.mrf.mxu2  ;;  %2744 = vmatmul.bf16.gmra.mxu3 %v2640_v18 }
 0x1db   : > { %v1902_v22 = vrot.slane %v1349_v47, 1  ;;  %v1013_v61 = vpop.f32.mrf.mxu0  ;;  %v5735_v15 = vpop.permute.xlu2 %5734 }
 0x1dc   : > { %2353 = vst [vmem:[#allocation2 + $0x120] sm:$0xff] %v2289_v33  ;;  %v2415_v56 = vld [vmem:[#allocation2 + $0x110] ss:$2 sm:$0xff]  ;;  %v2479_v17 = vld [vmem:[#allocation2 + $0x111] ss:$2 sm:$0xff]  ;;  %v1182_v23 = vpop.f32.mrf.mxu1  ;;  %v5737_v24 = vunpack.i.h.bf16 %v5735_v15  ;;  %v5736_v18 = vunpack.i.l.bf16 %v5735_v15  ;;  %v1646_v37 = vrot.slane %v1013_v61, 7 }
 0x1dd   : > { %v1954_v42 = vsel %vm1928_vm1, %v1901_v3, %v1902_v22  ;;  %v6661_v2 = vmax.f32 %v2415_v56, %v2479_v17  ;;  %v2095_v56 = vadd.f32 %v1774_v31, %v1180_v13 }
 0x1de   : > { %v2030_v55 = vsel %vm1837_vm13, 0.0, %v1954_v42  ;;  %v2614_v17 = vmax.f32 %v6513_v43, %v5736_v18 }
 0x1df   : > { %v2158_v10 = vadd.f32 %v2094_v25, %v2030_v55  ;;  %v5753_v8 = vpack.i.bf16 %v6661_v2, %v6659_v41  ;;  %v2615_v25 = vmax.f32 %v6515_v9, %v5737_v24  ;;  %v1696_v9 = vsel %vm1671_vm2, %v1645_v46, %v1646_v37 }
 0x1e1   : > { %v2226_v3 = vadd.f32 %v6538_v52, %v2158_v10  ;;  %5754 = vrot.lane.b32.xlu2 %v5753_v8, %s5927_s22  ;;  %v1455_v10 = vadd.s32 320, %v6143_v26  ;;  %v1518_v8 = vand.u32 15, %v1454_v58  ;;  %v2641_v43 = vpack.c.bf16 %v2615_v25, %v2614_v17 }
 0x1e2   : > { %v1351_v33 = vpop.f32.mrf.mxu2 }
 0x1e3   : > { %v2290_v47 = vmax.f32 %v2226_v3, 0.0  ;;  %v1903_v12 = vrot.slane %v1351_v33, 1  ;;  %v1016_v4 = vpop.f32.mrf.mxu0  ;;  %v1519_v18 = vand.u32 15, %v1455_v10  ;;  %vm1839_vm15 = vcmp.eq.s32.totalorder %v1518_v8, 15  ;;  %v5596_v10 = vld [vmem:[%s6098_s19 + $0xe8] sm:$0xff] }
 0x1e4   : > { %v1185_v15 = vpop.f32.mrf.mxu1  ;;  %v2096_v33 = vadd.f32 %v1696_v9, %v1182_v23  ;;  %v1456_v8 = vadd.s32 328, %v6143_v26 }
 0x1e5   : > { %2354 = vst [vmem:[#allocation2 + $0x128] sm:$0xff] %v2290_v47  ;;  %v1953_v42 = vsel %vm1928_vm1, %v1902_v22, %v1903_v12  ;;  %v1647_v22 = vrot.slane %v1016_v4, 7  ;;  %vm1583_vm3 = vcmp.eq.s32.totalorder %v1519_v18, 0 }
 0x1e6   : > { %v2159_v55 = vadd.f32 %v2095_v56, %v1953_v42  ;;  %5172 = vmatmul.msk.bf16.gmra.mxu0 %vm810_vm0, %v5595_v28  ;;  %v1520_v18 = vand.u32 15, %v1456_v8 }
 0x1e7   : > { %5236 = vmatmul.msk.bf16.gmra.mxu2 %vm810_vm0, %v5595_v28  ;;  %5204 = vmatmul.msk.bf16.gmra.mxu1 %vm810_vm0, %v5595_v28  ;;  %v1695_v28 = vsel %vm1671_vm2, %v1646_v37, %v1647_v22 }
 0x1e8   : > { %v2227_v13 = vadd.f32 %v6538_v52, %v2159_v55  ;;  %v1776_v4 = vsel %vm1583_vm3, 0.0, %v1695_v28  ;;  %vm6701_vm4 = vcmp.eq.s32.totalorder %v1520_v18, 15 }
 0x1e9   : > { %v2097_v23 = vadd.f32 %v1776_v4, %v1185_v15 }
 0x1ea   : > { %v2291_v24 = vmax.f32 %v2227_v13, 0.0  ;;  %v1354_v61 = vpop.f32.mrf.mxu2  ;;  %2749 = vmatmul.bf16.gmra.mxu3 %v2641_v43 }
 0x1eb   : > { %v1904_v31 = vrot.slane %v1354_v61, 1  ;;  %v1018_v3 = vpop.f32.mrf.mxu0 }
 0x1ec   : > { %2355 = vst [vmem:[#allocation2 + $0x130] sm:$0xff] %v2291_v24  ;;  %v1187_v58 = vpop.f32.mrf.mxu1  ;;  %v1648_v9 = vrot.slane %v1018_v3, 7  ;;  %v2481_v3 = vld [vmem:[#allocation2 + $0x121] ss:$2 sm:$0xff] }
 0x1ed   : > { %v1952_v47 = vsel %vm1928_vm1, %v1903_v12, %v1904_v31  ;;  %v1457_v12 = vadd.s32 336, %v6143_v26 }
 0x1ee   : > { %v2032_v46 = vsel %vm1839_vm15, 0.0, %v1952_v47  ;;  %v1694_v15 = vsel %vm1671_vm2, %v1647_v22, %v1648_v9 }
 0x1ef   : > { %v2160_v56 = vadd.f32 %v2096_v33, %v2032_v46  ;;  %v1521_v33 = vand.u32 15, %v1457_v12  ;;  %v2417_v46 = vld [vmem:[#allocation2 + $0x120] ss:$2 sm:$0xff] }
 0x1f1   : > { %v2228_v17 = vadd.f32 %v6538_v52, %v2160_v56  ;;  %vm6705_vm5 = vcmp.eq.s32.totalorder %v1521_v33, 0 }
 0x1f2   : > { %v1356_v25 = vpop.f32.mrf.mxu2 }
 0x1f3   : > { %v2292_v42 = vmax.f32 %v2228_v17, 0.0  ;;  %v1905_v55 = vrot.slane %v1356_v25, 1  ;;  %v6689_v13 = vpop.f32.mrf.mxu0 }
 0x1f4   : > { %v1190_v43 = vpop.f32.mrf.mxu1  ;;  %v1649_v28 = vrot.slane %v6689_v13, 7  ;;  %v2098_v13 = vadd.f32 %v1694_v15, %v1187_v58 }
 0x1f5   : > { %2356 = vst [vmem:[#allocation2 + $0x138] sm:$0xff] %v2292_v42  ;;  %v1951_v37 = vsel %vm1928_vm1, %v1904_v31, %v1905_v55 }
 0x1f6   : > { %v2161_v24 = vadd.f32 %v2097_v23, %v1951_v37  ;;  %5173 = vmatmul.msk.bf16.gmra.mxu0 %vm810_vm0, %v5596_v10 }
 0x1f7   : > { %5237 = vmatmul.msk.bf16.gmra.mxu2 %vm810_vm0, %v5596_v10  ;;  %5205 = vmatmul.msk.bf16.gmra.mxu1 %vm810_vm0, %v5596_v10 }
 0x1f8   : > { %v2229_v61 = vadd.f32 %v6538_v52, %v2161_v24  ;;  %v6711_v24 = vmax.f32 %v2417_v46, %v2481_v3 }
 0x1fa   : > { %v2293_v47 = vmax.f32 %v2229_v61, 0.0  ;;  %v1359_v31 = vpop.f32.mrf.mxu2  ;;  %v1693_v61 = vsel %vm1671_vm2, %v1648_v9, %v1649_v28 }
 0x1fb   : > { %v1906_v4 = vrot.slane %v1359_v31, 1  ;;  %v5740_v17 = vpop.permute.xlu2 %5739  ;;  %v1023_v22 = vpop.f32.mrf.mxu0  ;;  %v1778_v46 = vsel %vm6705_vm5, 0.0, %v1693_v61 }
 0x1fc   : > { %2357 = vst [vmem:[#allocation2 + $0x140] sm:$0xff] %v2293_v47  ;;  %v5742_v42 = vunpack.i.h.bf16 %v5740_v17  ;;  %v5741_v10 = vunpack.i.l.bf16 %v5740_v17  ;;  %v2419_v8 = vld [vmem:[#allocation2 + $0x130] ss:$2 sm:$0xff]  ;;  %v2483_v23 = vld [vmem:[#allocation2 + $0x131] ss:$2 sm:$0xff]  ;;  %v1192_v37 = vpop.f32.mrf.mxu1  ;;  %v1650_v25 = vrot.slane %v1023_v22, 7 }
 0x1fd   : > { %v1950_v12 = vsel %vm1928_vm1, %v1905_v55, %v1906_v4  ;;  %v6713_v18 = vmax.f32 %v2419_v8, %v2483_v23  ;;  %v5597_v8 = vld [vmem:[%s6098_s19 + $0xf0] sm:$0xff] }
 0x1fe   : > { %v2034_v33 = vsel %vm6701_vm4, 0.0, %v1950_v12  ;;  %v2616_v47 = vmax.f32 %v6571_v48, %v5741_v10  ;;  %v2617_v31 = vmax.f32 %v6573_v11, %v5742_v42  ;;  %v1458_v48 = vadd.s32 344, %v6143_v26 }
 0x1ff   : > { %v2162_v58 = vadd.f32 %v2098_v13, %v2034_v33  ;;  %v5758_v55 = vpack.i.bf16 %v6713_v18, %v6711_v24  ;;  %v2099_v11 = vadd.f32 %v1778_v46, %v1190_v43  ;;  %v1459_v12 = vadd.s32 352, %v6143_v26 }
 0x200   : > { %v2642_v15 = vpack.c.bf16 %v2617_v31, %v2616_v47  ;;  %v1522_v61 = vand.u32 15, %v1458_v48  ;;  %v1692_v43 = vsel %vm1671_vm2, %v1649_v28, %v1650_v25 }
 0x201   : > { %v2230_v3 = vadd.f32 %v6538_v52, %v2162_v58  ;;  %5759 = vrot.lane.b32.xlu0 %v5758_v55, %s5927_s22 }
 0x202   : > { %v1361_v9 = vpop.f32.mrf.mxu2  ;;  %2754 = vmatmul.bf16.gmra.mxu3 %v2642_v15  ;;  %vm1843_vm6 = vcmp.eq.s32.totalorder %v1522_v61, 15  ;;  %v2100_v15 = vadd.f32 %v1692_v43, %v1192_v37 }
 0x203   : > { %v2294_v56 = vmax.f32 %v2230_v3, 0.0  ;;  %v1907_v17 = vrot.slane %v1361_v9, 1  ;;  %v1026_v42 = vpop.f32.mrf.mxu0 }
 0x204   : > { %v1195_v23 = vpop.f32.mrf.mxu1  ;;  %v1651_v31 = vrot.slane %v1026_v42, 7 }
 0x205   : > { %2358 = vst [vmem:[#allocation2 + $0x148] sm:$0xff] %v2294_v56  ;;  %v1949_v10 = vsel %vm1928_vm1, %v1906_v4, %v1907_v17  ;;  %v1523_v4 = vand.u32 15, %v1459_v12  ;;  %v1460_v12 = vadd.s32 360, %v6143_v26 }
 0x206   : > { %v2163_v13 = vadd.f32 %v2099_v11, %v1949_v10  ;;  %5174 = vmatmul.msk.bf16.gmra.mxu0 %vm810_vm0, %v5597_v8  ;;  %v1691_v9 = vsel %vm1671_vm2, %v1650_v25, %v1651_v31 }
 0x207   : > { %5238 = vmatmul.msk.bf16.gmra.mxu2 %vm810_vm0, %v5597_v8  ;;  %5206 = vmatmul.msk.bf16.gmra.mxu1 %vm810_vm0, %v5597_v8  ;;  %vm1587_vm7 = vcmp.eq.s32.totalorder %v1523_v4, 0  ;;  %v1524_v4 = vand.u32 15, %v1460_v12 }
 0x208   : > { %v2231_v33 = vadd.f32 %v6538_v52, %v2163_v13  ;;  %v1780_v8 = vsel %vm1587_vm7, 0.0, %v1691_v9  ;;  %v5598_v13 = vld [vmem:[%s6098_s19 + $0xf8] sm:$0xff]  ;;  %s5883_s19 = scalar_lea.hbm %s8099_s17, 3 }
 0x209   : > { %v2101_v37 = vadd.f32 %v1780_v8, %v1195_v23  ;;  %vm1845_vm8 = vcmp.eq.s32.totalorder %v1524_v4, 15  ;;  %v5621_v8 = vld [vmem:[%s8086_s4 + $0x58] sm:$0xf0] }
 0x20a   : > { %v2295_v47 = vmax.f32 %v2231_v33, 0.0  ;;  %v1364_v58 = vpop.f32.mrf.mxu2 }
 0x20b   : > { %v1908_v22 = vrot.slane %v1364_v58, 1  ;;  %v1028_v55 = vpop.f32.mrf.mxu0 }
 0x20c   : > { %2359 = vst [vmem:[#allocation2 + $0x150] sm:$0xff] %v2295_v47  ;;  %v1197_v3 = vpop.f32.mrf.mxu1  ;;  %v1652_v43 = vrot.slane %v1028_v55, 7  ;;  %v1461_v47 = vadd.s32 368, %v6143_v26 }
 0x20d   : > { %v1948_v46 = vsel %vm1928_vm1, %v1907_v17, %v1908_v22 }
 0x20e   : > { %v2036_v56 = vsel %vm1843_vm6, 0.0, %v1948_v46  ;;  %v1690_v23 = vsel %vm1671_vm2, %v1651_v31, %v1652_v43 }
 0x20f   : > { %v2164_v28 = vadd.f32 %v2100_v15, %v2036_v56 }
 0x211   : > { %v2232_v48 = vadd.f32 %v6538_v52, %v2164_v28  ;;  %v5318_v28 = vld [vmem:[%s8086_s4 + $0x50] sm:$0xf] }
 0x212   : > { %v1366_v11 = vpop.f32.mrf.mxu2 }
 0x213   : > { %v2296_v42 = vmax.f32 %v2232_v48, 0.0  ;;  %v1909_v10 = vrot.slane %v1366_v11, 1  ;;  %v1031_v61 = vpop.f32.mrf.mxu0  ;;  %v2102_v48 = vadd.f32 %v1690_v23, %v1197_v3  ;;  %v1462_v3 = vadd.s32 376, %v6143_v26 }
 0x214   : > { %v1200_v33 = vpop.f32.mrf.mxu1  ;;  %v1653_v46 = vrot.slane %v1031_v61, 7 }
 0x215   : > { %2360 = vst [vmem:[#allocation2 + $0x158] sm:$0xff] %v2296_v42  ;;  %v1947_v17 = vsel %vm1928_vm1, %v1908_v22, %v1909_v10  ;;  %v1525_v22 = vand.u32 15, %v1461_v47  ;;  %v5319_v42 = vor.u32 %v5621_v8, %v5318_v28  ;;  %v1526_v28 = vand.u32 15, %v1462_v3 }
 0x216   : > { %v2165_v25 = vadd.f32 %v2101_v37, %v1947_v17  ;;  %5175 = vmatmul.msk.bf16.gmra.mxu0 %vm810_vm0, %v5598_v13 }
 0x217   : > { %5239 = vmatmul.msk.bf16.gmra.mxu2 %vm810_vm0, %v5598_v13  ;;  %5207 = vmatmul.msk.bf16.gmra.mxu1 %vm810_vm0, %v5598_v13  ;;  %vm1589_vm0 = vcmp.eq.s32.totalorder %v1525_v22, 0  ;;  %v1689_v13 = vsel %vm1671_vm2, %v1652_v43, %v1653_v46  ;;  %vm1847_vm9 = vcmp.eq.s32.totalorder %v1526_v28, 15 }
 0x218   : > { %v2233_v58 = vadd.f32 %v6538_v52, %v2165_v25  ;;  %3132 = vmatpush.bf16.msrb.mxu1 %v5319_v42  ;;  %v1782_v61 = vsel %vm1589_vm0, 0.0, %v1689_v13 }
 0x21a   : > { %v2297_v15 = vmax.f32 %v2233_v58, 0.0  ;;  %v1369_v9 = vpop.f32.mrf.mxu2  ;;  %v2103_v58 = vadd.f32 %v1782_v61, %v1200_v33 }
 0x21b   : > { %v1910_v55 = vrot.slane %v1369_v9, 1  ;;  %v1033_v56 = vpop.f32.mrf.mxu0  ;;  %v1463_v9 = vadd.s32 384, %v6143_v26 }
 0x21c   : > { %2361 = vst [vmem:[#allocation2 + $0x160] sm:$0xff] %v2297_v15  ;;  %v1202_v11 = vpop.f32.mrf.mxu1  ;;  %v1654_v22 = vrot.slane %v1033_v56, 7 }
 0x21d   : > { %v1946_v31 = vsel %vm1928_vm1, %v1909_v10, %v1910_v55  ;;  %v1527_v13 = vand.u32 15, %v1463_v9  ;;  %v1464_v9 = vadd.s32 392, %v6143_v26 }
 0x21e   : > { %v2038_v12 = vsel %vm1845_vm8, 0.0, %v1946_v31 }
 0x21f   : > { %v2166_v37 = vadd.f32 %v2102_v48, %v2038_v12  ;;  %v1688_v48 = vsel %vm1671_vm2, %v1653_v46, %v1654_v22  ;;  %vm1591_vm10 = vcmp.eq.s32.totalorder %v1527_v13, 0 }
 0x221   : > { %v2234_v17 = vadd.f32 %v6538_v52, %v2166_v37 }
 0x222   : > { %v1371_v25 = vpop.f32.mrf.mxu2 }
 0x223   : > { %v2298_v47 = vmax.f32 %v2234_v17, 0.0  ;;  %v1911_v4 = vrot.slane %v1371_v25, 1  ;;  %v1036_v23 = vpop.f32.mrf.mxu0 }
 0x224   : > { %v1205_v15 = vpop.f32.mrf.mxu1  ;;  %v1655_v42 = vrot.slane %v1036_v23, 7 }
 0x225   : > { %2362 = vst [vmem:[#allocation2 + $0x168] sm:$0xff] %v2298_v47  ;;  %v1945_v10 = vsel %vm1928_vm1, %v1910_v55, %v1911_v4  ;;  %v2104_v55 = vadd.f32 %v1688_v48, %v1202_v11 }
 0x226   : > { %v2167_v43 = vadd.f32 %v2103_v58, %v1945_v10  ;;  %v1687_v17 = vsel %vm1671_vm2, %v1654_v22, %v1655_v42 }
 0x227   : > { %v1784_v46 = vsel %vm1591_vm10, 0.0, %v1687_v17  ;;  %v1528_v17 = vand.u32 15, %v1464_v9 }
 0x228   : > { %v2235_v8 = vadd.f32 %v6538_v52, %v2167_v43  ;;  %v2105_v11 = vadd.f32 %v1784_v46, %v1205_v15 }
 0x229   : > { %vm1849_vm11 = vcmp.eq.s32.totalorder %v1528_v17, 15 }
 0x22a   : > { %v2299_v31 = vmax.f32 %v2235_v8, 0.0  ;;  %v1374_v33 = vpop.f32.mrf.mxu2 }
 0x22b   : > { %v1912_v12 = vrot.slane %v1374_v33, 1  ;;  %v1038_v37 = vpop.f32.mrf.mxu0 }
 0x22c   : > { %2363 = vst [vmem:[#allocation2 + $0x170] sm:$0xff] %v2299_v31  ;;  %v1207_v61 = vpop.f32.mrf.mxu1  ;;  %v1465_v31 = vadd.s32 400, %v6143_v26  ;;  %v1656_v13 = vrot.slane %v1038_v37, 7 }
 0x22d   : > { %v1944_v56 = vsel %vm1928_vm1, %v1911_v4, %v1912_v12 }
 0x22e   : > { %v2040_v25 = vsel %vm1847_vm9, 0.0, %v1944_v56  ;;  %v1686_v46 = vsel %vm1671_vm2, %v1655_v42, %v1656_v13 }
 0x22f   : > { %v2168_v47 = vadd.f32 %v2104_v55, %v2040_v25  ;;  %v2106_v9 = vadd.f32 %v1686_v46, %v1207_v61 }
 0x231   : > { %v2236_v3 = vadd.f32 %v6538_v52, %v2168_v47  ;;  %v1529_v47 = vand.u32 15, %v1465_v31 }
 0x232   : > { %v1376_v58 = vpop.f32.mrf.mxu2 }
 0x233   : > { %v2300_v23 = vmax.f32 %v2236_v3, 0.0  ;;  %v1913_v10 = vrot.slane %v1376_v58, 1  ;;  %v5745_v43 = vpop.permute.xlu0 %5744  ;;  %v1041_v4 = vpop.f32.mrf.mxu0  ;;  %vm1593_vm12 = vcmp.eq.s32.totalorder %v1529_v47, 0  ;;  %v1466_v47 = vadd.s32 408, %v6143_v26 }
 0x234   : > { %v5747_v28 = vunpack.i.h.bf16 %v5745_v43  ;;  %v5746_v8 = vunpack.i.l.bf16 %v5745_v43  ;;  %v1210_v22 = vpop.f32.mrf.mxu1  ;;  %v1657_v58 = vrot.slane %v1041_v4, 7  ;;  %v2489_v43 = vld [vmem:[#allocation2 + $0x161] ss:$2 sm:$0xff] }
 0x235   : > { %2364 = vst [vmem:[#allocation2 + $0x178] sm:$0xff] %v2300_v23  ;;  %v1943_v48 = vsel %vm1928_vm1, %v1912_v12, %v1913_v10  ;;  %v2425_v23 = vld [vmem:[#allocation2 + $0x160] ss:$2 sm:$0xff] }
 0x236   : > { %v2169_v33 = vadd.f32 %v2105_v11, %v1943_v48  ;;  %v2618_v55 = vmax.f32 %v6615_v40, %v5746_v8  ;;  %v2619_v56 = vmax.f32 %v6617_v63, %v5747_v28  ;;  %v6788_v31 = vmax.f32 %v2425_v23, %v2489_v43 }
 0x237   : > { %v1685_v4 = vsel %vm1671_vm2, %v1656_v13, %v1657_v58 }
 0x238   : > { %v2237_v25 = vadd.f32 %v6538_v52, %v2169_v33  ;;  %v2643_v15 = vpack.c.bf16 %v2619_v56, %v2618_v55 }
 0x23a   : > { %v2301_v3 = vmax.f32 %v2237_v25, 0.0  ;;  %v1379_v12 = vpop.f32.mrf.mxu2  ;;  %2759 = vmatmul.bf16.gmra.mxu3 %v2643_v15  ;;  %v1786_v25 = vsel %vm1593_vm12, 0.0, %v1685_v4  ;;  %v6807_v4 = vld [vmem:[%s8123_s3] ss:$0 sm:$0xff] }
 0x23b   : > { %v1914_v37 = vrot.slane %v1379_v12, 1  ;;  %v1043_v40 = vpop.f32.mrf.mxu0  ;;  %v5755_v8 = vpop.permute.xlu2 %5754  ;;  %v2107_v12 = vadd.f32 %v1786_v25, %v1210_v22 }
 0x23c   : > { %2365 = vst [vmem:[#allocation2 + $0x180] sm:$0xff] %v2301_v3  ;;  %v2427_v11 = vld [vmem:[#allocation2 + $0x170] ss:$2 sm:$0xff]  ;;  %v2491_v63 = vld [vmem:[#allocation2 + $0x171] ss:$2 sm:$0xff]  ;;  %v1212_v48 = vpop.f32.mrf.mxu1  ;;  %v5757_v17 = vunpack.i.h.bf16 %v5755_v8  ;;  %v5756_v61 = vunpack.i.l.bf16 %v5755_v8  ;;  %v1530_v8 = vand.u32 15, %v1466_v47 }
 0x23d   : > { %v1942_v28 = vsel %vm1928_vm1, %v1913_v10, %v1914_v37  ;;  %v6790_v42 = vmax.f32 %v2427_v11, %v2491_v63 }
 0x23e   : > { %v2042_v33 = vsel %vm1849_vm11, 0.0, %v1942_v28  ;;  %v2620_v13 = vmax.f32 %v6659_v41, %v5756_v61  ;;  %v2621_v43 = vmax.f32 %v6661_v2, %v5757_v17  ;;  %v1467_v28 = vadd.s32 416, %v6143_v26 }
 0x23f   : > { %v2170_v55 = vadd.f32 %v2106_v9, %v2042_v33  ;;  %v5768_v56 = vpack.i.bf16 %v6790_v42, %v6788_v31  ;;  %v1658_v9 = vrot.slane %v1043_v40, 7  ;;  %vm1851_vm13 = vcmp.eq.s32.totalorder %v1530_v8, 15 }
 0x240   : > { %v2644_v41 = vpack.c.bf16 %v2621_v43, %v2620_v13  ;;  %v1469_v8 = vadd.s32 432, %v6143_v26 }
 0x241   : > { %v2238_v10 = vadd.f32 %v6538_v52, %v2170_v55  ;;  %5769 = vrot.lane.b32.xlu2 %v5768_v56, %s5927_s22  ;;  %v1684_v2 = vsel %vm1671_vm2, %v1657_v58, %v1658_v9 }
 0x242   : > { %v1381_v15 = vpop.f32.mrf.mxu2  ;;  %v2108_v61 = vadd.f32 %v1684_v2, %v1212_v48 }
 0x243   : > { %v2302_v46 = vmax.f32 %v2238_v10, 0.0  ;;  %v1915_v3 = vrot.slane %v1381_v15, 1  ;;  %v1046_v23 = vpop.f32.mrf.mxu0 }
 0x244   : > { %v1215_v63 = vpop.f32.mrf.mxu1  ;;  %v1659_v55 = vrot.slane %v1046_v23, 7 }
 0x245   : > { %2366 = vst [vmem:[#allocation2 + $0x188] sm:$0xff] %v2302_v46  ;;  %v1941_v11 = vsel %vm1928_vm1, %v1914_v37, %v1915_v3  ;;  %v1531_v37 = vand.u32 15, %v1467_v28 }
 0x246   : > { %v2171_v52 = vadd.f32 %v2107_v12, %v1941_v11  ;;  %v1683_v15 = vsel %vm1671_vm2, %v1658_v9, %v1659_v55  ;;  %v1468_v11 = vadd.s32 424, %v6143_v26 }
 0x247   : > { %vm1595_vm14 = vcmp.eq.s32.totalorder %v1531_v37, 0 }
 0x248   : > { %v2239_v22 = vadd.f32 %v6807_v4, %v2171_v52  ;;  %v1788_v47 = vsel %vm1595_vm14, 0.0, %v1683_v15 }
 0x249   : > { %v2109_v52 = vadd.f32 %v1788_v47, %v1215_v63 }
 0x24a   : > { %v2303_v33 = vmax.f32 %v2239_v22, 0.0  ;;  %v1384_v56 = vpop.f32.mrf.mxu2  ;;  %2764 = vmatmul.bf16.gmra.mxu3 %v2644_v41  ;;  %v1532_v41 = vand.u32 15, %v1468_v11 }
 0x24b   : > { %v1916_v40 = vrot.slane %v1384_v56, 1  ;;  %v1048_v17 = vpop.f32.mrf.mxu0 }
 0x24c   : > { %2367 = vst [vmem:[#allocation2 + $0x190] sm:$0xff] %v2303_v33  ;;  %v1217_v10 = vpop.f32.mrf.mxu1  ;;  %v1660_v9 = vrot.slane %v1048_v17, 7  ;;  %v1533_v33 = vand.u32 15, %v1469_v8  ;;  %v2493_v15 = vld [vmem:[#allocation2 + $0x181] ss:$2 sm:$0xff]  ;;  %vm1853_vm15 = vcmp.eq.s32.totalorder %v1532_v41, 15 }
 0x24d   : > { %v1940_v25 = vsel %vm1928_vm1, %v1915_v3, %v1916_v40 }
 0x24e   : > { %v2044_v46 = vsel %vm1851_vm13, 0.0, %v1940_v25  ;;  %v1682_v37 = vsel %vm1671_vm2, %v1659_v55, %v1660_v9  ;;  %v2429_v25 = vld [vmem:[#allocation2 + $0x180] ss:$2 sm:$0xff]  ;;  %vm1597_vm3 = vcmp.eq.s32.totalorder %v1533_v33, 0  ;;  %vm2901_vm13 = vcmask 523264  }
 0x24f   : > { %v2172_v58 = vadd.f32 %v2108_v61, %v2044_v46  ;;  %v2110_v17 = vadd.f32 %v1682_v37, %v1217_v10 }
 0x251   : > { %v2240_v12 = vadd.f32 %v6807_v4, %v2172_v58 }
 0x252   : > { %v1386_v23 = vpop.f32.mrf.mxu2 }
 0x253   : > { %v2304_v13 = vmax.f32 %v2240_v12, 0.0  ;;  %v1917_v43 = vrot.slane %v1386_v23, 1  ;;  %v1051_v48 = vpop.f32.mrf.mxu0 }
 0x254   : > { %v1220_v28 = vpop.f32.mrf.mxu1  ;;  %v1661_v61 = vrot.slane %v1051_v48, 7 }
 0x255   : > { %2368 = vst [vmem:[#allocation2 + $0x198] sm:$0xff] %v2304_v13  ;;  %v1939_v3 = vsel %vm1928_vm1, %v1916_v40, %v1917_v43  ;;  %v6826_v13 = vmax.f32 %v2429_v25, %v2493_v15  ;;  %v1471_v15 = vadd.s32 448, %v6143_v26 }
 0x256   : > { %v2173_v22 = vadd.f32 %v2109_v52, %v1939_v3  ;;  %v1681_v55 = vsel %vm1671_vm2, %v1660_v9, %v1661_v61 }
 0x257   : > { %v1790_v8 = vsel %vm1597_vm3, 0.0, %v1681_v55 }
 0x258   : > { %v2241_v2 = vadd.f32 %v6807_v4, %v2173_v22  ;;  %v2111_v37 = vadd.f32 %v1790_v8, %v1220_v28 }
 0x25a   : > { %v2305_v56 = vmax.f32 %v2241_v2, 0.0  ;;  %v1389_v63 = vpop.f32.mrf.mxu2  ;;  %v1470_v2 = vadd.s32 440, %v6143_v26 }
 0x25b   : > { %v1918_v46 = vrot.slane %v1389_v63, 1  ;;  %v1053_v40 = vpop.f32.mrf.mxu0 }
 0x25c   : > { %2369 = vst [vmem:[#allocation2 + $0x1a0] sm:$0xff] %v2305_v56  ;;  %v2431_v58 = vld [vmem:[#allocation2 + $0x190] ss:$2 sm:$0xff]  ;;  %v2495_v47 = vld [vmem:[#allocation2 + $0x191] ss:$2 sm:$0xff]  ;;  %v1222_v23 = vpop.f32.mrf.mxu1  ;;  %v1662_v63 = vrot.slane %v1053_v40, 7 }
 0x25d   : > { %v1938_v12 = vsel %vm1928_vm1, %v1917_v43, %v1918_v46  ;;  %v6828_v11 = vmax.f32 %v2431_v58, %v2495_v47  ;;  %v1534_v58 = vand.u32 15, %v1470_v2 }
 0x25e   : > { %v2046_v52 = vsel %vm1853_vm15, 0.0, %v1938_v12 }
 0x25f   : > { %v2174_v48 = vadd.f32 %v2110_v17, %v2046_v52  ;;  %v5773_v3 = vpack.i.bf16 %v6828_v11, %v6826_v13  ;;  %v1680_v17 = vsel %vm1671_vm2, %v1661_v61, %v1662_v63  ;;  %v1535_v52 = vand.u32 15, %v1471_v15 }
 0x260   : > { %vm1855_vm4 = vcmp.eq.s32.totalorder %v1534_v58, 15  ;;  %v1472_v15 = vadd.s32 456, %v6143_v26 }
 0x261   : > { %v2242_v10 = vadd.f32 %v6807_v4, %v2174_v48  ;;  %5774 = vrot.lane.b32.xlu0 %v5773_v3, %s5927_s22  ;;  %vm1599_vm5 = vcmp.eq.s32.totalorder %v1535_v52, 0 }
 0x262   : > { %v1391_v43 = vpop.f32.mrf.mxu2 }
 0x263   : > { %v2306_v22 = vmax.f32 %v2242_v10, 0.0  ;;  %v1919_v41 = vrot.slane %v1391_v43, 1  ;;  %v1056_v33 = vpop.f32.mrf.mxu0 }
 0x264   : > { %v1225_v56 = vpop.f32.mrf.mxu1  ;;  %v1663_v55 = vrot.slane %v1056_v33, 7 }
 0x265   : > { %2370 = vst [vmem:[#allocation2 + $0x1a8] sm:$0xff] %v2306_v22  ;;  %v1937_v9 = vsel %vm1928_vm1, %v1918_v46, %v1919_v41  ;;  %v2112_v46 = vadd.f32 %v1680_v17, %v1222_v23 }
 0x266   : > { %v2175_v25 = vadd.f32 %v2111_v37, %v1937_v9  ;;  %v1679_v10 = vsel %vm1671_vm2, %v1662_v63, %v1663_v55 }
 0x267   : > { %v1792_v61 = vsel %vm1599_vm5, 0.0, %v1679_v10  ;;  %v1536_v10 = vand.u32 15, %v1472_v15 }
 0x268   : > { %v2243_v47 = vadd.f32 %v6807_v4, %v2175_v25  ;;  %v2113_v23 = vadd.f32 %v1792_v61, %v1225_v56 }
 0x269   : > { %vm1857_vm6 = vcmp.eq.s32.totalorder %v1536_v10, 15 }
 0x26a   : > { %v2307_v12 = vmax.f32 %v2243_v47, 0.0  ;;  %v1394_v28 = vpop.f32.mrf.mxu2 }
 0x26b   : > { %v1920_v48 = vrot.slane %v1394_v28, 1  ;;  %v1058_v3 = vpop.f32.mrf.mxu0 }
 0x26c   : > { %2371 = vst [vmem:[#allocation2 + $0x1b0] sm:$0xff] %v2307_v12  ;;  %v1227_v8 = vpop.f32.mrf.mxu1  ;;  %v1473_v12 = vadd.s32 464, %v6143_v26  ;;  %v1664_v52 = vrot.slane %v1058_v3, 7 }
 0x26d   : > { %v1936_v40 = vsel %vm1928_vm1, %v1919_v41, %v1920_v48 }
 0x26e   : > { %v2048_v43 = vsel %vm1855_vm4, 0.0, %v1936_v40 }
 0x26f   : > { %v2176_v22 = vadd.f32 %v2112_v46, %v2048_v43 }
 0x271   : > { %v2244_v2 = vadd.f32 %v6807_v4, %v2176_v22  ;;  %v1678_v22 = vsel %vm1671_vm2, %v1663_v55, %v1664_v52 }
 0x272   : > { %v1396_v37 = vpop.f32.mrf.mxu2 }
 0x273   : > { %v2308_v33 = vmax.f32 %v2244_v2, 0.0  ;;  %v1921_v9 = vrot.slane %v1396_v37, 1  ;;  %v5760_v25 = vpop.permute.xlu0 %5759  ;;  %v1061_v41 = vpop.f32.mrf.mxu0  ;;  %v1537_v37 = vand.u32 15, %v1473_v12 }
 0x274   : > { %v5762_v58 = vunpack.i.h.bf16 %v5760_v25  ;;  %v5761_v47 = vunpack.i.l.bf16 %v5760_v25  ;;  %v1230_v63 = vpop.f32.mrf.mxu1  ;;  %v1665_v2 = vrot.slane %v1061_v41, 7  ;;  %v2114_v25 = vadd.f32 %v1678_v22, %v1227_v8 }
 0x275   : > { %2372 = vst [vmem:[#allocation2 + $0x1b8] sm:$0xff] %v2308_v33  ;;  %v1935_v17 = vsel %vm1928_vm1, %v1920_v48, %v1921_v9  ;;  %vm1601_vm7 = vcmp.eq.s32.totalorder %v1537_v37, 0 }
 0x276   : > { %v2177_v28 = vadd.f32 %v2113_v23, %v1935_v17  ;;  %v2622_v46 = vmax.f32 %v6711_v24, %v5761_v47  ;;  %v2623_v40 = vmax.f32 %v6713_v18, %v5762_v58  ;;  %v1677_v15 = vsel %vm1671_vm2, %v1664_v52, %v1665_v2 }
 0x277   : > { %v1794_v58 = vsel %vm1601_vm7, 0.0, %v1677_v15  ;;  %v1475_v52 = vadd.s32 480, %v6143_v26 }
 0x278   : > { %v2245_v43 = vadd.f32 %v6807_v4, %v2177_v28  ;;  %v2645_v56 = vpack.c.bf16 %v2623_v40, %v2622_v46  ;;  %v1474_v28 = vadd.s32 472, %v6143_v26  ;;  %v2115_v46 = vadd.f32 %v1794_v58, %v1230_v63 }
 0x27a   : > { %v2309_v61 = vmax.f32 %v2245_v43, 0.0  ;;  %v1399_v48 = vpop.f32.mrf.mxu2  ;;  %2769 = vmatmul.bf16.gmra.mxu3 %v2645_v56  ;;  %v1538_v56 = vand.u32 15, %v1474_v28 }
 0x27b   : > { %v1922_v33 = vrot.slane %v1399_v48, 1  ;;  %v1063_v3 = vpop.f32.mrf.mxu0 }
 0x27c   : > { %2373 = vst [vmem:[#allocation2 + $0x1c0] sm:$0xff] %v2309_v61  ;;  %v1232_v18 = vpop.f32.mrf.mxu1  ;;  %v1666_v10 = vrot.slane %v1063_v3, 7  ;;  %vm1859_vm8 = vcmp.eq.s32.totalorder %v1538_v56, 15 }
 0x27d   : > { %v1934_v24 = vsel %vm1928_vm1, %v1921_v9, %v1922_v33 }
 0x27e   : > { %v2050_v23 = vsel %vm1857_vm6, 0.0, %v1934_v24  ;;  %v1676_v61 = vsel %vm1671_vm2, %v1665_v2, %v1666_v10 }
 0x27f   : > { %v2178_v55 = vadd.f32 %v2114_v25, %v2050_v23  ;;  %v1539_v25 = vand.u32 15, %v1475_v52 }
 0x281   : > { %v2246_v47 = vadd.f32 %v6807_v4, %v2178_v55  ;;  %vm1603_vm0 = vcmp.eq.s32.totalorder %v1539_v25, 0 }
 0x282   : > { %v1401_v41 = vpop.f32.mrf.mxu2 }
 0x283   : > { %v2310_v17 = vmax.f32 %v2246_v47, 0.0  ;;  %v1923_v12 = vrot.slane %v1401_v41, 1  ;;  %v1066_v8 = vpop.f32.mrf.mxu0 }
 0x284   : > { %v1235_v40 = vpop.f32.mrf.mxu1  ;;  %v1667_v48 = vrot.slane %v1066_v8, 7  ;;  %v1476_v8 = vadd.s32 488, %v6143_v26 }
 0x285   : > { %2374 = vst [vmem:[#allocation2 + $0x1c8] sm:$0xff] %v2310_v17  ;;  %v1933_v9 = vsel %vm1928_vm1, %v1922_v33, %v1923_v12  ;;  %v2116_v33 = vadd.f32 %v1676_v61, %v1232_v18 }
 0x286   : > { %v2179_v43 = vadd.f32 %v2115_v46, %v1933_v9  ;;  %v1675_v23 = vsel %vm1671_vm2, %v1666_v10, %v1667_v48  ;;  %v5306_v10 = vld [vmem:[%s8086_s4 + $0x38] sm:$0xf] }
 0x287   : > { %v1796_v2 = vsel %vm1603_vm0, 0.0, %v1675_v23 }
 0x288   : > { %v2247_v22 = vadd.f32 %v6807_v4, %v2179_v43  ;;  %v2117_v9 = vadd.f32 %v1796_v2, %v1235_v40  ;;  %v5618_v43 = vld [vmem:[%s8086_s4 + $0x40] sm:$0xf0] }
 0x289   : > { %v5307_v61 = vor.u32 %v5618_v43, %v5306_v10 }
 0x28a   : > { %v2311_v37 = vmax.f32 %v2247_v22, 0.0  ;;  %v1404_v63 = vpop.f32.mrf.mxu2  ;;  %v1477_v22 = vadd.s32 496, %v6143_v26 }
 0x28b   : > { %v1924_v24 = vrot.slane %v1404_v63, 1  ;;  %v1068_v15 = vpop.f32.mrf.mxu0  ;;  %v1479_v63 = vand.u32 15, %v6143_v26  ;;  %3133 = vmatpush.bf16.msrb.mxu1 %v5307_v61 }
 0x28c   : > { %2375 = vst [vmem:[#allocation2 + $0x1d0] sm:$0xff] %v2311_v37  ;;  %v1237_v58 = vpop.f32.mrf.mxu1  ;;  %v1668_v52 = vrot.slane %v1068_v15, 7  ;;  %v1540_v37 = vand.u32 15, %v1476_v8 }
 0x28d   : > { %v1932_v3 = vsel %vm1928_vm1, %v1923_v12, %v1924_v24  ;;  %vm6893_vm10 = vcmp.eq.s32.totalorder %v1479_v63, 0  ;;  %v8141_v63 = vrot.slane %v6133_v19, 7 }
 0x28e   : > { %v2052_v55 = vsel %vm1859_vm8, 0.0, %v1932_v3  ;;  %v1674_v3 = vsel %vm1671_vm2, %v1667_v48, %v1668_v52  ;;  %vm6888_vm9 = vcmp.eq.s32.totalorder %v1540_v37, 15 }
 0x28f   : > { %v2180_v47 = vadd.f32 %v2116_v33, %v2052_v55  ;;  %v2501_v33 = vld [vmem:[#allocation2 + $0x1c1] ss:$2 sm:$0xff] }
 0x291   : > { %v2248_v41 = vadd.f32 %v6807_v4, %v2180_v47  ;;  %v1541_v47 = vand.u32 15, %v1477_v22 }
 0x292   : > { %v1406_v17 = vpop.f32.mrf.mxu2 }
 0x293   : > { %v2312_v28 = vmax.f32 %v2248_v41, 0.0  ;;  %v1925_v46 = vrot.slane %v1406_v17, 1  ;;  %v1071_v18 = vpop.f32.mrf.mxu0  ;;  %v1478_v17 = vadd.s32 504, %v6143_v26  ;;  %vm6903_vm11 = vcmp.eq.s32.totalorder %v1541_v47, 0 }
 0x294   : > { %v1240_v25 = vpop.f32.mrf.mxu1  ;;  %v1669_v55 = vrot.slane %v1071_v18, 7  ;;  %v2118_v18 = vadd.f32 %v1674_v3, %v1237_v58 }
 0x295   : > { %2376 = vst [vmem:[#allocation2 + $0x1d8] sm:$0xff] %v2312_v28  ;;  %v1931_v12 = vsel %vm1928_vm1, %v1924_v24, %v1925_v46  ;;  %v2437_v24 = vld [vmem:[#allocation2 + $0x1c0] ss:$2 sm:$0xff] }
 0x296   : > { %v2181_v56 = vadd.f32 %v2117_v9, %v1931_v12  ;;  %v6897_v48 = vmax.f32 %v2437_v24, %v2501_v33  ;;  %v1673_v61 = vsel %vm1671_vm2, %v1668_v52, %v1669_v55  ;;  %v1542_v24 = vand.u32 15, %v1478_v17 }
 0x297   : > { %v1798_v3 = vsel %vm6903_vm11, 0.0, %v1673_v61 }
 0x298   : > { %v2249_v40 = vadd.f32 %v6807_v4, %v2181_v56  ;;  %vm1863_vm12 = vcmp.eq.s32.totalorder %v1542_v24, 15  ;;  %v2119_v8 = vadd.f32 %v1798_v3, %v1240_v25  ;;  %v5620_v25 = vld [vmem:[%s8086_s4 + $0x50] sm:$0xf0] }
 0x29a   : > { %v2313_v23 = vmax.f32 %v2249_v40, 0.0  ;;  %v1409_v15 = vpop.f32.mrf.mxu2 }
 0x29b   : > { %v1926_v41 = vrot.slane %v1409_v15, 1  ;;  %v1073_v28 = vpop.f32.mrf.mxu0 }
 0x29c   : > { %2377 = vst [vmem:[#allocation2 + $0x1e0] sm:$0xff] %v2313_v23  ;;  %v2439_v9 = vld [vmem:[#allocation2 + $0x1d0] ss:$2 sm:$0xff]  ;;  %v2503_v12 = vld [vmem:[#allocation2 + $0x1d1] ss:$2 sm:$0xff]  ;;  %v1670_v43 = vrot.slane %v1073_v28, 7  ;;  %v1242_v19 = vpop.f32.mrf.mxu1 }
 0x29d   : > { %v1930_v10 = vsel %vm1928_vm1, %v1925_v46, %v1926_v41  ;;  %v6901_v56 = vmax.f32 %v2439_v9, %v2503_v12 }
 0x29e   : > { %v2054_v37 = vsel %vm6888_vm9, 0.0, %v1930_v10  ;;  %v1735_v58 = vsel %vm1671_vm2, %v1670_v43, %v8141_v63  ;;  %v1672_v47 = vsel %vm1671_vm2, %v1669_v55, %v1670_v43 }
 0x29f   : > { %v2182_v40 = vadd.f32 %v2118_v18, %v2054_v37  ;;  %v5783_v46 = vpack.i.bf16 %v6901_v56, %v6897_v48  ;;  %v1736_v33 = vsel %vm6893_vm10, 0.0, %v1735_v58  ;;  %v2120_v12 = vadd.f32 %v1672_v47, %v1242_v19  ;;  %v2383_v58 = vld [vmem:[#allocation2 + $0x10] ss:$2 sm:$0xff] }
 0x2a0   : > { %v2057_v23 = vadd.f32 %v1736_v33, %v6135_v20  ;;  %v8142_v18 = vrot.slane %v6140_v21, 1 }
 0x2a1   : > { %v2250_v52 = vadd.f32 %v6807_v4, %v2182_v40  ;;  %5784 = vrot.lane.b32.xlu2 %v5783_v46, %s5927_s22  ;;  %v2447_v46 = vld [vmem:[#allocation2 + $0x11] ss:$2 sm:$0xff] }
 0x2a2   : > { %v1411_v15 = vpop.f32.mrf.mxu2  ;;  %v2121_v17 = vadd.f32 %v2057_v23, %v6154_v32  ;;  %v5310_v32 = vld [vmem:[%s8086_s4 + $0x48] sm:$0xf] }
 0x2a3   : > { %v2314_v2 = vmax.f32 %v2250_v52, 0.0  ;;  %v1927_v28 = vrot.slane %v1411_v15, 1  ;;  %v5311_v37 = vor.u32 %v5620_v25, %v5310_v32  ;;  %v2509_v52 = vmax.f32 %v2383_v58, %v2447_v46  ;;  %v2423_v15 = vld [vmem:[#allocation2 + $0x150] ss:$2 sm:$0xff]  ;;  %v2499_v32 = vld [vmem:[#allocation2 + $0x1b1] ss:$2 sm:$0xff] }
 0x2a4   : > { %v2189_v9 = vadd.f32 %v6807_v4, %v2121_v17  ;;  %v2433_v25 = vld [vmem:[#allocation2 + $0x1a0] ss:$2 sm:$0xff] }
 0x2a5   : > { %2378 = vst [vmem:[#allocation2 + $0x1e8] sm:$0xff] %v2314_v2  ;;  %v1929_v20 = vsel %vm1928_vm1, %v1926_v41, %v1927_v28  ;;  %v1992_v10 = vsel %vm1928_vm1, %v1927_v28, %v8142_v18  ;;  %2954 = vmatpush.bf16.msrb.mxu3 %v5311_v37  ;;  %v2487_v28 = vld [vmem:[#allocation2 + $0x151] ss:$2 sm:$0xff]  ;;  %v5294_v58 = vld [vmem:[%s8086_s4 + $0x20] sm:$0xf] }
 0x2a6   : > { %v2056_v55 = vsel %vm1863_vm12, 0.0, %v1992_v10  ;;  %v2183_v43 = vadd.f32 %v2119_v8, %v1929_v20  ;;  %v2253_v22 = vmax.f32 %v2189_v9, 0.0  ;;  %v2421_v9 = vld [vmem:[#allocation2 + $0x140] ss:$2 sm:$0xff]  ;;  %v2529_v18 = vmax.f32 %v2423_v15, %v2487_v28 }
 0x2a7   : > { %v2184_v61 = vadd.f32 %v2120_v12, %v2056_v55  ;;  %v2485_v12 = vld [vmem:[#allocation2 + $0x141] ss:$2 sm:$0xff] }
 0x2a8   : > { %v2251_v41 = vadd.f32 %v6807_v4, %v2183_v43  ;;  %2317 = vst [vmem:[#allocation2] sm:$0xff] %v2253_v22  ;;  %v2528_v10 = vmax.f32 %v2421_v9, %v2485_v12  ;;  %v2435_v43 = vld [vmem:[#allocation2 + $0x1b0] ss:$2 sm:$0xff]  ;;  %v2497_v22 = vld [vmem:[#allocation2 + $0x1a1] ss:$2 sm:$0xff] }
 0x2a9   : > { %v2252_v21 = vadd.f32 %v6807_v4, %v2184_v61  ;;  %v2535_v61 = vmax.f32 %v2435_v43, %v2499_v32  ;;  %v2534_v37 = vmax.f32 %v2433_v25, %v2497_v22  ;;  %v5615_v46 = vld [vmem:[%s8086_s4 + $0x28] sm:$0xf0] }
 0x2aa   : > { %v2315_v40 = vmax.f32 %v2251_v41, 0.0  ;;  %v5763_v55 = vpack.i.bf16 %v2529_v18, %v2528_v10 }
 0x2ab   : > { %v2316_v63 = vmax.f32 %v2252_v21, 0.0  ;;  %v5778_v41 = vpack.i.bf16 %v2535_v61, %v2534_v37  ;;  %v5298_v21 = vld [vmem:[%s8086_s4 + $0x30] sm:$0xf] }
 0x2ac   : > { %2379 = vst [vmem:[#allocation2 + $0x1f0] sm:$0xff] %v2315_v40  ;;  %v2441_v23 = vld [vmem:[#allocation2 + $0x1e0] ss:$2 sm:$0xff]  ;;  %v2505_v19 = vld [vmem:[#allocation2 + $0x1e1] ss:$2 sm:$0xff] }
 0x2ad   : > { %2380 = vst [vmem:[#allocation2 + $0x1f8] sm:$0xff] %v2316_v63  ;;  %v6943_v4 = vmax.f32 %v2441_v23, %v2505_v19  ;;  %v5617_v40 = vld [vmem:[%s8086_s4 + $0x38] sm:$0xf0]  ;;  %v5614_v23 = vld [vmem:[%s8086_s4 + $0x20] sm:$0xf0] }
 0x2ae   : > { %v5299_v63 = vor.u32 %v5617_v40, %v5298_v21 }
 0x2af   : > { %v2381_v24 = vld [vmem:[#allocation2] ss:$2 sm:$0xff]  ;;  %v2445_v33 = vld [vmem:[#allocation2 + $0x1] ss:$2 sm:$0xff] }
 0x2b0   : > { %v2508_v3 = vmax.f32 %v2381_v24, %v2445_v33  ;;  %2955 = vmatpush.bf16.msrb.mxu3 %v5299_v63  ;;  %v5295_v24 = vor.u32 %v5615_v46, %v5294_v58  ;;  %v5286_v33 = vld [vmem:[%s8086_s4 + $0x18] sm:$0xf]  ;;  %v5770_v63 = vpop.permute.xlu2 %5769 }
 0x2b1   : > { %v5287_v19 = vor.u32 %v5614_v23, %v5286_v33  ;;  %v5772_v58 = vunpack.i.h.bf16 %v5770_v63  ;;  %v5771_v46 = vunpack.i.l.bf16 %v5770_v63 }
 0x2b2   : > { %v5748_v47 = vpack.i.bf16 %v2509_v52, %v2508_v3  ;;  %3134 = vmatpush.bf16.msrb.mxu1 %v5295_v24 }
 0x2b3   : > { %v2626_v24 = vmax.f32 %v6788_v31, %v5771_v46  ;;  %v5274_v31 = vld [vmem:[%s8086_s4] sm:$0xf] }
 0x2b4   : > { %v2443_v2 = vld [vmem:[#allocation2 + $0x1f0] ss:$2 sm:$0xff]  ;;  %v2507_v17 = vld [vmem:[#allocation2 + $0x1f1] ss:$2 sm:$0xff]  ;;  %5749 = vrot.lane.b32.xlu1 %v5748_v47, %s5927_s22  ;;  %v6970_v47 = vpop.f32.mrf.mxu3  ;;  %2956 = vmatpush.bf16.msrb.mxu3 %v5287_v19 }
 0x2b5   : > { %v6945_v8 = vmax.f32 %v2443_v2, %v2507_v17 }
 0x2b7   : > { %v5788_v20 = vpack.i.bf16 %v6945_v8, %v6943_v4 }
 0x2b9   : > { %5789 = vrot.lane.b32.xlu0 %v5788_v20, %s5927_s22 }
 0x2bc   : > { %5764 = vrot.lane.b32.xlu1 %v5763_v55, %s5927_s22  ;;  %v6972_v15 = vpop.f32.mrf.mxu3 }
 0x2c4   : > { %5779 = vrot.lane.b32.xlu1 %v5778_v41, %s5927_s22  ;;  %v6974_v55 = vpop.f32.mrf.mxu3 }
 0x2cc   : > { %v6976_v40 = vpop.f32.mrf.mxu3 }
 0x2d3   : > { %v5775_v23 = vpop.permute.xlu0 %5774 }
 0x2fb   : > { %v5785_v46 = vpop.permute.xlu2 %5784 }
 0x326   : > { %v5750_v2 = vpop.permute.xlu1 %5749 }
 0x327   : > { %v5752_v17 = vunpack.i.h.bf16 %v5750_v2  ;;  %v5751_v28 = vunpack.i.l.bf16 %v5750_v2 }
 0x329   : > { %v2605_v9 = vmax.f32 %v2509_v52, %v5752_v17  ;;  %v2604_v12 = vmax.f32 %v2508_v3, %v5751_v28  ;;  %v2627_v3 = vmax.f32 %v6790_v42, %v5772_v58  ;;  %v6980_v52 = vpop.f32.mrf.mxu3  ;;  %v5611_v42 = vld [vmem:[%s8086_s4 + $0x8] sm:$0xf0] }
 0x32b   : > { %v2636_v20 = vpack.c.bf16 %v2605_v9, %v2604_v12  ;;  %v2647_v33 = vpack.c.bf16 %v2627_v3, %v2626_v24  ;;  %v5275_v12 = vor.u32 %v5611_v42, %v5274_v31  ;;  %v5787_v24 = vunpack.i.h.bf16 %v5785_v46 }
 0x32c   : > { %v5786_v3 = vunpack.i.l.bf16 %v5785_v46 }
 0x32d   : > { %2724 = vmatmul.bf16.vlgmr.msrb.gmra.mxu0 %v2636_v20  ;;  %2957 = vmatpush.bf16.msrb.mxu3 %v5275_v12 }
 0x32e   : > { %v5765_v43 = vpop.permute.xlu1 %5764 }
 0x32f   : > { %v5767_v32 = vunpack.i.h.bf16 %v5765_v43  ;;  %v5766_v25 = vunpack.i.l.bf16 %v5765_v43 }
 0x331   : > { %v2624_v22 = vmax.f32 %v2528_v10, %v5766_v25  ;;  %v2625_v41 = vmax.f32 %v2529_v18, %v5767_v32  ;;  %v6982_v19 = vpop.f32.mrf.mxu3  ;;  %v5777_v10 = vunpack.i.h.bf16 %v5775_v23  ;;  %v5776_v18 = vunpack.i.l.bf16 %v5775_v23 }
 0x333   : > { %v2646_v21 = vpack.c.bf16 %v2625_v41, %v2624_v22  ;;  %v2628_v2 = vmax.f32 %v6826_v13, %v5776_v18  ;;  %v2629_v17 = vmax.f32 %v6828_v11, %v5777_v10  ;;  %v5619_v41 = vld [vmem:[%s8086_s4 + $0x4c] sm:$0xf]  ;;  %v5790_v18 = vpop.permute.xlu0 %5789 }
 0x335   : > { %2774 = vmatmul.bf16.gmra.mxu3 %v2646_v21  ;;  %v2648_v9 = vpack.c.bf16 %v2629_v17, %v2628_v2  ;;  %v5312_v21 = vld [vmem:[%s8086_s4 + $0x54] sm:$0xf0]  ;;  %v5792_v2 = vunpack.i.h.bf16 %v5790_v18  ;;  %v5791_v17 = vunpack.i.l.bf16 %v5790_v18 }
 0x336   : > { %v5780_v20 = vpop.permute.xlu1 %5779  ;;  %v5315_v58 = vor.u32 %v5619_v41, %v5312_v21  ;;  %v5612_v21 = vld [vmem:[%s8086_s4 + $0x10] sm:$0xf0] }
 0x337   : > { %v5782_v43 = vunpack.i.h.bf16 %v5780_v20  ;;  %v5781_v32 = vunpack.i.l.bf16 %v5780_v20  ;;  %v2634_v31 = vmax.f32 %v6943_v4, %v5791_v17  ;;  %v5288_v4 = vld [vmem:[%s8086_s4 + $0x24] sm:$0xf0] }
 0x338   : > { %3043 = vmatpush.bf16.msra.mxu0 %v5315_v58 }
 0x339   : > { %v6986_v28 = vpop.f32.mrf.mxu3  ;;  %v2631_v11 = vmax.f32 %v2535_v61, %v5782_v43  ;;  %v2630_v25 = vmax.f32 %v2534_v37, %v5781_v32  ;;  %v2633_v61 = vmax.f32 %v6901_v56, %v5787_v24  ;;  %v2632_v37 = vmax.f32 %v6897_v48, %v5786_v3  ;;  %v5616_v48 = vld [vmem:[%s8086_s4 + $0x34] sm:$0xf]  ;;  %v5300_v56 = vld [vmem:[%s8086_s4 + $0x3c] sm:$0xf0]  ;;  %v5629_v3 = vld [vmem:[%s8093_s11 + $0x38] sm:$0xff] }
 0x33a   : > { %v5303_v20 = vor.u32 %v5616_v48, %v5300_v56  ;;  %3852 = vmatpush.bf16.msrb.mxu2 %v5629_v3  ;;  %v2807_v48 = vpack.c.bf16 %v6976_v40, %v6974_v55  ;;  %v3218_v3 = vand.u32 7, %v6147_v30 }
 0x33b   : > { %v2649_v22 = vpack.c.bf16 %v2631_v11, %v2630_v25  ;;  %v2650_v23 = vpack.c.bf16 %v2633_v61, %v2632_v37  ;;  %v5610_v11 = vld [vmem:[%s8086_s4 + $0x4] sm:$0xf]  ;;  %v5276_v25 = vld [vmem:[%s8086_s4 + $0xc] sm:$0xf0] }
 0x33c   : > { %3044 = vmatpush.bf16.msra.mxu0 %v5303_v20  ;;  %v5279_v41 = vor.u32 %v5610_v11, %v5276_v25  ;;  %v2808_v20 = vpack.c.bf16 %v6982_v19, %v6980_v52  ;;  %vm3250_vm14 = vcmp.eq.s32.totalorder %v3218_v3, 0  ;;  %vm3378_vm15 = vcmp.eq.s32.totalorder %v3218_v3, 7 }
 0x341   : > { %v6994_v13 = vpop.f32.mrf.mxu3 }
 0x342   : > { %v2809_v40 = vpack.c.bf16 %v6994_v13, %v6986_v28 }
 0x345   : > { %2779 = vmatmul.bf16.gmra.mxu3 %v2647_v33 }
 0x349   : > { %v7002_v63 = vpop.f32.mrf.mxu3 }
 0x351   : > { %v7006_v33 = vpop.f32.mrf.mxu3 }
 0x352   : > { %v2810_v19 = vpack.c.bf16 %v7006_v33, %v7002_v63 }
 0x355   : > { %2784 = vmatmul.bf16.gmra.mxu3 %v2648_v9  ;;  %v2635_v9 = vmax.f32 %v6945_v8, %v5792_v2  ;;  %v5613_v8 = vld [vmem:[%s8086_s4 + $0x1c] sm:$0xf] }
 0x356   : > { %v5291_v32 = vor.u32 %v5613_v8, %v5288_v4 }
 0x357   : > { %v2651_v12 = vpack.c.bf16 %v2635_v9, %v2634_v31  ;;  %v2806_v31 = vpack.c.bf16 %v6972_v15, %v6970_v47  ;;  %v5628_v15 = vld [vmem:[%s8093_s11 + $0x30] sm:$0xff] }
 0x358   : > { %3045 = vmatpush.bf16.msra.mxu0 %v5291_v32  ;;  %3853 = vmatpush.bf16.msrb.mxu2 %v5628_v15 }
 0x359   : > { %v7008_v10 = vpop.f32.mrf.mxu3 }
 0x35c   : > { %3046 = vmatpush.bf16.msra.mxu0 %v5279_v41 }
 0x361   : > { %v7012_v42 = vpop.f32.mrf.mxu3 }
 0x362   : > { %v2811_v4 = vpack.c.bf16 %v7012_v42, %v7008_v10  ;;  %v5627_v10 = vld [vmem:[%s8093_s11 + $0x28] sm:$0xff] }
 0x363   : > { %3854 = vmatpush.bf16.msrb.mxu2 %v5627_v10 }
 0x365   : > { %2789 = vmatmul.bf16.gmra.mxu3 %v2649_v22  ;;  %v5282_v22 = vld [vmem:[%s8086_s4 + $0x8] sm:$0xf] }
 0x366   : > { %v5283_v58 = vor.u32 %v5612_v21, %v5282_v22 }
 0x368   : > { %3135 = vmatpush.bf16.msrb.mxu1 %v5283_v58 }
 0x369   : > { %v7020_v43 = vpop.f32.mrf.mxu3 }
 0x371   : > { %v2762_v46 = vpop.f32.mrf.mxu3 }
 0x372   : > { %v2812_v33 = vpack.c.bf16 %v2762_v46, %v7020_v43 }
 0x375   : > { %2794 = vmatmul.bf16.gmra.mxu3 %v2650_v23 }
 0x379   : > { %v2765_v24 = vpop.f32.mrf.mxu3 }
 0x381   : > { %v2767_v61 = vpop.f32.mrf.mxu3 }
 0x382   : > { %v2813_v25 = vpack.c.bf16 %v2767_v61, %v2765_v24 }
 0x385   : > { %2799 = vmatmul.bf16.gmra.mxu3 %v2651_v12 }
 0x389   : > { %v7043_v23 = vpop.f32.mrf.mxu3 }
 0x391   : > { %v7048_v17 = vpop.f32.mrf.mxu3 }
 0x3aa   : > { %v2725_v37 = vpop.f32.mrf.mxu0 }
 0x3b2   : > { %v2727_v18 = vpop.f32.mrf.mxu0 }
 0x3b3   : > { %v2805_v2 = vpack.c.bf16 %v2727_v18, %v2725_v37 }
 0x3b5   : > { %5320 = vmatmul.msk.bf16.vlgmr.msrb.gmra.mxu3 %vm2901_vm13, %v2805_v2  ;;  %5336 = vmatmul.msk.bf16.vlgmr.msra.gmra.mxu0 %vm2901_vm13, %v2805_v2 }
 0x3b6   : > { %5352 = vmatmul.msk.bf16.vlgmr.msrb.gmra.mxu1 %vm2901_vm13, %v2805_v2 }
 0x3b8   : > { %v7050_v9 = vpop.f32.mrf.mxu3 }
 0x3c0   : > { %v7057_v12 = vpop.f32.mrf.mxu3 }
 0x3c5   : > { %5321 = vmatmul.msk.bf16.gmra.mxu3 %vm2901_vm13, %v2806_v31  ;;  %5337 = vmatmul.msk.bf16.gmra.mxu0 %vm2901_vm13, %v2806_v31 }
 0x3c6   : > { %5353 = vmatmul.msk.bf16.gmra.mxu1 %vm2901_vm13, %v2806_v31  ;;  %v2814_v31 = vpack.c.bf16 %v7048_v17, %v7043_v23  ;;  %v7146_v23 = vld [vmem:[%s8087_s5] ss:$0 sm:$0xff] }
 0x3c8   : > { %v7063_v56 = vpop.f32.mrf.mxu3 }
 0x3d0   : > { %v7066_v47 = vpop.f32.mrf.mxu3 }
 0x3d5   : > { %5322 = vmatmul.msk.bf16.gmra.mxu3 %vm2901_vm13, %v2807_v48  ;;  %5338 = vmatmul.msk.bf16.gmra.mxu0 %vm2901_vm13, %v2807_v48 }
 0x3d6   : > { %5354 = vmatmul.msk.bf16.gmra.mxu1 %vm2901_vm13, %v2807_v48 }
 0x3d8   : > { %v7076_v55 = vpop.f32.mrf.mxu3 }
 0x3e0   : > { %v7080_v8 = vpop.f32.mrf.mxu3 }
 0x3e5   : > { %5323 = vmatmul.msk.bf16.gmra.mxu3 %vm2901_vm13, %v2808_v20  ;;  %5339 = vmatmul.msk.bf16.gmra.mxu0 %vm2901_vm13, %v2808_v20 }
 0x3e6   : > { %5355 = vmatmul.msk.bf16.gmra.mxu1 %vm2901_vm13, %v2808_v20 }
 0x3e8   : > { %v7085_v52 = vpop.f32.mrf.mxu3 }
 0x3f0   : > { %v7092_v28 = vpop.f32.mrf.mxu3 }
 0x3f5   : > { %5324 = vmatmul.msk.bf16.gmra.mxu3 %vm2901_vm13, %v2809_v40  ;;  %5340 = vmatmul.msk.bf16.gmra.mxu0 %vm2901_vm13, %v2809_v40 }
 0x3f6   : > { %5356 = vmatmul.msk.bf16.gmra.mxu1 %vm2901_vm13, %v2809_v40 }
 0x3f8   : > { %v7094_v13 = vpop.f32.mrf.mxu3 }
 0x400   : > { %v7101_v63 = vpop.f32.mrf.mxu3 }
 0x405   : > { %5325 = vmatmul.msk.bf16.gmra.mxu3 %vm2901_vm13, %v2810_v19  ;;  %5341 = vmatmul.msk.bf16.gmra.mxu0 %vm2901_vm13, %v2810_v19 }
 0x406   : > { %5357 = vmatmul.msk.bf16.gmra.mxu1 %vm2901_vm13, %v2810_v19 }
 0x408   : > { %v7106_v32 = vpop.f32.mrf.mxu3 }
 0x410   : > { %v7112_v42 = vpop.f32.mrf.mxu3 }
 0x415   : > { %5326 = vmatmul.msk.bf16.gmra.mxu3 %vm2901_vm13, %v2811_v4  ;;  %5342 = vmatmul.msk.bf16.gmra.mxu0 %vm2901_vm13, %v2811_v4 }
 0x416   : > { %5358 = vmatmul.msk.bf16.gmra.mxu1 %vm2901_vm13, %v2811_v4  ;;  %v3219_v4 = vand.u32 7, %v6157_v35 }
 0x418   : > { %vm3251_vm3 = vcmp.eq.s32.totalorder %v3219_v4, 0  ;;  %vm3379_vm4 = vcmp.eq.s32.totalorder %v3219_v4, 7 }
 0x425   : > { %5327 = vmatmul.msk.bf16.gmra.mxu3 %vm2901_vm13, %v2812_v33  ;;  %5343 = vmatmul.msk.bf16.gmra.mxu0 %vm2901_vm13, %v2812_v33 }
 0x426   : > { %5359 = vmatmul.msk.bf16.gmra.mxu1 %vm2901_vm13, %v2812_v33 }
 0x432   : > { %v7114_v11 = vpop.f32.mrf.mxu0 }
 0x433   : > { %v7116_v22 = vpop.f32.mrf.mxu1 }
 0x434   : > { %v8111_v58 = vrot.slane %v7116_v22, 1 }
 0x435   : > { %5328 = vmatmul.msk.bf16.gmra.mxu3 %vm2901_vm13, %v2813_v25  ;;  %5344 = vmatmul.msk.bf16.gmra.mxu0 %vm2901_vm13, %v2813_v25 }
 0x436   : > { %5360 = vmatmul.msk.bf16.gmra.mxu1 %vm2901_vm13, %v2813_v25 }
 0x438   : > { %v7121_v43 = vpop.f32.mrf.mxu3 }
 0x439   : > { %v8110_v37 = vrot.slane %v7121_v43, 7 }
 0x43a   : > { %v3050_v41 = vpop.f32.mrf.mxu0 }
 0x43b   : > { %v3139_v21 = vpop.f32.mrf.mxu1 }
 0x43c   : > { %v3410_v46 = vrot.slane %v3139_v21, 1 }
 0x43e   : > { %v7129_v24 = vsel %vm1928_vm1, %v8111_v58, %v3410_v46  ;;  %v3220_v58 = vand.u32 7, %v6182_v57 }
 0x440   : > { %v2961_v61 = vpop.f32.mrf.mxu3  ;;  %vm3252_vm5 = vcmp.eq.s32.totalorder %v3220_v58, 0  ;;  %vm3380_vm6 = vcmp.eq.s32.totalorder %v3220_v58, 7 }
 0x441   : > { %v3282_v18 = vrot.slane %v2961_v61, 7 }
 0x442   : > { %v3053_v2 = vpop.f32.mrf.mxu0 }
 0x443   : > { %v3343_v48 = vsel %vm1671_vm2, %v8110_v37, %v3282_v18  ;;  %v3142_v15 = vpop.f32.mrf.mxu1 }
 0x444   : > { %v3346_v20 = vsel %vm3250_vm14, 0.0, %v3343_v48  ;;  %v3411_v40 = vrot.slane %v3142_v15, 1 }
 0x445   : > { %v3506_v19 = vadd.f32 %v3346_v20, %v3050_v41  ;;  %5329 = vmatmul.msk.bf16.gmra.mxu3 %vm2901_vm13, %v2814_v31  ;;  %5345 = vmatmul.msk.bf16.gmra.mxu0 %vm2901_vm13, %v2814_v31 }
 0x446   : > { %v3470_v33 = vsel %vm1928_vm1, %v3410_v46, %v3411_v40  ;;  %5361 = vmatmul.msk.bf16.gmra.mxu1 %vm2901_vm13, %v2814_v31 }
 0x447   : > { %v3474_v17 = vsel %vm3378_vm15, 0.0, %v3470_v33 }
 0x448   : > { %v3538_v10 = vadd.f32 %v3506_v19, %v3474_v17  ;;  %v2964_v25 = vpop.f32.mrf.mxu3 }
 0x449   : > { %v3283_v41 = vrot.slane %v2964_v25, 7 }
 0x44a   : > { %v3574_v21 = vadd.f32 %v7146_v23, %v3538_v10  ;;  %v3055_v3 = vpop.f32.mrf.mxu0 }
 0x44b   : > { %v3342_v61 = vsel %vm1671_vm2, %v3282_v18, %v3283_v41  ;;  %v3144_v48 = vpop.f32.mrf.mxu1 }
 0x44c   : > { %v3606_v46 = vmax.f32 %v3574_v21, 0.0  ;;  %v3347_v15 = vsel %vm3251_vm3, 0.0, %v3342_v61  ;;  %v3412_v20 = vrot.slane %v3144_v48, 1  ;;  %v2815_v21 = vpack.c.bf16 %v7057_v12, %v7050_v9 }
 0x44d   : > { %v3507_v37 = vadd.f32 %v3347_v15, %v3053_v2 }
 0x44e   : > { %3638 = vst [vmem:[#allocation2 + $0x8] sm:$0xff] %v3606_v46  ;;  %v3469_v31 = vsel %vm1928_vm1, %v3411_v40, %v3412_v20 }
 0x44f   : > { %v3475_v19 = vsel %vm3379_vm4, 0.0, %v3469_v31 }
 0x450   : > { %v3539_v33 = vadd.f32 %v3507_v37, %v3475_v19  ;;  %v2966_v17 = vpop.f32.mrf.mxu3  ;;  %v3221_v37 = vand.u32 7, %v6187_v0 }
 0x451   : > { %v3284_v10 = vrot.slane %v2966_v17, 7 }
 0x452   : > { %v3575_v25 = vadd.f32 %v7146_v23, %v3539_v33  ;;  %v3058_v18 = vpop.f32.mrf.mxu0  ;;  %vm3253_vm7 = vcmp.eq.s32.totalorder %v3221_v37, 0  ;;  %vm3381_vm8 = vcmp.eq.s32.totalorder %v3221_v37, 7 }
 0x453   : > { %v3341_v2 = vsel %vm1671_vm2, %v3283_v41, %v3284_v10  ;;  %v3147_v4 = vpop.f32.mrf.mxu1 }
 0x454   : > { %v3607_v61 = vmax.f32 %v3575_v25, 0.0  ;;  %v3348_v48 = vsel %vm3252_vm5, 0.0, %v3341_v2  ;;  %v3413_v46 = vrot.slane %v3147_v4, 1 }
 0x455   : > { %v3508_v40 = vadd.f32 %v3348_v48, %v3055_v3  ;;  %5330 = vmatmul.msk.bf16.gmra.mxu3 %vm2901_vm13, %v2815_v21  ;;  %5346 = vmatmul.msk.bf16.gmra.mxu0 %vm2901_vm13, %v2815_v21 }
 0x456   : > { %3639 = vst [vmem:[#allocation2 + $0x10] sm:$0xff] %v3607_v61  ;;  %v3468_v15 = vsel %vm1928_vm1, %v3412_v20, %v3413_v46  ;;  %5362 = vmatmul.msk.bf16.gmra.mxu1 %vm2901_vm13, %v2815_v21  ;;  %v3222_v20 = vand.u32 7, %v6204_v27 }
 0x457   : > { %v3476_v9 = vsel %vm3380_vm6, 0.0, %v3468_v15 }
 0x458   : > { %v3540_v12 = vadd.f32 %v3508_v40, %v3476_v9  ;;  %v2969_v41 = vpop.f32.mrf.mxu3  ;;  %vm3254_vm0 = vcmp.eq.s32.totalorder %v3222_v20, 0  ;;  %vm3382_vm9 = vcmp.eq.s32.totalorder %v3222_v20, 7 }
 0x459   : > { %v3285_v31 = vrot.slane %v2969_v41, 7 }
 0x45a   : > { %v3576_v58 = vadd.f32 %v7146_v23, %v3540_v12  ;;  %v3060_v3 = vpop.f32.mrf.mxu0  ;;  %v2816_v12 = vpack.c.bf16 %v7066_v47, %v7063_v56 }
 0x45b   : > { %v3340_v19 = vsel %vm1671_vm2, %v3284_v10, %v3285_v31  ;;  %v3149_v33 = vpop.f32.mrf.mxu1 }
 0x45c   : > { %v3608_v17 = vmax.f32 %v3576_v58, 0.0  ;;  %v3349_v25 = vsel %vm3253_vm7, 0.0, %v3340_v19  ;;  %v3414_v2 = vrot.slane %v3149_v33, 1  ;;  %v3223_v33 = vand.u32 7, %v6209_v38 }
 0x45d   : > { %v3509_v4 = vadd.f32 %v3349_v25, %v3058_v18 }
 0x45e   : > { %3640 = vst [vmem:[#allocation2 + $0x18] sm:$0xff] %v3608_v17  ;;  %v3467_v21 = vsel %vm1928_vm1, %v3413_v46, %v3414_v2  ;;  %vm3255_vm10 = vcmp.eq.s32.totalorder %v3223_v33, 0  ;;  %vm3383_vm11 = vcmp.eq.s32.totalorder %v3223_v33, 7 }
 0x45f   : > { %v3477_v61 = vsel %vm3381_vm8, 0.0, %v3467_v21 }
 0x460   : > { %v3541_v48 = vadd.f32 %v3509_v4, %v3477_v61  ;;  %v2971_v40 = vpop.f32.mrf.mxu3 }
 0x461   : > { %v3286_v15 = vrot.slane %v2971_v40, 7 }
 0x462   : > { %v3577_v9 = vadd.f32 %v7146_v23, %v3541_v48  ;;  %v3063_v10 = vpop.f32.mrf.mxu0 }
 0x463   : > { %v3339_v18 = vsel %vm1671_vm2, %v3285_v31, %v3286_v15  ;;  %v3152_v37 = vpop.f32.mrf.mxu1 }
 0x464   : > { %v3609_v41 = vmax.f32 %v3577_v9, 0.0  ;;  %v3350_v58 = vsel %vm3254_vm0, 0.0, %v3339_v18  ;;  %v3415_v19 = vrot.slane %v3152_v37, 1  ;;  %v5626_v18 = vld [vmem:[%s8093_s11 + $0x20] sm:$0xff] }
 0x465   : > { %v3510_v46 = vadd.f32 %v3350_v58, %v3060_v3  ;;  %5331 = vmatmul.msk.bf16.gmra.mxu3 %vm2901_vm13, %v2816_v12  ;;  %5347 = vmatmul.msk.bf16.gmra.mxu0 %vm2901_vm13, %v2816_v12 }
 0x466   : > { %3641 = vst [vmem:[#allocation2 + $0x20] sm:$0xff] %v3609_v41  ;;  %v3466_v17 = vsel %vm1928_vm1, %v3414_v2, %v3415_v19  ;;  %5363 = vmatmul.msk.bf16.gmra.mxu1 %vm2901_vm13, %v2816_v12  ;;  %v3224_v2 = vand.u32 7, %v6226_v62  ;;  %3855 = vmatpush.bf16.msrb.mxu2 %v5626_v18 }
 0x467   : > { %v3478_v56 = vsel %vm3382_vm9, 0.0, %v3466_v17 }
 0x468   : > { %v3542_v47 = vadd.f32 %v3510_v46, %v3478_v56  ;;  %v2974_v31 = vpop.f32.mrf.mxu3  ;;  %vm3256_vm12 = vcmp.eq.s32.totalorder %v3224_v2, 0  ;;  %vm3384_vm14 = vcmp.eq.s32.totalorder %v3224_v2, 7 }
 0x469   : > { %v3287_v25 = vrot.slane %v2974_v31, 7 }
 0x46a   : > { %v3578_v4 = vadd.f32 %v7146_v23, %v3542_v47  ;;  %v3065_v3 = vpop.f32.mrf.mxu0 }
 0x46b   : > { %v3338_v20 = vsel %vm1671_vm2, %v3286_v15, %v3287_v25  ;;  %v3154_v21 = vpop.f32.mrf.mxu1 }
 0x46c   : > { %v3610_v61 = vmax.f32 %v3578_v4, 0.0  ;;  %v3351_v48 = vsel %vm3255_vm10, 0.0, %v3338_v20  ;;  %v3416_v40 = vrot.slane %v3154_v21, 1  ;;  %v3225_v20 = vand.u32 7, %v6231_v6 }
 0x46d   : > { %v3511_v9 = vadd.f32 %v3351_v48, %v3063_v10  ;;  %v2817_v10 = vpack.c.bf16 %v7080_v8, %v7076_v55 }
 0x46e   : > { %3642 = vst [vmem:[#allocation2 + $0x28] sm:$0xff] %v3610_v61  ;;  %v3465_v12 = vsel %vm1928_vm1, %v3415_v19, %v3416_v40  ;;  %vm3257_vm15 = vcmp.eq.s32.totalorder %v3225_v20, 0  ;;  %vm3385_vm3 = vcmp.eq.s32.totalorder %v3225_v20, 7 }
 0x46f   : > { %v3479_v37 = vsel %vm3383_vm11, 0.0, %v3465_v12 }
 0x470   : > { %v3543_v41 = vadd.f32 %v3511_v9, %v3479_v37  ;;  %v2976_v58 = vpop.f32.mrf.mxu3 }
 0x471   : > { %v3288_v15 = vrot.slane %v2976_v58, 7 }
 0x472   : > { %v3579_v46 = vadd.f32 %v7146_v23, %v3543_v41  ;;  %v3068_v33 = vpop.f32.mrf.mxu0 }
 0x473   : > { %v3337_v17 = vsel %vm1671_vm2, %v3287_v25, %v3288_v15  ;;  %v3157_v19 = vpop.f32.mrf.mxu1 }
 0x474   : > { %v3611_v56 = vmax.f32 %v3579_v46, 0.0  ;;  %v3352_v47 = vsel %vm3256_vm12, 0.0, %v3337_v17  ;;  %v3417_v31 = vrot.slane %v3157_v19, 1 }
 0x475   : > { %v3512_v4 = vadd.f32 %v3352_v47, %v3065_v3  ;;  %5332 = vmatmul.msk.bf16.gmra.mxu3 %vm2901_vm13, %v2817_v10  ;;  %5348 = vmatmul.msk.bf16.gmra.mxu0 %vm2901_vm13, %v2817_v10  ;;  %v2818_v47 = vpack.c.bf16 %v7092_v28, %v7085_v52  ;;  %v3673_v20 = vld [vmem:[#allocation2 + $0x20] ss:$2 sm:$0xff] }
 0x476   : > { %3643 = vst [vmem:[#allocation2 + $0x30] sm:$0xff] %v3611_v56  ;;  %v3464_v21 = vsel %vm1928_vm1, %v3416_v40, %v3417_v31  ;;  %5364 = vmatmul.msk.bf16.gmra.mxu1 %vm2901_vm13, %v2817_v10  ;;  %v3226_v40 = vand.u32 7, %v6248_v39 }
 0x477   : > { %v3480_v55 = vsel %vm3384_vm14, 0.0, %v3464_v21  ;;  %v3702_v21 = vld [vmem:[#allocation2 + $0x21] ss:$2 sm:$0xff] }
 0x478   : > { %v3544_v8 = vadd.f32 %v3512_v4, %v3480_v55  ;;  %v2979_v25 = vpop.f32.mrf.mxu3  ;;  %vm3258_vm4 = vcmp.eq.s32.totalorder %v3226_v40, 0  ;;  %vm3386_vm5 = vcmp.eq.s32.totalorder %v3226_v40, 7  ;;  %v7220_v28 = vmax.f32 %v3673_v20, %v3702_v21 }
 0x479   : > { %v3289_v61 = vrot.slane %v2979_v25, 7 }
 0x47a   : > { %v3580_v48 = vadd.f32 %v7146_v23, %v3544_v8  ;;  %v3070_v3 = vpop.f32.mrf.mxu0 }
 0x47b   : > { %v3336_v9 = vsel %vm1671_vm2, %v3288_v15, %v3289_v61  ;;  %v3159_v2 = vpop.f32.mrf.mxu1 }
 0x47c   : > { %v3612_v12 = vmax.f32 %v3580_v48, 0.0  ;;  %v3353_v18 = vsel %vm3257_vm15, 0.0, %v3336_v9  ;;  %v3418_v37 = vrot.slane %v3159_v2, 1  ;;  %v3227_v48 = vand.u32 7, %v6253_v44 }
 0x47d   : > { %v3513_v41 = vadd.f32 %v3353_v18, %v3068_v33 }
 0x47e   : > { %3644 = vst [vmem:[#allocation2 + $0x38] sm:$0xff] %v3612_v12  ;;  %v3463_v58 = vsel %vm1928_vm1, %v3417_v31, %v3418_v37  ;;  %vm3259_vm6 = vcmp.eq.s32.totalorder %v3227_v48, 0  ;;  %vm3387_vm7 = vcmp.eq.s32.totalorder %v3227_v48, 7 }
 0x47f   : > { %v3481_v46 = vsel %vm3385_vm3, 0.0, %v3463_v58 }
 0x480   : > { %v3545_v10 = vadd.f32 %v3513_v41, %v3481_v46  ;;  %v2981_v17 = vpop.f32.mrf.mxu3 }
 0x481   : > { %v3290_v19 = vrot.slane %v2981_v17, 7 }
 0x482   : > { %v3581_v56 = vadd.f32 %v7146_v23, %v3545_v10  ;;  %v3073_v15 = vpop.f32.mrf.mxu0 }
 0x483   : > { %v3335_v33 = vsel %vm1671_vm2, %v3289_v61, %v3290_v19  ;;  %v3162_v4 = vpop.f32.mrf.mxu1 }
 0x484   : > { %v3613_v55 = vmax.f32 %v3581_v56, 0.0  ;;  %v3354_v8 = vsel %vm3258_vm4, 0.0, %v3335_v33  ;;  %v3419_v31 = vrot.slane %v3162_v4, 1  ;;  %v3228_v4 = vand.u32 7, %v6277_v16 }
 0x485   : > { %v3514_v25 = vadd.f32 %v3354_v8, %v3070_v3  ;;  %5333 = vmatmul.msk.bf16.gmra.mxu3 %vm2901_vm13, %v2818_v47  ;;  %5349 = vmatmul.msk.bf16.gmra.mxu0 %vm2901_vm13, %v2818_v47  ;;  %v3675_v9 = vld [vmem:[#allocation2 + $0x30] ss:$2 sm:$0xff]  ;;  %v3703_v2 = vld [vmem:[#allocation2 + $0x31] ss:$2 sm:$0xff] }
 0x486   : > { %3645 = vst [vmem:[#allocation2 + $0x40] sm:$0xff] %v3613_v55  ;;  %v3462_v52 = vsel %vm1928_vm1, %v3418_v37, %v3419_v31  ;;  %5365 = vmatmul.msk.bf16.gmra.mxu1 %vm2901_vm13, %v2818_v47  ;;  %v7222_v61 = vmax.f32 %v3675_v9, %v3703_v2  ;;  %vm3260_vm8 = vcmp.eq.s32.totalorder %v3228_v4, 0  ;;  %v2819_v2 = vpack.c.bf16 %v7101_v63, %v7094_v13 }
 0x487   : > { %v3482_v12 = vsel %vm3386_vm5, 0.0, %v3462_v52  ;;  %vm3388_vm0 = vcmp.eq.s32.totalorder %v3228_v4, 7 }
 0x488   : > { %v3546_v3 = vadd.f32 %v3514_v25, %v3482_v12  ;;  %v2984_v18 = vpop.f32.mrf.mxu3  ;;  %v5798_v41 = vpack.i.bf16 %v7222_v61, %v7220_v28 }
 0x489   : > { %v3291_v40 = vrot.slane %v2984_v18, 7  ;;  %v3229_v18 = vand.u32 7, %v6282_v29 }
 0x48a   : > { %v3582_v58 = vadd.f32 %v7146_v23, %v3546_v3  ;;  %5799 = vrot.lane.b32.xlu2 %v5798_v41, %s5928_s30  ;;  %v3075_v37 = vpop.f32.mrf.mxu0 }
 0x48b   : > { %v3334_v46 = vsel %vm1671_vm2, %v3290_v19, %v3291_v40  ;;  %v3164_v10 = vpop.f32.mrf.mxu1  ;;  %vm3261_vm9 = vcmp.eq.s32.totalorder %v3229_v18, 0  ;;  %vm3389_vm10 = vcmp.eq.s32.totalorder %v3229_v18, 7 }
 0x48c   : > { %v3614_v17 = vmax.f32 %v3582_v58, 0.0  ;;  %v3355_v56 = vsel %vm3259_vm6, 0.0, %v3334_v46  ;;  %v3420_v47 = vrot.slane %v3164_v10, 1 }
 0x48d   : > { %v3515_v33 = vadd.f32 %v3355_v56, %v3073_v15 }
 0x48e   : > { %3646 = vst [vmem:[#allocation2 + $0x48] sm:$0xff] %v3614_v17  ;;  %v3461_v20 = vsel %vm1928_vm1, %v3419_v31, %v3420_v47 }
 0x48f   : > { %v3483_v21 = vsel %vm3387_vm7, 0.0, %v3461_v20 }
 0x490   : > { %v3547_v55 = vadd.f32 %v3515_v33, %v3483_v21  ;;  %v2986_v8 = vpop.f32.mrf.mxu3 }
 0x491   : > { %v3292_v25 = vrot.slane %v2986_v8, 7 }
 0x492   : > { %v3583_v9 = vadd.f32 %v7146_v23, %v3547_v55  ;;  %v3078_v19 = vpop.f32.mrf.mxu0 }
 0x493   : > { %v3333_v15 = vsel %vm1671_vm2, %v3291_v40, %v3292_v25  ;;  %v3167_v48 = vpop.f32.mrf.mxu1 }
 0x494   : > { %v3615_v52 = vmax.f32 %v3583_v9, 0.0  ;;  %v3356_v12 = vsel %vm3260_vm8, 0.0, %v3333_v15  ;;  %v3421_v3 = vrot.slane %v3167_v48, 1  ;;  %v2820_v48 = vpack.c.bf16 %v7112_v42, %v7106_v32 }
 0x495   : > { %v3516_v31 = vadd.f32 %v3356_v12, %v3075_v37  ;;  %5334 = vmatmul.msk.bf16.gmra.mxu3 %vm2901_vm13, %v2819_v2  ;;  %5350 = vmatmul.msk.bf16.gmra.mxu0 %vm2901_vm13, %v2819_v2  ;;  %v3677_v12 = vld [vmem:[#allocation2 + $0x40] ss:$2 sm:$0xff] }
 0x496   : > { %3647 = vst [vmem:[#allocation2 + $0x50] sm:$0xff] %v3615_v52  ;;  %v3460_v41 = vsel %vm1928_vm1, %v3420_v47, %v3421_v3  ;;  %5366 = vmatmul.msk.bf16.gmra.mxu1 %vm2901_vm13, %v2819_v2  ;;  %v3230_v47 = vand.u32 7, %v6299_v60 }
 0x497   : > { %v3484_v13 = vsel %vm3388_vm0, 0.0, %v3460_v41 }
 0x498   : > { %v3548_v63 = vadd.f32 %v3516_v31, %v3484_v13  ;;  %v2989_v40 = vpop.f32.mrf.mxu3  ;;  %vm3262_vm11 = vcmp.eq.s32.totalorder %v3230_v47, 0  ;;  %v3704_v31 = vld [vmem:[#allocation2 + $0x41] ss:$2 sm:$0xff]  ;;  %vm3390_vm12 = vcmp.eq.s32.totalorder %v3230_v47, 7 }
 0x499   : > { %v3293_v58 = vrot.slane %v2989_v40, 7  ;;  %v7261_v42 = vmax.f32 %v3677_v12, %v3704_v31 }
 0x49a   : > { %v3584_v46 = vadd.f32 %v7146_v23, %v3548_v63  ;;  %v3080_v37 = vpop.f32.mrf.mxu0  ;;  %v3231_v63 = vand.u32 7, %v6304_v5 }
 0x49b   : > { %v3332_v10 = vsel %vm1671_vm2, %v3292_v25, %v3293_v58  ;;  %v3169_v17 = vpop.f32.mrf.mxu1 }
 0x49c   : > { %v3616_v56 = vmax.f32 %v3584_v46, 0.0  ;;  %v3357_v33 = vsel %vm3261_vm9, 0.0, %v3332_v10  ;;  %v3422_v4 = vrot.slane %v3169_v17, 1  ;;  %vm3263_vm14 = vcmp.eq.s32.totalorder %v3231_v63, 0 }
 0x49d   : > { %v3517_v20 = vadd.f32 %v3357_v33, %v3078_v19  ;;  %vm3391_vm15 = vcmp.eq.s32.totalorder %v3231_v63, 7 }
 0x49e   : > { %3648 = vst [vmem:[#allocation2 + $0x58] sm:$0xff] %v3616_v56  ;;  %v3459_v21 = vsel %vm1928_vm1, %v3421_v3, %v3422_v4 }
 0x49f   : > { %v3485_v55 = vsel %vm3389_vm10, 0.0, %v3459_v21 }
 0x4a0   : > { %v3549_v8 = vadd.f32 %v3517_v20, %v3485_v55  ;;  %v2991_v9 = vpop.f32.mrf.mxu3 }
 0x4a1   : > { %v3294_v2 = vrot.slane %v2991_v9, 7 }
 0x4a2   : > { %v3585_v15 = vadd.f32 %v7146_v23, %v3549_v8  ;;  %v3083_v25 = vpop.f32.mrf.mxu0 }
 0x4a3   : > { %v3331_v19 = vsel %vm1671_vm2, %v3293_v58, %v3294_v2  ;;  %v3172_v52 = vpop.f32.mrf.mxu1 }
 0x4a4   : > { %v3617_v18 = vmax.f32 %v3585_v15, 0.0  ;;  %v3358_v41 = vsel %vm3262_vm11, 0.0, %v3331_v19  ;;  %v3423_v3 = vrot.slane %v3172_v52, 1  ;;  %v5625_v52 = vld [vmem:[%s8093_s11 + $0x18] sm:$0xff] }
 0x4a5   : > { %v3518_v13 = vadd.f32 %v3358_v41, %v3080_v37  ;;  %5335 = vmatmul.msk.bf16.gmra.mxu3 %vm2901_vm13, %v2820_v48  ;;  %5351 = vmatmul.msk.bf16.gmra.mxu0 %vm2901_vm13, %v2820_v48  ;;  %v3679_v40 = vld [vmem:[#allocation2 + $0x50] ss:$2 sm:$0xff]  ;;  %v3705_v46 = vld [vmem:[#allocation2 + $0x51] ss:$2 sm:$0xff] }
 0x4a6   : > { %3649 = vst [vmem:[#allocation2 + $0x60] sm:$0xff] %v3617_v18  ;;  %v3458_v32 = vsel %vm1928_vm1, %v3422_v4, %v3423_v3  ;;  %5367 = vmatmul.msk.bf16.gmra.mxu1 %vm2901_vm13, %v2820_v48  ;;  %v7263_v58 = vmax.f32 %v3679_v40, %v3705_v46  ;;  %v3232_v48 = vand.u32 7, %v6331_v54  ;;  %3856 = vmatpush.bf16.msrb.mxu2 %v5625_v52 }
 0x4a7   : > { %v3486_v10 = vsel %vm3390_vm12, 0.0, %v3458_v32  ;;  %v3233_v32 = vand.u32 7, %v6336_v1 }
 0x4a8   : > { %v3550_v37 = vadd.f32 %v3518_v13, %v3486_v10  ;;  %v2994_v17 = vpop.f32.mrf.mxu3  ;;  %v5803_v56 = vpack.i.bf16 %v7263_v58, %v7261_v42  ;;  %vm3264_vm3 = vcmp.eq.s32.totalorder %v3232_v48, 0  ;;  %vm3392_vm4 = vcmp.eq.s32.totalorder %v3232_v48, 7 }
 0x4a9   : > { %v3295_v33 = vrot.slane %v2994_v17, 7  ;;  %vm3265_vm5 = vcmp.eq.s32.totalorder %v3233_v32, 0  ;;  %vm3393_vm6 = vcmp.eq.s32.totalorder %v3233_v32, 7 }
 0x4aa   : > { %v3586_v20 = vadd.f32 %v7146_v23, %v3550_v37  ;;  %5804 = vrot.lane.b32.xlu0 %v5803_v56, %s5928_s30  ;;  %v3085_v47 = vpop.f32.mrf.mxu0 }
 0x4ab   : > { %v3330_v4 = vsel %vm1671_vm2, %v3294_v2, %v3295_v33  ;;  %v3174_v21 = vpop.f32.mrf.mxu1 }
 0x4ac   : > { %v3618_v55 = vmax.f32 %v3586_v20, 0.0  ;;  %v3359_v8 = vsel %vm3263_vm14, 0.0, %v3330_v4  ;;  %v3424_v9 = vrot.slane %v3174_v21, 1 }
 0x4ad   : > { %v3519_v15 = vadd.f32 %v3359_v8, %v3083_v25 }
 0x4ae   : > { %3650 = vst [vmem:[#allocation2 + $0x68] sm:$0xff] %v3618_v55  ;;  %v3457_v19 = vsel %vm1928_vm1, %v3423_v3, %v3424_v9 }
 0x4af   : > { %v3487_v12 = vsel %vm3391_vm15, 0.0, %v3457_v19  ;;  %v3234_v19 = vand.u32 7, %v6353_v45 }
 0x4b0   : > { %v3551_v31 = vadd.f32 %v3519_v15, %v3487_v12  ;;  %v2996_v18 = vpop.f32.mrf.mxu3 }
 0x4b1   : > { %v3296_v2 = vrot.slane %v2996_v18, 7  ;;  %vm3266_vm7 = vcmp.eq.s32.totalorder %v3234_v19, 0  ;;  %vm3394_vm8 = vcmp.eq.s32.totalorder %v3234_v19, 7 }
 0x4b2   : > { %v3587_v41 = vadd.f32 %v7146_v23, %v3551_v31  ;;  %v3088_v13 = vpop.f32.mrf.mxu0 }
 0x4b3   : > { %v3329_v25 = vsel %vm1671_vm2, %v3295_v33, %v3296_v2  ;;  %v3177_v63 = vpop.f32.mrf.mxu1 }
 0x4b4   : > { %v3619_v40 = vmax.f32 %v3587_v41, 0.0  ;;  %v3360_v46 = vsel %vm3264_vm3, 0.0, %v3329_v25  ;;  %v3425_v3 = vrot.slane %v3177_v63, 1 }
 0x4b5   : > { %v3520_v10 = vadd.f32 %v3360_v46, %v3085_v47  ;;  %v3235_v46 = vand.u32 7, %v6360_v50 }
 0x4b6   : > { %3651 = vst [vmem:[#allocation2 + $0x70] sm:$0xff] %v3619_v40  ;;  %v3456_v37 = vsel %vm1928_vm1, %v3424_v9, %v3425_v3 }
 0x4b7   : > { %v3488_v17 = vsel %vm3392_vm4, 0.0, %v3456_v37  ;;  %vm3267_vm0 = vcmp.eq.s32.totalorder %v3235_v46, 0  ;;  %vm3395_vm9 = vcmp.eq.s32.totalorder %v3235_v46, 7 }
 0x4b8   : > { %v3552_v56 = vadd.f32 %v3520_v10, %v3488_v17  ;;  %v2999_v20 = vpop.f32.mrf.mxu3 }
 0x4b9   : > { %v3297_v4 = vrot.slane %v2999_v20, 7 }
 0x4ba   : > { %v3588_v21 = vadd.f32 %v7146_v23, %v3552_v56  ;;  %v3090_v33 = vpop.f32.mrf.mxu0 }
 0x4bb   : > { %v3328_v55 = vsel %vm1671_vm2, %v3296_v2, %v3297_v4  ;;  %v3179_v8 = vpop.f32.mrf.mxu1 }
 0x4bc   : > { %v3620_v15 = vmax.f32 %v3588_v21, 0.0  ;;  %v3361_v48 = vsel %vm3265_vm5, 0.0, %v3328_v55  ;;  %v3426_v1 = vrot.slane %v3179_v8, 1 }
 0x4bd   : > { %v3521_v47 = vadd.f32 %v3361_v48, %v3088_v13  ;;  %v3236_v48 = vand.u32 7, %v6397_v51 }
 0x4be   : > { %3652 = vst [vmem:[#allocation2 + $0x78] sm:$0xff] %v3620_v15  ;;  %v3455_v9 = vsel %vm1928_vm1, %v3425_v3, %v3426_v1 }
 0x4bf   : > { %v3489_v52 = vsel %vm3393_vm6, 0.0, %v3455_v9  ;;  %vm3268_vm10 = vcmp.eq.s32.totalorder %v3236_v48, 0  ;;  %vm3396_vm11 = vcmp.eq.s32.totalorder %v3236_v48, 7 }
 0x4c0   : > { %v3553_v12 = vadd.f32 %v3521_v47, %v3489_v52  ;;  %v3001_v31 = vpop.f32.mrf.mxu3 }
 0x4c1   : > { %v3298_v18 = vrot.slane %v3001_v31, 7 }
 0x4c2   : > { %v3589_v41 = vadd.f32 %v7146_v23, %v3553_v12  ;;  %v3093_v2 = vpop.f32.mrf.mxu0 }
 0x4c3   : > { %v3327_v25 = vsel %vm1671_vm2, %v3297_v4, %v3298_v18  ;;  %v3182_v63 = vpop.f32.mrf.mxu1 }
 0x4c4   : > { %v3621_v40 = vmax.f32 %v3589_v41, 0.0  ;;  %v3362_v13 = vsel %vm3266_vm7, 0.0, %v3327_v25  ;;  %v3427_v45 = vrot.slane %v3182_v63, 1  ;;  %v3237_v63 = vand.u32 7, %v6407_v7 }
 0x4c5   : > { %v3522_v32 = vadd.f32 %v3362_v13, %v3090_v33 }
 0x4c6   : > { %3653 = vst [vmem:[#allocation2 + $0x80] sm:$0xff] %v3621_v40  ;;  %v3454_v3 = vsel %vm1928_vm1, %v3426_v1, %v3427_v45  ;;  %vm3269_vm12 = vcmp.eq.s32.totalorder %v3237_v63, 0  ;;  %vm3397_vm14 = vcmp.eq.s32.totalorder %v3237_v63, 7 }
 0x4c7   : > { %v3490_v10 = vsel %vm3394_vm8, 0.0, %v3454_v3 }
 0x4c8   : > { %v3554_v37 = vadd.f32 %v3522_v32, %v3490_v10  ;;  %v3004_v17 = vpop.f32.mrf.mxu3 }
 0x4c9   : > { %v3299_v56 = vrot.slane %v3004_v17, 7 }
 0x4ca   : > { %v3590_v20 = vadd.f32 %v7146_v23, %v3554_v37  ;;  %v3095_v4 = vpop.f32.mrf.mxu0 }
 0x4cb   : > { %v3326_v21 = vsel %vm1671_vm2, %v3298_v18, %v3299_v56  ;;  %v3184_v55 = vpop.f32.mrf.mxu1 }
 0x4cc   : > { %v3622_v8 = vmax.f32 %v3590_v20, 0.0  ;;  %v3363_v15 = vsel %vm3267_vm0, 0.0, %v3326_v21  ;;  %v3428_v50 = vrot.slane %v3184_v55, 1  ;;  %v3238_v55 = vand.u32 7, %v6434_v53 }
 0x4cd   : > { %v3523_v33 = vadd.f32 %v3363_v15, %v3093_v2 }
 0x4ce   : > { %3654 = vst [vmem:[#allocation2 + $0x88] sm:$0xff] %v3622_v8  ;;  %v3453_v1 = vsel %vm1928_vm1, %v3427_v45, %v3428_v50  ;;  %vm3270_vm15 = vcmp.eq.s32.totalorder %v3238_v55, 0  ;;  %vm3398_vm3 = vcmp.eq.s32.totalorder %v3238_v55, 7  ;;  %v3240_v55 = vand.u32 7, %v6469_v14 }
 0x4cf   : > { %v3491_v47 = vsel %vm3395_vm9, 0.0, %v3453_v1 }
 0x4d0   : > { %v3555_v19 = vadd.f32 %v3523_v33, %v3491_v47  ;;  %v3006_v9 = vpop.f32.mrf.mxu3  ;;  %vm3272_vm6 = vcmp.eq.s32.totalorder %v3240_v55, 0  ;;  %vm3400_vm7 = vcmp.eq.s32.totalorder %v3240_v55, 7 }
 0x4d1   : > { %v3300_v52 = vrot.slane %v3006_v9, 7 }
 0x4d2   : > { %v3591_v12 = vadd.f32 %v7146_v23, %v3555_v19  ;;  %v3098_v31 = vpop.f32.mrf.mxu0 }
 0x4d3   : > { %v3325_v18 = vsel %vm1671_vm2, %v3299_v56, %v3300_v52  ;;  %v3187_v41 = vpop.f32.mrf.mxu1 }
 0x4d4   : > { %v3623_v25 = vmax.f32 %v3591_v12, 0.0  ;;  %v3364_v2 = vsel %vm3268_vm10, 0.0, %v3325_v18  ;;  %v3429_v51 = vrot.slane %v3187_v41, 1  ;;  %v3239_v41 = vand.u32 7, %v6441_v49 }
 0x4d5   : > { %v3524_v40 = vadd.f32 %v3364_v2, %v3095_v4  ;;  %v3708_v12 = vld [vmem:[#allocation2 + $0x81] ss:$2 sm:$0xff] }
 0x4d6   : > { %3655 = vst [vmem:[#allocation2 + $0x90] sm:$0xff] %v3623_v25  ;;  %v3452_v13 = vsel %vm1928_vm1, %v3428_v50, %v3429_v51  ;;  %vm3271_vm4 = vcmp.eq.s32.totalorder %v3239_v41, 0  ;;  %vm3399_vm5 = vcmp.eq.s32.totalorder %v3239_v41, 7 }
 0x4d7   : > { %v3492_v45 = vsel %vm3396_vm11, 0.0, %v3452_v13 }
 0x4d8   : > { %v3556_v46 = vadd.f32 %v3524_v40, %v3492_v45  ;;  %v3009_v32 = vpop.f32.mrf.mxu3 }
 0x4d9   : > { %v3301_v3 = vrot.slane %v3009_v32, 7 }
 0x4da   : > { %v3592_v10 = vadd.f32 %v7146_v23, %v3556_v46  ;;  %v3100_v37 = vpop.f32.mrf.mxu0 }
 0x4db   : > { %v3324_v17 = vsel %vm1671_vm2, %v3300_v52, %v3301_v3  ;;  %v3189_v56 = vpop.f32.mrf.mxu1  ;;  %v3685_v52 = vld [vmem:[#allocation2 + $0x80] ss:$2 sm:$0xff] }
 0x4dc   : > { %v3624_v20 = vmax.f32 %v3592_v10, 0.0  ;;  %v3365_v21 = vsel %vm3269_vm12, 0.0, %v3324_v17  ;;  %v3430_v7 = vrot.slane %v3189_v56, 1  ;;  %v7319_v40 = vmax.f32 %v3685_v52, %v3708_v12 }
 0x4dd   : > { %v3525_v4 = vadd.f32 %v3365_v21, %v3098_v31 }
 0x4de   : > { %3656 = vst [vmem:[#allocation2 + $0x98] sm:$0xff] %v3624_v20  ;;  %v3451_v8 = vsel %vm1928_vm1, %v3429_v51, %v3430_v7 }
 0x4df   : > { %v3493_v15 = vsel %vm3397_vm14, 0.0, %v3451_v8 }
 0x4e0   : > { %v3557_v50 = vadd.f32 %v3525_v4, %v3493_v15  ;;  %v3011_v33 = vpop.f32.mrf.mxu3  ;;  %v5624_v15 = vld [vmem:[%s8093_s11 + $0x10] sm:$0xff] }
 0x4e1   : > { %v3302_v48 = vrot.slane %v3011_v33, 7  ;;  %3857 = vmatpush.bf16.msrb.mxu2 %v5624_v15 }
 0x4e2   : > { %v3593_v1 = vadd.f32 %v7146_v23, %v3557_v50  ;;  %v3103_v47 = vpop.f32.mrf.mxu0 }
 0x4e3   : > { %v3323_v19 = vsel %vm1671_vm2, %v3301_v3, %v3302_v48  ;;  %v3192_v9 = vpop.f32.mrf.mxu1 }
 0x4e4   : > { %v3625_v31 = vmax.f32 %v3593_v1, 0.0  ;;  %v3366_v53 = vsel %vm3270_vm15, 0.0, %v3323_v19  ;;  %v3431_v18 = vrot.slane %v3192_v9, 1 }
 0x4e5   : > { %v3526_v25 = vadd.f32 %v3366_v53, %v3100_v37  ;;  %v3687_v2 = vld [vmem:[#allocation2 + $0x90] ss:$2 sm:$0xff]  ;;  %v3709_v51 = vld [vmem:[#allocation2 + $0x91] ss:$2 sm:$0xff]  ;;  %v3241_v53 = vand.u32 7, %v6474_v34 }
 0x4e6   : > { %3657 = vst [vmem:[#allocation2 + $0xa0] sm:$0xff] %v3625_v31  ;;  %v3450_v63 = vsel %vm1928_vm1, %v3430_v7, %v3431_v18  ;;  %v7321_v13 = vmax.f32 %v3687_v2, %v3709_v51 }
 0x4e7   : > { %v3494_v45 = vsel %vm3398_vm3, 0.0, %v3450_v63  ;;  %vm3273_vm8 = vcmp.eq.s32.totalorder %v3241_v53, 0  ;;  %vm3401_vm0 = vcmp.eq.s32.totalorder %v3241_v53, 7 }
 0x4e8   : > { %v3558_v46 = vadd.f32 %v3526_v25, %v3494_v45  ;;  %v3014_v32 = vpop.f32.mrf.mxu3  ;;  %v5813_v3 = vpack.i.bf16 %v7321_v13, %v7319_v40 }
 0x4e9   : > { %v3303_v10 = vrot.slane %v3014_v32, 7 }
 0x4ea   : > { %v3594_v49 = vadd.f32 %v7146_v23, %v3558_v46  ;;  %5814 = vrot.lane.b32.xlu2 %v5813_v3, %s5928_s30  ;;  %v3105_v37 = vpop.f32.mrf.mxu0 }
 0x4eb   : > { %v3322_v17 = vsel %vm1671_vm2, %v3302_v48, %v3303_v10  ;;  %v3194_v56 = vpop.f32.mrf.mxu1 }
 0x4ec   : > { %v3626_v20 = vmax.f32 %v3594_v49, 0.0  ;;  %v3367_v21 = vsel %vm3271_vm4, 0.0, %v3322_v17  ;;  %v3432_v7 = vrot.slane %v3194_v56, 1  ;;  %v3242_v17 = vand.u32 7, %v6491_v36 }
 0x4ed   : > { %v3527_v4 = vadd.f32 %v3367_v21, %v3103_v47 }
 0x4ee   : > { %3658 = vst [vmem:[#allocation2 + $0xa8] sm:$0xff] %v3626_v20  ;;  %v3449_v8 = vsel %vm1928_vm1, %v3431_v18, %v3432_v7  ;;  %vm3274_vm9 = vcmp.eq.s32.totalorder %v3242_v17, 0  ;;  %vm3402_vm10 = vcmp.eq.s32.totalorder %v3242_v17, 7 }
 0x4ef   : > { %v3495_v50 = vsel %vm3399_vm5, 0.0, %v3449_v8 }
 0x4f0   : > { %v3559_v33 = vadd.f32 %v3527_v4, %v3495_v50  ;;  %v3016_v1 = vpop.f32.mrf.mxu3 }
 0x4f1   : > { %v3304_v48 = vrot.slane %v3016_v1, 7 }
 0x4f2   : > { %v3595_v19 = vadd.f32 %v7146_v23, %v3559_v33  ;;  %v3108_v9 = vpop.f32.mrf.mxu0 }
 0x4f3   : > { %v3321_v14 = vsel %vm1671_vm2, %v3303_v10, %v3304_v48  ;;  %v3197_v47 = vpop.f32.mrf.mxu1 }
 0x4f4   : > { %v3627_v52 = vmax.f32 %v3595_v19, 0.0  ;;  %v3368_v12 = vsel %vm3272_vm6, 0.0, %v3321_v14  ;;  %v3433_v31 = vrot.slane %v3197_v47, 1 }
 0x4f5   : > { %v3528_v18 = vadd.f32 %v3368_v12, %v3105_v37  ;;  %v3689_v33 = vld [vmem:[#allocation2 + $0xa0] ss:$2 sm:$0xff]  ;;  %v3710_v1 = vld [vmem:[#allocation2 + $0xa1] ss:$2 sm:$0xff] }
 0x4f6   : > { %3659 = vst [vmem:[#allocation2 + $0xb0] sm:$0xff] %v3627_v52  ;;  %v3448_v41 = vsel %vm1928_vm1, %v3432_v7, %v3433_v31 }
 0x4f7   : > { %v3496_v25 = vsel %vm3400_vm7, 0.0, %v3448_v41 }
 0x4f8   : > { %v3560_v2 = vadd.f32 %v3528_v18, %v3496_v25  ;;  %v3019_v51 = vpop.f32.mrf.mxu3 }
 0x4f9   : > { %v3305_v63 = vrot.slane %v3019_v51, 7 }
 0x4fa   : > { %v3596_v45 = vadd.f32 %v7146_v23, %v3560_v2  ;;  %v3110_v46 = vpop.f32.mrf.mxu0 }
 0x4fb   : > { %v3320_v32 = vsel %vm1671_vm2, %v3304_v48, %v3305_v63  ;;  %v3199_v3 = vpop.f32.mrf.mxu1 }
 0x4fc   : > { %v3628_v10 = vmax.f32 %v3596_v45, 0.0  ;;  %v3369_v49 = vsel %vm3273_vm8, 0.0, %v3320_v32  ;;  %v3434_v34 = vrot.slane %v3199_v3, 1 }
 0x4fd   : > { %v3529_v37 = vadd.f32 %v3369_v49, %v3108_v9  ;;  %v3243_v9 = vand.u32 7, %v6498_v59 }
 0x4fe   : > { %3660 = vst [vmem:[#allocation2 + $0xb8] sm:$0xff] %v3628_v10  ;;  %v3447_v56 = vsel %vm1928_vm1, %v3433_v31, %v3434_v34  ;;  %v7353_v31 = vmax.f32 %v3689_v33, %v3710_v1  ;;  %v8144_v1 = vld [vmem:[#allocation11_spill] sm:$0xff] }
 0x4ff   : > { %v3497_v20 = vsel %vm3401_vm0, 0.0, %v3447_v56  ;;  %vm3275_vm11 = vcmp.eq.s32.totalorder %v3243_v9, 0  ;;  %vm3403_vm12 = vcmp.eq.s32.totalorder %v3243_v9, 7 }
 0x500   : > { %v3561_v21 = vadd.f32 %v3529_v37, %v3497_v20  ;;  %v3021_v7 = vpop.f32.mrf.mxu3 }
 0x501   : > { %v3306_v4 = vrot.slane %v3021_v7, 7 }
 0x502   : > { %v3597_v55 = vadd.f32 %v7146_v23, %v3561_v21  ;;  %v3113_v8 = vpop.f32.mrf.mxu0 }
 0x503   : > { %v3319_v15 = vsel %vm1671_vm2, %v3305_v63, %v3306_v4  ;;  %v3202_v50 = vpop.f32.mrf.mxu1 }
 0x504   : > { %v3629_v48 = vmax.f32 %v3597_v55, 0.0  ;;  %v3370_v36 = vsel %vm3274_vm9, 0.0, %v3319_v15  ;;  %v3435_v19 = vrot.slane %v3202_v50, 1 }
 0x505   : > { %v3530_v14 = vadd.f32 %v3370_v36, %v3110_v46  ;;  %v3691_v47 = vld [vmem:[#allocation2 + $0xb0] ss:$2 sm:$0xff]  ;;  %v3711_v52 = vld [vmem:[#allocation2 + $0xb1] ss:$2 sm:$0xff] }
 0x506   : > { %3661 = vst [vmem:[#allocation2 + $0xc0] sm:$0xff] %v3629_v48  ;;  %v3446_v12 = vsel %vm1928_vm1, %v3434_v34, %v3435_v19  ;;  %v7355_v53 = vmax.f32 %v3691_v47, %v3711_v52  ;;  %v8143_v34 = vld [vmem:[#allocation10_spill] sm:$0xff]  ;;  %v3245_v48 = vand.u32 7, %v8144_v1 }
 0x507   : > { %v3498_v18 = vsel %vm3402_vm10, 0.0, %v3446_v12  ;;  %v3244_v37 = vand.u32 7, %v8143_v34  ;;  %v7375_v12 = vld [vmem:[%s8087_s5] ss:$0 sm:$0xff] }
 0x508   : > { %v3562_v41 = vadd.f32 %v3530_v14, %v3498_v18  ;;  %v3024_v25 = vpop.f32.mrf.mxu3  ;;  %v5818_v2 = vpack.i.bf16 %v7355_v53, %v7353_v31  ;;  %vm3277_vm3 = vcmp.eq.s32.totalorder %v3245_v48, 0  ;;  %vm3405_vm4 = vcmp.eq.s32.totalorder %v3245_v48, 7 }
 0x509   : > { %v3307_v51 = vrot.slane %v3024_v25, 7  ;;  %vm3276_vm14 = vcmp.eq.s32.totalorder %v3244_v37, 0  ;;  %vm3404_vm15 = vcmp.eq.s32.totalorder %v3244_v37, 7 }
 0x50a   : > { %v3598_v59 = vadd.f32 %v7146_v23, %v3562_v41  ;;  %5819 = vrot.lane.b32.xlu0 %v5818_v2, %s5928_s30  ;;  %v3115_v3 = vpop.f32.mrf.mxu0 }
 0x50b   : > { %v3318_v63 = vsel %vm1671_vm2, %v3306_v4, %v3307_v51  ;;  %v3204_v45 = vpop.f32.mrf.mxu1 }
 0x50c   : > { %v3630_v46 = vmax.f32 %v3598_v59, 0.0  ;;  %v3371_v32 = vsel %vm3275_vm11, 0.0, %v3318_v63  ;;  %v3436_v10 = vrot.slane %v3204_v45, 1  ;;  %v8145_v45 = vld [vmem:[#allocation12_spill] sm:$0xff] }
 0x50d   : > { %v3531_v49 = vadd.f32 %v3371_v32, %v3113_v8 }
 0x50e   : > { %3662 = vst [vmem:[#allocation2 + $0xc8] sm:$0xff] %v3630_v46  ;;  %v3445_v17 = vsel %vm1928_vm1, %v3435_v19, %v3436_v10  ;;  %v3246_v46 = vand.u32 7, %v8145_v45 }
 0x50f   : > { %v3499_v56 = vsel %vm3403_vm12, 0.0, %v3445_v17 }
 0x510   : > { %v3563_v20 = vadd.f32 %v3531_v49, %v3499_v56  ;;  %v3026_v21 = vpop.f32.mrf.mxu3  ;;  %vm3278_vm5 = vcmp.eq.s32.totalorder %v3246_v46, 0  ;;  %vm3406_vm6 = vcmp.eq.s32.totalorder %v3246_v46, 7  ;;  %v8147_v46 = vld [vmem:[#allocation14_spill] sm:$0xff] }
 0x511   : > { %v3308_v7 = vrot.slane %v3026_v21, 7 }
 0x512   : > { %v3599_v4 = vadd.f32 %v7146_v23, %v3563_v20  ;;  %v3118_v19 = vpop.f32.mrf.mxu0 }
 0x513   : > { %v3317_v55 = vsel %vm1671_vm2, %v3307_v51, %v3308_v7  ;;  %v3207_v15 = vpop.f32.mrf.mxu1 }
 0x514   : > { %v3631_v50 = vmax.f32 %v3599_v4, 0.0  ;;  %v3372_v33 = vsel %vm3276_vm14, 0.0, %v3317_v55  ;;  %v3437_v8 = vrot.slane %v3207_v15, 1  ;;  %v8146_v15 = vld [vmem:[#allocation13_spill] sm:$0xff] }
 0x515   : > { %v3532_v36 = vadd.f32 %v3372_v33, %v3115_v3  ;;  %v5623_v3 = vld [vmem:[%s8093_s11 + $0x8] sm:$0xff] }
 0x516   : > { %3663 = vst [vmem:[#allocation2 + $0xd0] sm:$0xff] %v3631_v50  ;;  %v3444_v9 = vsel %vm1928_vm1, %v3436_v10, %v3437_v8  ;;  %3858 = vmatpush.bf16.msrb.mxu2 %v5623_v3  ;;  %v3247_v50 = vand.u32 7, %v8146_v15 }
 0x517   : > { %v3500_v14 = vsel %vm3404_vm15, 0.0, %v3444_v9 }
 0x518   : > { %v3564_v47 = vadd.f32 %v3532_v36, %v3500_v14  ;;  %v3029_v52 = vpop.f32.mrf.mxu3  ;;  %vm3279_vm7 = vcmp.eq.s32.totalorder %v3247_v50, 0  ;;  %vm3407_vm8 = vcmp.eq.s32.totalorder %v3247_v50, 7 }
 0x519   : > { %v3309_v23 = vrot.slane %v3029_v52, 7  ;;  %v5640_v52 = vld [vmem:[%s8088_s6 + $0x50] sm:$0xf0] }
 0x51a   : > { %v3600_v18 = vadd.f32 %v7375_v12, %v3564_v47  ;;  %v3120_v49 = vpop.f32.mrf.mxu0  ;;  %v5438_v47 = vld [vmem:[%s8088_s6 + $0x48] sm:$0xf] }
 0x51b   : > { %v3316_v41 = vsel %vm1671_vm2, %v3308_v7, %v3309_v23  ;;  %v3209_v25 = vpop.f32.mrf.mxu1 }
 0x51c   : > { %v3632_v2 = vmax.f32 %v3600_v18, 0.0  ;;  %v3373_v51 = vsel %vm3277_vm3, 0.0, %v3316_v41  ;;  %v3438_v59 = vrot.slane %v3209_v25, 1  ;;  %v5439_v41 = vor.u32 %v5640_v52, %v5438_v47  ;;  %v3671_v47 = vld [vmem:[#allocation2 + $0x10] ss:$2 sm:$0xff] }
 0x51d   : > { %v3533_v63 = vadd.f32 %v3373_v51, %v3118_v19  ;;  %v3701_v52 = vld [vmem:[#allocation2 + $0x11] ss:$2 sm:$0xff] }
 0x51e   : > { %3664 = vst [vmem:[#allocation2 + $0xd8] sm:$0xff] %v3632_v2  ;;  %v3443_v32 = vsel %vm1928_vm1, %v3437_v8, %v3438_v59  ;;  %4017 = vmatpush.bf16.msra.mxu3 %v5439_v41 }
 0x51f   : > { %v3501_v10 = vsel %vm3405_vm4, 0.0, %v3443_v32  ;;  %v3248_v32 = vand.u32 7, %v8147_v46  ;;  %v3683_v46 = vld [vmem:[#allocation2 + $0x70] ss:$2 sm:$0xff] }
 0x520   : > { %v3565_v34 = vadd.f32 %v3533_v63, %v3501_v10  ;;  %v3031_v37 = vpop.f32.mrf.mxu3  ;;  %v3217_v63 = vand.u32 7, %v6143_v26 }
 0x521   : > { %v3310_v17 = vrot.slane %v3031_v37, 7  ;;  %vm3280_vm9 = vcmp.eq.s32.totalorder %v3248_v32, 0  ;;  %vm3408_vm11 = vcmp.eq.s32.totalorder %v3248_v32, 7  ;;  %v3707_v32 = vld [vmem:[#allocation2 + $0x71] ss:$2 sm:$0xff] }
 0x522   : > { %v3601_v56 = vadd.f32 %v7375_v12, %v3565_v34  ;;  %v3123_v9 = vpop.f32.mrf.mxu0  ;;  %vm3249_vm0 = vcmp.eq.s32.totalorder %v3217_v63, 0  ;;  %vm3377_vm10 = vcmp.eq.s32.totalorder %v3217_v63, 7 }
 0x523   : > { %v3315_v20 = vsel %vm1671_vm2, %v3309_v23, %v3310_v17  ;;  %v3212_v21 = vpop.f32.mrf.mxu1 }
 0x524   : > { %v3633_v7 = vmax.f32 %v3601_v56, 0.0  ;;  %v3374_v4 = vsel %vm3278_vm5, 0.0, %v3315_v20  ;;  %v3439_v55 = vrot.slane %v3212_v21, 1  ;;  %v8149_v21 = vrot.slane %v7121_v43, 7 }
 0x525   : > { %v3534_v33 = vadd.f32 %v3374_v4, %v3120_v49 }
 0x526   : > { %3665 = vst [vmem:[#allocation2 + $0xe0] sm:$0xff] %v3633_v7  ;;  %v3442_v8 = vsel %vm1928_vm1, %v3438_v59, %v3439_v55 }
 0x527   : > { %v3502_v1 = vsel %vm3406_vm6, 0.0, %v3442_v8 }
 0x528   : > { %v3566_v48 = vadd.f32 %v3534_v33, %v3502_v1  ;;  %v3034_v36 = vpop.f32.mrf.mxu3 }
 0x529   : > { %v3311_v19 = vrot.slane %v3034_v36, 7 }
 0x52a   : > { %v3602_v14 = vadd.f32 %v7375_v12, %v3566_v48  ;;  %v3125_v4 = vpop.f32.mrf.mxu0 }
 0x52b   : > { %v3314_v23 = vsel %vm1671_vm2, %v3310_v17, %v3311_v19  ;;  %v3214_v18 = vpop.f32.mrf.mxu1  ;;  %v8148_v17 = vrot.slane %v7116_v22, 1  ;;  %v3473_v22 = vsel %vm3377_vm10, 0.0, %v7129_v24  ;;  %v3717_v24 = vmax.f32 %v3671_v47, %v3701_v52  ;;  %v5800_v52 = vpop.permute.xlu2 %5799 }
 0x52c   : > { %v3634_v25 = vmax.f32 %v3602_v14, 0.0  ;;  %v3375_v2 = vsel %vm3279_vm7, 0.0, %v3314_v23  ;;  %v3440_v51 = vrot.slane %v3214_v18, 1 }
 0x52d   : > { %v3535_v59 = vadd.f32 %v3375_v2, %v3123_v9 }
 0x52e   : > { %3666 = vst [vmem:[#allocation2 + $0xe8] sm:$0xff] %v3634_v25  ;;  %v3441_v45 = vsel %vm1928_vm1, %v3439_v55, %v3440_v51  ;;  %v3472_v56 = vsel %vm1928_vm1, %v3440_v51, %v8148_v17  ;;  %v3695_v17 = vld [vmem:[#allocation2 + $0xd0] ss:$2 sm:$0xff] }
 0x52f   : > { %v3503_v3 = vsel %vm3407_vm8, 0.0, %v3441_v45  ;;  %v3504_v1 = vsel %vm3408_vm11, 0.0, %v3472_v56  ;;  %v3713_v56 = vld [vmem:[#allocation2 + $0xd1] ss:$2 sm:$0xff] }
 0x530   : > { %v3567_v10 = vadd.f32 %v3535_v59, %v3503_v3  ;;  %v3036_v49 = vpop.f32.mrf.mxu3  ;;  %v3681_v3 = vld [vmem:[#allocation2 + $0x60] ss:$2 sm:$0xff] }
 0x531   : > { %v3312_v34 = vrot.slane %v3036_v49, 7  ;;  %v3723_v49 = vmax.f32 %v3683_v46, %v3707_v32 }
 0x532   : > { %v3603_v37 = vadd.f32 %v7375_v12, %v3567_v10  ;;  %v3706_v10 = vld [vmem:[#allocation2 + $0x61] ss:$2 sm:$0xff] }
 0x533   : > { %v3313_v20 = vsel %vm1671_vm2, %v3311_v19, %v3312_v34  ;;  %v3344_v7 = vsel %vm1671_vm2, %v3312_v34, %v8149_v21  ;;  %v3722_v34 = vmax.f32 %v3681_v3, %v3706_v10  ;;  %v3712_v21 = vld [vmem:[#allocation2 + $0xc1] ss:$2 sm:$0xff] }
 0x534   : > { %v3635_v55 = vmax.f32 %v3603_v37, 0.0  ;;  %v3345_v15 = vsel %vm3249_vm0, 0.0, %v3344_v7  ;;  %v3376_v50 = vsel %vm3280_vm9, 0.0, %v3313_v20  ;;  %v3693_v20 = vld [vmem:[#allocation2 + $0xc0] ss:$2 sm:$0xff]  ;;  %v7429_v7 = vmax.f32 %v3695_v17, %v3713_v56 }
 0x535   : > { %v3505_v33 = vadd.f32 %v3345_v15, %v7114_v11  ;;  %v3536_v8 = vadd.f32 %v3376_v50, %v3125_v4  ;;  %v3697_v23 = vld [vmem:[#allocation2 + $0xe0] ss:$2 sm:$0xff]  ;;  %v3714_v18 = vld [vmem:[#allocation2 + $0xe1] ss:$2 sm:$0xff]  ;;  %v5808_v37 = vpack.i.bf16 %v3723_v49, %v3722_v34  ;;  %v7431_v4 = vmax.f32 %v3693_v20, %v3712_v21  ;;  %v5426_v50 = vld [vmem:[%s8088_s6 + $0x30] sm:$0xf] }
 0x536   : > { %3667 = vst [vmem:[#allocation2 + $0xf0] sm:$0xff] %v3635_v55  ;;  %v7420_v59 = vmax.f32 %v3697_v23, %v3714_v18  ;;  %v5622_v15 = vld [vmem:[%s8093_s11] sm:$0xff]  ;;  %v5802_v23 = vunpack.i.h.bf16 %v5800_v52  ;;  %v5801_v18 = vunpack.i.l.bf16 %v5800_v52 }
 0x537   : > { %v3537_v48 = vadd.f32 %v3505_v33, %v3473_v22  ;;  %v3568_v36 = vadd.f32 %v3536_v8, %v3504_v1  ;;  %v5823_v55 = vpack.i.bf16 %v7429_v7, %v7431_v4  ;;  %v5637_v33 = vld [vmem:[%s8088_s6 + $0x38] sm:$0xf0]  ;;  %3859 = vmatpush.bf16.msrb.mxu2 %v5622_v15  ;;  %v5414_v22 = vld [vmem:[%s8088_s6 + $0x18] sm:$0xf]  ;;  %v5634_v1 = vld [vmem:[%s8088_s6 + $0x20] sm:$0xf0] }
 0x538   : > { %v5427_v8 = vor.u32 %v5637_v33, %v5426_v50 }
 0x539   : > { %v3573_v19 = vadd.f32 %v7375_v12, %v3537_v48  ;;  %v3604_v43 = vadd.f32 %v7375_v12, %v3568_v36  ;;  %v5415_v48 = vor.u32 %v5634_v1, %v5414_v22 }
 0x53a   : > { %4018 = vmatpush.bf16.msra.mxu3 %v5427_v8 }
 0x53b   : > { %v3605_v9 = vmax.f32 %v3573_v19, 0.0  ;;  %v3636_v14 = vmax.f32 %v3604_v43, 0.0 }
 0x53d   : > { %3637 = vst [vmem:[#allocation2] sm:$0xff] %v3605_v9 }
 0x53e   : > { %3668 = vst [vmem:[#allocation2 + $0xf8] sm:$0xff] %v3636_v14  ;;  %4019 = vmatpush.bf16.msra.mxu3 %v5415_v48 }
 0x544   : > { %v3669_v11 = vld [vmem:[#allocation2] ss:$2 sm:$0xff]  ;;  %v3700_v41 = vld [vmem:[#allocation2 + $0x1] ss:$2 sm:$0xff] }
 0x545   : > { %v3716_v25 = vmax.f32 %v3669_v11, %v3700_v41  ;;  %v3699_v2 = vld [vmem:[#allocation2 + $0xf0] ss:$2 sm:$0xff]  ;;  %v3715_v51 = vld [vmem:[#allocation2 + $0xf1] ss:$2 sm:$0xff]  ;;  %v3767_v11 = vmax.f32 %v7222_v61, %v5802_v23  ;;  %v3766_v41 = vmax.f32 %v7220_v28, %v5801_v18  ;;  %v5631_v61 = vld [vmem:[%s8088_s6 + $0x8] sm:$0xf0] }
 0x546   : > { %v7422_v63 = vmax.f32 %v3699_v2, %v3715_v51  ;;  %v5805_v51 = vpop.permute.xlu0 %5804  ;;  %v5633_v18 = vld [vmem:[%s8088_s6 + $0x1c] sm:$0xf] }
 0x547   : > { %v5793_v45 = vpack.i.bf16 %v3717_v24, %v3716_v25  ;;  %v3781_v2 = vpack.c.bf16 %v3767_v11, %v3766_v41 }
 0x548   : > { %v5828_v12 = vpack.i.bf16 %v7422_v63, %v7420_v59 }
 0x549   : > { %5794 = vrot.lane.b32.xlu1 %v5793_v45, %s5928_s30  ;;  %v5807_v45 = vunpack.i.h.bf16 %v5805_v51 }
 0x54a   : > { %5829 = vrot.lane.b32.xlu2 %v5828_v12, %s5928_s30  ;;  %v5806_v12 = vunpack.i.l.bf16 %v5805_v51  ;;  %v5404_v51 = vld [vmem:[%s8088_s6 + $0xc] sm:$0xf0] }
 0x54b   : > { %v3769_v46 = vmax.f32 %v7263_v58, %v5807_v45 }
 0x54c   : > { %v3768_v32 = vmax.f32 %v7261_v42, %v5806_v12  ;;  %v5815_v42 = vpop.permute.xlu2 %5814 }
 0x54d   : > { %v5817_v20 = vunpack.i.h.bf16 %v5815_v42  ;;  %v5816_v21 = vunpack.i.l.bf16 %v5815_v42 }
 0x54f   : > { %v3772_v15 = vmax.f32 %v7319_v40, %v5816_v21 }
 0x551   : > { %5809 = vrot.lane.b32.xlu1 %v5808_v37, %s5928_s30 }
 0x559   : > { %5824 = vrot.lane.b32.xlu1 %v5823_v55, %s5928_s30  ;;  %v3773_v55 = vmax.f32 %v7321_v13, %v5817_v20  ;;  %v5440_v13 = vld [vmem:[%s8088_s6 + $0x54] sm:$0xf0]  ;;  %s5003_s30 = sshll.u32 %s6092_s24, 2  ;;  %s4926_s24 = scalar_lea.hbm %s8099_s17, %s6045_s16 }
 0x55a   : > { %s564_s3 = scalar_lea.vmem %s8178_s18, %s5003_s30  ;;  %s554_s18 = sand.u32 1, %s5917_s27  }
 0x55b   : > { %v3784_v50 = vpack.c.bf16 %v3773_v55, %v3772_v15  ;;  %v5422_v55 = vld [vmem:[%s8088_s6 + $0x20] sm:$0xf]  ;;  %v5635_v15 = vld [vmem:[%s8088_s6 + $0x28] sm:$0xf0]  ;;  %s555_s25 = scalar_lea.vmem [#allocation4], %s554_s18  ;;  %s4930_s30 = sshll.u32 %s4926_s24, 4  ;;  %s4931_s30 = int_to_ptr.hbm [resolvable:$true] %s4930_s30 }
 0x55c   : > { %s4928_s22 = sshll.u32 %s555_s25, 4  ;;  %s4918_s1 = scalar_lea.sflag [#allocation5], %s554_s18  ;;  %s4929_s22 = int_to_ptr.vmem [resolvable:$true] %s4928_s22 }
 0x57c   : > { %v5820_v33 = vpop.permute.xlu0 %5819 }
 0x57d   : > { %v5822_v8 = vunpack.i.h.bf16 %v5820_v33  ;;  %v5821_v22 = vunpack.i.l.bf16 %v5820_v33 }
 0x57f   : > { %v3775_v1 = vmax.f32 %v7355_v53, %v5822_v8  ;;  %v3774_v48 = vmax.f32 %v7353_v31, %v5821_v22 }
 0x5a4   : > { %v5830_v23 = vpop.permute.xlu2 %5829 }
 0x5a5   : > { %v5832_v11 = vunpack.i.h.bf16 %v5830_v23  ;;  %v5831_v41 = vunpack.i.l.bf16 %v5830_v23 }
 0x5a7   : > { %v3779_v45 = vmax.f32 %v7422_v63, %v5832_v11  ;;  %v3778_v12 = vmax.f32 %v7420_v59, %v5831_v41  ;;  %v5434_v59 = vld [vmem:[%s8088_s6 + $0x38] sm:$0xf]  ;;  %v5638_v63 = vld [vmem:[%s8088_s6 + $0x40] sm:$0xf0] }
 0x5bb   : > { %v5795_v36 = vpop.permute.xlu1 %5794 }
 0x5bc   : > { %v5797_v19 = vunpack.i.h.bf16 %v5795_v36  ;;  %v5796_v43 = vunpack.i.l.bf16 %v5795_v36 }
 0x5be   : > { %v3765_v9 = vmax.f32 %v3717_v24, %v5797_v19  ;;  %v3764_v14 = vmax.f32 %v3716_v25, %v5796_v43  ;;  %v3782_v24 = vpack.c.bf16 %v3769_v46, %v3768_v32  ;;  %v5402_v25 = vld [vmem:[%s8088_s6] sm:$0xf]  ;;  %v3787_v32 = vpack.c.bf16 %v3779_v45, %v3778_v12 }
 0x5bf   : > { %v5403_v28 = vor.u32 %v5631_v61, %v5402_v25  ;;  %v5641_v25 = vld [vmem:[%s8088_s6 + $0x58] sm:$0xf0] }
 0x5c0   : > { %v3780_v47 = vpack.c.bf16 %v3765_v9, %v3764_v14  ;;  %v5636_v14 = vld [vmem:[%s8088_s6 + $0x34] sm:$0xf] }
 0x5c1   : > { %4020 = vmatpush.bf16.msra.mxu3 %v5403_v28 }
 0x5c2   : > { %3860 = vmatmul.bf16.vlgmr.msrb.gmra.mxu2 %v3780_v47  ;;  %v5428_v47 = vld [vmem:[%s8088_s6 + $0x3c] sm:$0xf0] }
 0x5c3   : > { %v5810_v3 = vpop.permute.xlu1 %5809  ;;  %v5431_v52 = vor.u32 %v5636_v14, %v5428_v47 }
 0x5c4   : > { %v5812_v10 = vunpack.i.h.bf16 %v5810_v3  ;;  %v5811_v37 = vunpack.i.l.bf16 %v5810_v3 }
 0x5c6   : > { %v3771_v17 = vmax.f32 %v3723_v49, %v5812_v10  ;;  %v3770_v56 = vmax.f32 %v3722_v34, %v5811_v37  ;;  %v3785_v49 = vpack.c.bf16 %v3775_v1, %v3774_v48  ;;  %v5639_v34 = vld [vmem:[%s8088_s6 + $0x4c] sm:$0xf]  ;;  %v5435_v37 = vor.u32 %v5638_v63, %v5434_v59 }
 0x5c7   : > { %v5443_v40 = vor.u32 %v5639_v34, %v5440_v13  ;;  %v5410_v34 = vld [vmem:[%s8088_s6 + $0x8] sm:$0xf]  ;;  %v5632_v13 = vld [vmem:[%s8088_s6 + $0x10] sm:$0xf0] }
 0x5c8   : > { %v3783_v58 = vpack.c.bf16 %v3771_v17, %v3770_v56 }
 0x5c9   : > { %4066 = vmatpush.bf16.msra.mxu2 %v5443_v40  ;;  %v5411_v40 = vor.u32 %v5632_v13, %v5410_v34 }
 0x5cb   : > { %v5825_v36 = vpop.permute.xlu1 %5824 }
 0x5cc   : > { %v5827_v19 = vunpack.i.h.bf16 %v5825_v36  ;;  %v5826_v43 = vunpack.i.l.bf16 %v5825_v36 }
 0x5cd   : > { %4067 = vmatpush.bf16.msra.mxu2 %v5431_v52 }
 0x5ce   : > { %v3777_v9 = vmax.f32 %v7429_v7, %v5827_v19  ;;  %v3776_v53 = vmax.f32 %v7431_v4, %v5826_v43  ;;  %v5416_v7 = vld [vmem:[%s8088_s6 + $0x24] sm:$0xf0] }
 0x5cf   : > { %v5419_v4 = vor.u32 %v5633_v18, %v5416_v7 }
 0x5d0   : > { %v3786_v31 = vpack.c.bf16 %v3777_v9, %v3776_v53 }
 0x5d1   : > { %4068 = vmatpush.bf16.msra.mxu2 %v5419_v4 }
 0x5d2   : > { %3865 = vmatmul.bf16.gmra.mxu2 %v3781_v2  ;;  %v5630_v2 = vld [vmem:[%s8088_s6 + $0x4] sm:$0xf] }
 0x5d3   : > { %v5407_v46 = vor.u32 %v5630_v2, %v5404_v51 }
 0x5d5   : > { %4069 = vmatpush.bf16.msra.mxu2 %v5407_v46 }
 0x5e2   : > { %3870 = vmatmul.bf16.gmra.mxu2 %v3782_v24  ;;  %v5446_v24 = vld [vmem:[%s8088_s6 + $0x50] sm:$0xf] }
 0x5e3   : > { %v5447_v61 = vor.u32 %v5641_v25, %v5446_v24 }
 0x5e5   : > { %4115 = vmatpush.bf16.msrb.mxu3 %v5447_v61 }
 0x5e9   : > { %4116 = vmatpush.bf16.msrb.mxu3 %v5435_v37 }
 0x5f2   : > { %3875 = vmatmul.bf16.gmra.mxu2 %v3783_v58 }
 0x602   : > { %3880 = vmatmul.bf16.gmra.mxu2 %v3784_v50  ;;  %v5423_v50 = vor.u32 %v5635_v15, %v5422_v55 }
 0x604   : > { %4117 = vmatpush.bf16.msrb.mxu3 %v5423_v50 }
 0x608   : > { %4118 = vmatpush.bf16.msrb.mxu3 %v5411_v40 }
 0x612   : > { %3885 = vmatmul.bf16.gmra.mxu2 %v3785_v49 }
 0x622   : > { %3890 = vmatmul.bf16.gmra.mxu2 %v3786_v31 }
 0x632   : > { %3895 = vmatmul.bf16.gmra.mxu2 %v3787_v32 }
 0x645   : > { %v3861_v28 = vpop.f32.mrf.mxu2 }
 0x64d   : > { %v3863_v3 = vpop.f32.mrf.mxu2 }
 0x64e   : > { %v3901_v10 = vpack.c.bf16 %v3863_v3, %v3861_v28 }
 0x650   : > { %5448 = vmatmul.msk.bf16.vlgmr.msra.gmra.mxu3 %vm2901_vm13, %v3901_v10  ;;  %5456 = vmatmul.msk.bf16.vlgmr.msra.gmra.mxu2 %vm2901_vm13, %v3901_v10 }
 0x655   : > { %v3866_v17 = vpop.f32.mrf.mxu2 }
 0x65d   : > { %v3868_v56 = vpop.f32.mrf.mxu2 }
 0x65e   : > { %v3902_v58 = vpack.c.bf16 %v3868_v56, %v3866_v17 }
 0x660   : > { %5449 = vmatmul.msk.bf16.gmra.mxu3 %vm2901_vm13, %v3902_v58  ;;  %5457 = vmatmul.msk.bf16.gmra.mxu2 %vm2901_vm13, %v3902_v58 }
 0x665   : > { %v3871_v42 = vpop.f32.mrf.mxu2 }
 0x66d   : > { %v3873_v20 = vpop.f32.mrf.mxu2 }
 0x66e   : > { %v3903_v21 = vpack.c.bf16 %v3873_v20, %v3871_v42 }
 0x670   : > { %5450 = vmatmul.msk.bf16.gmra.mxu3 %vm2901_vm13, %v3903_v21  ;;  %5458 = vmatmul.msk.bf16.gmra.mxu2 %vm2901_vm13, %v3903_v21 }
 0x675   : > { %v3876_v33 = vpop.f32.mrf.mxu2 }
 0x67d   : > { %v3878_v8 = vpop.f32.mrf.mxu2 }
 0x67e   : > { %v3904_v22 = vpack.c.bf16 %v3878_v8, %v3876_v33  ;;  %v5648_v33 = vld [vmem:[%s8094_s12 + $0x30] sm:$0xff] }
 0x680   : > { %5451 = vmatmul.msk.bf16.gmra.mxu3 %vm2901_vm13, %v3904_v22  ;;  %5459 = vmatmul.msk.bf16.gmra.mxu2 %vm2901_vm13, %v3904_v22 }
 0x685   : > { %v3881_v1 = vpop.f32.mrf.mxu2 }
 0x68d   : > { %v3883_v48 = vpop.f32.mrf.mxu2 }
 0x68e   : > { %v3905_v49 = vpack.c.bf16 %v3883_v48, %v3881_v1 }
 0x690   : > { %5452 = vmatmul.msk.bf16.gmra.mxu3 %vm2901_vm13, %v3905_v49  ;;  %5460 = vmatmul.msk.bf16.gmra.mxu2 %vm2901_vm13, %v3905_v49 }
 0x695   : > { %v3886_v36 = vpop.f32.mrf.mxu2 }
 0x69d   : > { %v3888_v19 = vpop.f32.mrf.mxu2 }
 0x69e   : > { %v3906_v43 = vpack.c.bf16 %v3888_v19, %v3886_v36 }
 0x6a0   : > { %5453 = vmatmul.msk.bf16.gmra.mxu3 %vm2901_vm13, %v3906_v43  ;;  %5461 = vmatmul.msk.bf16.gmra.mxu2 %vm2901_vm13, %v3906_v43 }
 0x6a5   : > { %v3891_v9 = vpop.f32.mrf.mxu2 }
 0x6ad   : > { %v3893_v53 = vpop.f32.mrf.mxu2 }
 0x6ae   : > { %v3907_v31 = vpack.c.bf16 %v3893_v53, %v3891_v9  ;;  %v4160_v9 = vand.u32 3, %v6143_v26 }
 0x6b0   : > { %5454 = vmatmul.msk.bf16.gmra.mxu3 %vm2901_vm13, %v3907_v31  ;;  %5462 = vmatmul.msk.bf16.gmra.mxu2 %vm2901_vm13, %v3907_v31  ;;  %vm4176_vm12 = vcmp.eq.s32.totalorder %v4160_v9, 0  ;;  %vm4240_vm14 = vcmp.eq.s32.totalorder %v4160_v9, 3 }
 0x6b5   : > { %v3896_v14 = vpop.f32.mrf.mxu2 }
 0x6bd   : > { %v3898_v47 = vpop.f32.mrf.mxu2 }
 0x6be   : > { %v3908_v52 = vpack.c.bf16 %v3898_v47, %v3896_v14 }
 0x6c0   : > { %5455 = vmatmul.msk.bf16.gmra.mxu3 %vm2901_vm13, %v3908_v52  ;;  %5463 = vmatmul.msk.bf16.gmra.mxu2 %vm2901_vm13, %v3908_v52 }
 0x6d0   : > { %5464 = vmatmul.msk.bf16.vlgmr.msrb.gmra.mxu3 %vm2901_vm13, %v3901_v10 }
 0x6d3   : > { %v4022_v23 = vpop.f32.mrf.mxu3 }
 0x6d4   : > { %v4192_v7 = vrot.slane %v4022_v23, 7  ;;  %v4161_v23 = vand.u32 3, %v6147_v30 }
 0x6d6   : > { %vm4177_vm15 = vcmp.eq.s32.totalorder %v4161_v23, 0  ;;  %vm4241_vm3 = vcmp.eq.s32.totalorder %v4161_v23, 3 }
 0x6db   : > { %v4024_v18 = vpop.f32.mrf.mxu3 }
 0x6dc   : > { %v4193_v4 = vrot.slane %v4024_v18, 7 }
 0x6de   : > { %v7536_v11 = vsel %vm1671_vm2, %v4192_v7, %v4193_v4 }
 0x6e0   : > { %5465 = vmatmul.msk.bf16.gmra.mxu3 %vm2901_vm13, %v3902_v58  ;;  %v5649_v58 = vld [vmem:[%s8094_s12 + $0x38] sm:$0xff] }
 0x6e1   : > { %4504 = vmatpush.bf16.msrb.mxu0 %v5649_v58 }
 0x6e3   : > { %v4027_v41 = vpop.f32.mrf.mxu3 }
 0x6e4   : > { %v4194_v2 = vrot.slane %v4027_v41, 7 }
 0x6e5   : > { %4505 = vmatpush.bf16.msrb.mxu0 %v5648_v33 }
 0x6e6   : > { %v7541_v51 = vsel %vm1671_vm2, %v4193_v4, %v4194_v2 }
 0x6eb   : > { %v4029_v45 = vpop.f32.mrf.mxu3 }
 0x6ec   : > { %v4195_v12 = vrot.slane %v4029_v45, 7  ;;  %v7620_v45 = vld [vmem:[%s8089_s7] ss:$0 sm:$0xff] }
 0x6ee   : > { %v7545_v46 = vsel %vm1671_vm2, %v4194_v2, %v4195_v12 }
 0x6f0   : > { %5466 = vmatmul.msk.bf16.gmra.mxu3 %vm2901_vm13, %v3903_v21 }
 0x6f3   : > { %v4032_v32 = vpop.f32.mrf.mxu3 }
 0x6f4   : > { %v4196_v24 = vrot.slane %v4032_v32, 7 }
 0x6f6   : > { %v7550_v25 = vsel %vm1671_vm2, %v4195_v12, %v4196_v24 }
 0x6fb   : > { %v4034_v61 = vpop.f32.mrf.mxu3 }
 0x6fc   : > { %v4197_v28 = vrot.slane %v4034_v61, 7  ;;  %v4225_v61 = vsel %vm4177_vm15, 0.0, %v7536_v11 }
 0x6fe   : > { %v7554_v3 = vsel %vm1671_vm2, %v4196_v24, %v4197_v28 }
 0x700   : > { %5467 = vmatmul.msk.bf16.gmra.mxu3 %vm2901_vm13, %v3904_v22  ;;  %v4071_v22 = vpop.f32.mrf.mxu2 }
 0x703   : > { %v4037_v10 = vpop.f32.mrf.mxu3 }
 0x704   : > { %v4198_v59 = vrot.slane %v4037_v10, 7  ;;  %v4162_v10 = vand.u32 3, %v6157_v35 }
 0x706   : > { %v7559_v63 = vsel %vm1671_vm2, %v4197_v28, %v4198_v59  ;;  %vm4178_vm4 = vcmp.eq.s32.totalorder %v4162_v10, 0  ;;  %vm4242_vm5 = vcmp.eq.s32.totalorder %v4162_v10, 3  ;;  %v5646_v10 = vld [vmem:[%s8094_s12 + $0x20] sm:$0xff] }
 0x707   : > { %v4226_v9 = vsel %vm4178_vm4, 0.0, %v7541_v51 }
 0x708   : > { %v4073_v48 = vpop.f32.mrf.mxu2 }
 0x70b   : > { %v4039_v37 = vpop.f32.mrf.mxu3 }
 0x70c   : > { %v4199_v17 = vrot.slane %v4039_v37, 7 }
 0x70e   : > { %v7563_v56 = vsel %vm1671_vm2, %v4198_v59, %v4199_v17 }
 0x710   : > { %5468 = vmatmul.msk.bf16.gmra.mxu3 %vm2901_vm13, %v3905_v49  ;;  %v4076_v34 = vpop.f32.mrf.mxu2 }
 0x713   : > { %v7569_v42 = vpop.f32.mrf.mxu3 }
 0x714   : > { %v4200_v20 = vrot.slane %v7569_v42, 7  ;;  %v4170_v42 = vand.u32 3, %v6253_v44 }
 0x716   : > { %v7576_v21 = vsel %vm1671_vm2, %v4199_v17, %v4200_v20  ;;  %v4305_v17 = vadd.f32 %v4225_v61, %v4073_v48 }
 0x718   : > { %v4078_v53 = vpop.f32.mrf.mxu2 }
 0x71b   : > { %v7578_v55 = vpop.f32.mrf.mxu3 }
 0x720   : > { %5469 = vmatmul.msk.bf16.gmra.mxu3 %vm2901_vm13, %v3906_v43 }
 0x723   : > { %v7581_v15 = vpop.f32.mrf.mxu3 }
 0x72b   : > { %v7583_v50 = vpop.f32.mrf.mxu3 }
 0x730   : > { %5470 = vmatmul.msk.bf16.gmra.mxu3 %vm2901_vm13, %v3907_v31  ;;  %v5647_v31 = vld [vmem:[%s8094_s12 + $0x28] sm:$0xff] }
 0x731   : > { %4506 = vmatpush.bf16.msrb.mxu0 %v5647_v31  ;;  %v4163_v31 = vand.u32 3, %v6182_v57 }
 0x733   : > { %v7589_v8 = vpop.f32.mrf.mxu3  ;;  %vm4179_vm6 = vcmp.eq.s32.totalorder %v4163_v31, 0  ;;  %vm4243_vm7 = vcmp.eq.s32.totalorder %v4163_v31, 3 }
 0x735   : > { %4507 = vmatpush.bf16.msrb.mxu0 %v5646_v10 }
 0x73b   : > { %v7591_v1 = vpop.f32.mrf.mxu3 }
 0x740   : > { %5471 = vmatmul.msk.bf16.gmra.mxu3 %vm2901_vm13, %v3908_v52 }
 0x743   : > { %v7594_v49 = vpop.f32.mrf.mxu3 }
 0x744   : > { %v4206_v40 = vrot.slane %v7594_v49, 7 }
 0x74b   : > { %v4059_v13 = vpop.f32.mrf.mxu3 }
 0x74c   : > { %v4207_v36 = vrot.slane %v4059_v13, 7 }
 0x74e   : > { %v7601_v19 = vsel %vm1671_vm2, %v4206_v40, %v4207_v36  ;;  %v4223_v14 = vsel %vm1671_vm2, %v4207_v36, %v4192_v7  ;;  %v4081_v7 = vpop.f32.mrf.mxu2 }
 0x74f   : > { %v4224_v47 = vsel %vm4176_vm12, 0.0, %v4223_v14 }
 0x750   : > { %v4304_v41 = vadd.f32 %v4224_v47, %v4071_v22 }
 0x753   : > { %v7603_v43 = vpop.f32.mrf.mxu3 }
 0x754   : > { %v4256_v18 = vrot.slane %v7603_v43, 1 }
 0x756   : > { %v4083_v13 = vpop.f32.mrf.mxu2 }
 0x75b   : > { %v4122_v52 = vpop.f32.mrf.mxu3 }
 0x75c   : > { %v4257_v4 = vrot.slane %v4122_v52, 1  ;;  %v4306_v52 = vadd.f32 %v4226_v9, %v4076_v34 }
 0x75e   : > { %v4286_v2 = vsel %vm1928_vm1, %v4256_v18, %v4257_v4 }
 0x75f   : > { %v4288_v12 = vsel %vm4240_vm14, 0.0, %v4286_v2  ;;  %v4227_v2 = vsel %vm4179_vm6, 0.0, %v7545_v46 }
 0x760   : > { %v4320_v32 = vadd.f32 %v4304_v41, %v4288_v12  ;;  %v4086_v12 = vpop.f32.mrf.mxu2 }
 0x762   : > { %v4340_v24 = vadd.f32 %v7620_v45, %v4320_v32  ;;  %v4164_v32 = vand.u32 3, %v6187_v0 }
 0x763   : > { %v4125_v28 = vpop.f32.mrf.mxu3 }
 0x764   : > { %v4356_v59 = vmax.f32 %v4340_v24, 0.0  ;;  %v4258_v37 = vrot.slane %v4125_v28, 1  ;;  %v4307_v28 = vadd.f32 %v4227_v2, %v4078_v53  ;;  %vm4180_vm8 = vcmp.eq.s32.totalorder %v4164_v32, 0 }
 0x765   : > { %vm4244_vm0 = vcmp.eq.s32.totalorder %v4164_v32, 3  ;;  %v4165_v53 = vand.u32 3, %v6204_v27 }
 0x766   : > { %4372 = vst [vmem:[#allocation2] sm:$0xff] %v4356_v59  ;;  %v4285_v58 = vsel %vm1928_vm1, %v4257_v4, %v4258_v37 }
 0x767   : > { %v4289_v33 = vsel %vm4241_vm3, 0.0, %v4285_v58  ;;  %vm4181_vm9 = vcmp.eq.s32.totalorder %v4165_v53, 0  ;;  %vm4245_vm10 = vcmp.eq.s32.totalorder %v4165_v53, 3 }
 0x768   : > { %v4321_v22 = vadd.f32 %v4305_v17, %v4289_v33  ;;  %v4228_v17 = vsel %vm4180_vm8, 0.0, %v7550_v25  ;;  %vm4250_vm8 = vcmp.eq.s32.totalorder %v4170_v42, 3 }
 0x769   : > { %v4308_v9 = vadd.f32 %v4228_v17, %v4081_v7  ;;  %v4167_v17 = vand.u32 3, %v6226_v62 }
 0x76a   : > { %v4341_v36 = vadd.f32 %v7620_v45, %v4321_v22 }
 0x76b   : > { %v4127_v11 = vpop.f32.mrf.mxu3  ;;  %vm4183_vm14 = vcmp.eq.s32.totalorder %v4167_v17, 0  ;;  %vm4247_vm15 = vcmp.eq.s32.totalorder %v4167_v17, 3 }
 0x76c   : > { %v4357_v14 = vmax.f32 %v4341_v36, 0.0  ;;  %v4259_v47 = vrot.slane %v4127_v11, 1  ;;  %v4088_v36 = vpop.f32.mrf.mxu2 }
 0x76e   : > { %4373 = vst [vmem:[#allocation2 + $0x8] sm:$0xff] %v4357_v14  ;;  %v4284_v48 = vsel %vm1928_vm1, %v4258_v37, %v4259_v47 }
 0x76f   : > { %v4290_v23 = vsel %vm4242_vm5, 0.0, %v4284_v48 }
 0x770   : > { %v4322_v4 = vadd.f32 %v4306_v52, %v4290_v23  ;;  %v4229_v52 = vsel %vm4181_vm9, 0.0, %v7554_v3 }
 0x771   : > { %v4309_v32 = vadd.f32 %v4229_v52, %v4083_v13  ;;  %v4168_v52 = vand.u32 3, %v6231_v6  ;;  %v4203_v6 = vrot.slane %v7583_v50, 7 }
 0x772   : > { %v4342_v41 = vadd.f32 %v7620_v45, %v4322_v4  ;;  %v4166_v4 = vand.u32 3, %v6209_v38 }
 0x773   : > { %v4130_v51 = vpop.f32.mrf.mxu3  ;;  %vm4184_vm3 = vcmp.eq.s32.totalorder %v4168_v52, 0  ;;  %vm7672_vm4 = vcmp.eq.s32.totalorder %v4168_v52, 3 }
 0x774   : > { %v4358_v24 = vmax.f32 %v4342_v41, 0.0  ;;  %v4260_v61 = vrot.slane %v4130_v51, 1  ;;  %v4091_v3 = vpop.f32.mrf.mxu2  ;;  %vm4182_vm11 = vcmp.eq.s32.totalorder %v4166_v4, 0  ;;  %vm4246_vm12 = vcmp.eq.s32.totalorder %v4166_v4, 3  ;;  %v5645_v4 = vld [vmem:[%s8094_s12 + $0x18] sm:$0xff] }
 0x775   : > { %v4388_v48 = vld [vmem:[#allocation2] ss:$2 sm:$0xff]  ;;  %v4396_v23 = vld [vmem:[#allocation2 + $0x1] ss:$2 sm:$0xff]  ;;  %v4230_v13 = vsel %vm4182_vm11, 0.0, %v7559_v63  ;;  %4508 = vmatpush.bf16.msrb.mxu0 %v5645_v4 }
 0x776   : > { %4374 = vst [vmem:[#allocation2 + $0x10] sm:$0xff] %v4358_v24  ;;  %v4283_v34 = vsel %vm1928_vm1, %v4259_v47, %v4260_v61 }
 0x777   : > { %v4291_v59 = vsel %vm4243_vm7, 0.0, %v4283_v34  ;;  %vm4186_vm7 = vcmp.eq.s32.totalorder %v4170_v42, 0  ;;  %v4173_v42 = vand.u32 3, %v6299_v60 }
 0x778   : > { %v4323_v37 = vadd.f32 %v4307_v28, %v4291_v59 }
 0x77a   : > { %v4343_v46 = vadd.f32 %v7620_v45, %v4323_v37 }
 0x77b   : > { %v4132_v58 = vpop.f32.mrf.mxu3 }
 0x77c   : > { %v4359_v33 = vmax.f32 %v4343_v46, 0.0  ;;  %v4261_v22 = vrot.slane %v4132_v58, 1 }
 0x77e   : > { %4375 = vst [vmem:[#allocation2 + $0x18] sm:$0xff] %v4359_v33  ;;  %v4282_v11 = vsel %vm1928_vm1, %v4260_v61, %v4261_v22  ;;  %v7650_v61 = vmax.f32 %v4388_v48, %v4396_v23  ;;  %v4310_v33 = vadd.f32 %v4230_v13, %v4086_v12  ;;  %v5660_v13 = vld [vmem:[%s8090_s8 + $0x50] sm:$0xf0] }
 0x77f   : > { %v4292_v31 = vsel %vm4244_vm0, 0.0, %v4282_v11 }
 0x780   : > { %v4324_v14 = vadd.f32 %v4308_v9, %v4292_v31  ;;  %v4093_v31 = vpop.f32.mrf.mxu2 }
 0x782   : > { %v4344_v47 = vadd.f32 %v7620_v45, %v4324_v14 }
 0x783   : > { %v4135_v25 = vpop.f32.mrf.mxu3 }
 0x784   : > { %v4360_v41 = vmax.f32 %v4344_v47, 0.0  ;;  %v4262_v2 = vrot.slane %v4135_v25, 1  ;;  %v4231_v47 = vsel %vm4183_vm14, 0.0, %v7563_v56  ;;  %vm7748_vm14 = vcmp.eq.s32.totalorder %v4173_v42, 3 }
 0x785   : > { %v4389_v7 = vld [vmem:[#allocation2 + $0x10] ss:$2 sm:$0xff]  ;;  %v4397_v51 = vld [vmem:[#allocation2 + $0x11] ss:$2 sm:$0xff]  ;;  %v4311_v23 = vadd.f32 %v4231_v47, %v4088_v36 }
 0x786   : > { %4376 = vst [vmem:[#allocation2 + $0x20] sm:$0xff] %v4360_v41  ;;  %v4281_v24 = vsel %vm1928_vm1, %v4261_v22, %v4262_v2  ;;  %v7652_v28 = vmax.f32 %v4389_v7, %v4397_v51  ;;  %v4232_v7 = vsel %vm4184_vm3, 0.0, %v7576_v21  ;;  %v5542_v21 = vld [vmem:[%s8090_s8 + $0x48] sm:$0xf] }
 0x787   : > { %v4293_v34 = vsel %vm4245_vm10, 0.0, %v4281_v24  ;;  %v4169_v24 = vand.u32 3, %v6248_v39 }
 0x788   : > { %v4325_v10 = vadd.f32 %v4309_v32, %v4293_v34  ;;  %v5833_v59 = vpack.i.bf16 %v7652_v28, %v7650_v61  ;;  %v4096_v36 = vpop.f32.mrf.mxu2  ;;  %v4201_v32 = vrot.slane %v7578_v55, 7 }
 0x789   : > { %vm7688_vm5 = vcmp.eq.s32.totalorder %v4169_v24, 0  ;;  %vm7699_vm6 = vcmp.eq.s32.totalorder %v4169_v24, 3 }
 0x78a   : > { %v4345_v37 = vadd.f32 %v7620_v45, %v4325_v10  ;;  %5834 = vrot.lane.b32.xlu0 %v5833_v59, %s5929_s23  ;;  %v4312_v59 = vadd.f32 %v4232_v7, %v4091_v3  ;;  %v4214_v3 = vsel %vm1671_vm2, %v4200_v20, %v4201_v32 }
 0x78b   : > { %v4137_v46 = vpop.f32.mrf.mxu3 }
 0x78c   : > { %v4361_v58 = vmax.f32 %v4345_v37, 0.0  ;;  %v4263_v53 = vrot.slane %v4137_v46, 1  ;;  %v5543_v46 = vor.u32 %v5660_v13, %v5542_v21 }
 0x78e   : > { %4377 = vst [vmem:[#allocation2 + $0x28] sm:$0xff] %v4361_v58  ;;  %v4280_v22 = vsel %vm1928_vm1, %v4262_v2, %v4263_v53  ;;  %4633 = vmatpush.bf16.msra.mxu1 %v5543_v46 }
 0x78f   : > { %v4294_v9 = vsel %vm4246_vm12, 0.0, %v4280_v22  ;;  %vm7740_vm12 = vcmp.eq.s32.totalorder %v4173_v42, 0 }
 0x790   : > { %v4326_v11 = vadd.f32 %v4310_v33, %v4294_v9  ;;  %v5644_v33 = vld [vmem:[%s8094_s12 + $0x10] sm:$0xff] }
 0x791   : > { %4509 = vmatpush.bf16.msrb.mxu0 %v5644_v33 }
 0x792   : > { %v4346_v14 = vadd.f32 %v7620_v45, %v4326_v11 }
 0x793   : > { %v4140_v63 = vpop.f32.mrf.mxu3 }
 0x794   : > { %v4362_v25 = vmax.f32 %v4346_v14, 0.0  ;;  %v4264_v48 = vrot.slane %v4140_v63, 1  ;;  %v4202_v14 = vrot.slane %v7581_v15, 7  ;;  %v4098_v63 = vpop.f32.mrf.mxu2 }
 0x795   : > { %v4390_v9 = vld [vmem:[#allocation2 + $0x20] ss:$2 sm:$0xff]  ;;  %v4398_v11 = vld [vmem:[#allocation2 + $0x21] ss:$2 sm:$0xff] }
 0x796   : > { %4378 = vst [vmem:[#allocation2 + $0x30] sm:$0xff] %v4362_v25  ;;  %v4279_v12 = vsel %vm1928_vm1, %v4263_v53, %v4264_v48  ;;  %v4233_v53 = vsel %vm7688_vm5, 0.0, %v4214_v3  ;;  %v4213_v44 = vsel %vm1671_vm2, %v4201_v32, %v4202_v14  ;;  %v4212_v21 = vsel %vm1671_vm2, %v4202_v14, %v4203_v6 }
 0x797   : > { %v4295_v41 = vsel %vm4247_vm15, 0.0, %v4279_v12  ;;  %v7707_v12 = vmax.f32 %v4390_v9, %v4398_v11  ;;  %v4205_v14 = vrot.slane %v7591_v1, 7 }
 0x798   : > { %v4327_v2 = vadd.f32 %v4311_v23, %v4295_v41 }
 0x79a   : > { %v4347_v56 = vadd.f32 %v7620_v45, %v4327_v2 }
 0x79b   : > { %v4142_v51 = vpop.f32.mrf.mxu3 }
 0x79c   : > { %v4363_v34 = vmax.f32 %v4347_v56, 0.0  ;;  %v4265_v10 = vrot.slane %v4142_v51, 1  ;;  %v4234_v56 = vsel %vm4186_vm7, 0.0, %v4213_v44  ;;  %v4171_v51 = vand.u32 3, %v6277_v16 }
 0x79d   : > { %v4204_v16 = vrot.slane %v7589_v8, 7 }
 0x79e   : > { %4379 = vst [vmem:[#allocation2 + $0x38] sm:$0xff] %v4363_v34  ;;  %v4278_v37 = vsel %vm1928_vm1, %v4264_v48, %v4265_v10  ;;  %v4313_v48 = vadd.f32 %v4233_v53, %v4093_v31  ;;  %vm4187_vm0 = vcmp.eq.s32.totalorder %v4171_v51, 0  ;;  %vm4251_vm9 = vcmp.eq.s32.totalorder %v4171_v51, 3  ;;  %v5643_v51 = vld [vmem:[%s8094_s12 + $0x8] sm:$0xff] }
 0x79f   : > { %v4296_v55 = vsel %vm7672_vm4, 0.0, %v4278_v37  ;;  %v4235_v46 = vsel %vm4187_vm0, 0.0, %v4212_v21  ;;  %4510 = vmatpush.bf16.msrb.mxu0 %v5643_v51  ;;  %v5654_v51 = vld [vmem:[%s8090_s8 + $0x20] sm:$0xf0] }
 0x7a0   : > { %v4328_v17 = vadd.f32 %v4312_v59, %v4296_v55  ;;  %v4101_v59 = vpop.f32.mrf.mxu2 }
 0x7a2   : > { %v4348_v58 = vadd.f32 %v7620_v45, %v4328_v17  ;;  %v4315_v17 = vadd.f32 %v4235_v46, %v4098_v63 }
 0x7a3   : > { %v4145_v22 = vpop.f32.mrf.mxu3 }
 0x7a4   : > { %v4364_v47 = vmax.f32 %v4348_v58, 0.0  ;;  %v4266_v20 = vrot.slane %v4145_v22, 1  ;;  %v4211_v22 = vsel %vm1671_vm2, %v4203_v6, %v4204_v16 }
 0x7a5   : > { %v4391_v52 = vld [vmem:[#allocation2 + $0x30] ss:$2 sm:$0xff]  ;;  %v4399_v25 = vld [vmem:[#allocation2 + $0x31] ss:$2 sm:$0xff] }
 0x7a6   : > { %4380 = vst [vmem:[#allocation2 + $0x40] sm:$0xff] %v4364_v47  ;;  %v4277_v23 = vsel %vm1928_vm1, %v4265_v10, %v4266_v20  ;;  %v7709_v4 = vmax.f32 %v4391_v52, %v4399_v25  ;;  %v4314_v10 = vadd.f32 %v4234_v56, %v4096_v36  ;;  %v4172_v36 = vand.u32 3, %v6282_v29 }
 0x7a7   : > { %v4297_v41 = vsel %vm7699_vm6, 0.0, %v4277_v23  ;;  %v4210_v23 = vsel %vm1671_vm2, %v4204_v16, %v4205_v14 }
 0x7a8   : > { %v4329_v15 = vadd.f32 %v4313_v48, %v4297_v41  ;;  %v5838_v2 = vpack.i.bf16 %v7709_v4, %v7707_v12  ;;  %vm4188_vm10 = vcmp.eq.s32.totalorder %v4172_v36, 0  ;;  %v4103_v8 = vpop.f32.mrf.mxu2  ;;  %vm4252_vm11 = vcmp.eq.s32.totalorder %v4172_v36, 3 }
 0x7a9   : > { %v4236_v11 = vsel %vm4188_vm10, 0.0, %v4211_v22  ;;  %v4237_v60 = vsel %vm7740_vm12, 0.0, %v4210_v23  ;;  %v4209_v36 = vsel %vm1671_vm2, %v4205_v14, %v4206_v40 }
 0x7aa   : > { %v4349_v31 = vadd.f32 %v7620_v45, %v4329_v15  ;;  %5839 = vrot.lane.b32.xlu1 %v5838_v2, %s5929_s23  ;;  %v4316_v52 = vadd.f32 %v4236_v11, %v4101_v59  ;;  %v4317_v21 = vadd.f32 %v4237_v60, %v4103_v8 }
 0x7ab   : > { %v4147_v7 = vpop.f32.mrf.mxu3 }
 0x7ac   : > { %v4365_v24 = vmax.f32 %v4349_v31, 0.0  ;;  %v4267_v34 = vrot.slane %v4147_v7, 1  ;;  %v4174_v7 = vand.u32 3, %v6304_v5 }
 0x7ae   : > { %4381 = vst [vmem:[#allocation2 + $0x48] sm:$0xff] %v4365_v24  ;;  %v4276_v32 = vsel %vm1928_vm1, %v4266_v20, %v4267_v34  ;;  %v5530_v24 = vld [vmem:[%s8090_s8 + $0x30] sm:$0xf]  ;;  %vm7770_vm15 = vcmp.eq.s32.totalorder %v4174_v7, 0  ;;  %vm4254_vm4 = vcmp.eq.s32.totalorder %v4174_v7, 3 }
 0x7af   : > { %v4298_v37 = vsel %vm4250_vm8, 0.0, %v4276_v32 }
 0x7b0   : > { %v4330_v13 = vadd.f32 %v4314_v10, %v4298_v37  ;;  %v4106_v56 = vpop.f32.mrf.mxu2  ;;  %v4175_v10 = vand.u32 3, %v6331_v54 }
 0x7b2   : > { %v4350_v55 = vadd.f32 %v7620_v45, %v4330_v13  ;;  %vm4191_vm3 = vcmp.eq.s32.totalorder %v4175_v10, 0  ;;  %vm4255_vm5 = vcmp.eq.s32.totalorder %v4175_v10, 3  ;;  %v5544_v10 = vld [vmem:[%s8090_s8 + $0x54] sm:$0xf0] }
 0x7b3   : > { %v4150_v50 = vpop.f32.mrf.mxu3 }
 0x7b4   : > { %v4366_v39 = vmax.f32 %v4350_v55, 0.0  ;;  %v4268_v3 = vrot.slane %v4150_v50, 1 }
 0x7b5   : > { %v4392_v2 = vld [vmem:[#allocation2 + $0x40] ss:$2 sm:$0xff]  ;;  %v4400_v31 = vld [vmem:[#allocation2 + $0x41] ss:$2 sm:$0xff] }
 0x7b6   : > { %4382 = vst [vmem:[#allocation2 + $0x50] sm:$0xff] %v4366_v39  ;;  %v4275_v58 = vsel %vm1928_vm1, %v4267_v34, %v4268_v3  ;;  %v5657_v34 = vld [vmem:[%s8090_s8 + $0x38] sm:$0xf0]  ;;  %v7766_v46 = vmax.f32 %v4392_v2, %v4400_v31 }
 0x7b7   : > { %v4299_v53 = vsel %vm4251_vm9, 0.0, %v4275_v58  ;;  %v5531_v37 = vor.u32 %v5657_v34, %v5530_v24  ;;  %v4238_v58 = vsel %vm7770_vm15, 0.0, %v4209_v36  ;;  %v5550_v24 = vld [vmem:[%s8090_s8 + $0x50] sm:$0xf] }
 0x7b8   : > { %v4331_v9 = vadd.f32 %v4315_v17, %v4299_v53  ;;  %v4239_v53 = vsel %vm4191_vm3, 0.0, %v7601_v19  ;;  %v4108_v40 = vpop.f32.mrf.mxu2 }
 0x7b9   : > { %4634 = vmatpush.bf16.msra.mxu1 %v5531_v37  ;;  %v4319_v8 = vadd.f32 %v4239_v53, %v4108_v40  ;;  %v5538_v53 = vld [vmem:[%s8090_s8 + $0x38] sm:$0xf] }
 0x7ba   : > { %v4351_v29 = vadd.f32 %v7620_v45, %v4331_v9  ;;  %v4318_v9 = vadd.f32 %v4238_v58, %v4106_v56 }
 0x7bb   : > { %v4152_v47 = vpop.f32.mrf.mxu3 }
 0x7bc   : > { %v4367_v20 = vmax.f32 %v4351_v29, 0.0  ;;  %v4269_v63 = vrot.slane %v4152_v47, 1 }
 0x7be   : > { %4383 = vst [vmem:[#allocation2 + $0x58] sm:$0xff] %v4367_v20  ;;  %v4274_v25 = vsel %vm1928_vm1, %v4268_v3, %v4269_v63 }
 0x7bf   : > { %v4300_v41 = vsel %vm4252_vm11, 0.0, %v4274_v25 }
 0x7c0   : > { %v4332_v1 = vadd.f32 %v4316_v52, %v4300_v41 }
 0x7c2   : > { %v4352_v15 = vadd.f32 %v7620_v45, %v4332_v1 }
 0x7c3   : > { %v4155_v6 = vpop.f32.mrf.mxu3 }
 0x7c4   : > { %v4368_v32 = vmax.f32 %v4352_v15, 0.0  ;;  %v4270_v59 = vrot.slane %v4155_v6, 1  ;;  %v5518_v6 = vld [vmem:[%s8090_s8 + $0x18] sm:$0xf] }
 0x7c5   : > { %v4393_v5 = vld [vmem:[#allocation2 + $0x50] ss:$2 sm:$0xff]  ;;  %v4401_v13 = vld [vmem:[#allocation2 + $0x51] ss:$2 sm:$0xff]  ;;  %v5519_v34 = vor.u32 %v5654_v51, %v5518_v6 }
 0x7c6   : > { %4384 = vst [vmem:[#allocation2 + $0x60] sm:$0xff] %v4368_v32  ;;  %v4273_v55 = vsel %vm1928_vm1, %v4269_v63, %v4270_v59  ;;  %v7768_v50 = vmax.f32 %v4393_v5, %v4401_v13 }
 0x7c7   : > { %v4301_v54 = vsel %vm7748_vm14, 0.0, %v4273_v55  ;;  %4635 = vmatpush.bf16.msra.mxu1 %v5519_v34 }
 0x7c8   : > { %v4333_v39 = vadd.f32 %v4317_v21, %v4301_v54  ;;  %v5843_v3 = vpack.i.bf16 %v7768_v50, %v7766_v46 }
 0x7ca   : > { %v4353_v17 = vadd.f32 %v7620_v45, %v4333_v39  ;;  %5844 = vrot.lane.b32.xlu2 %v5843_v3, %s5929_s23 }
 0x7cb   : > { %v4157_v33 = vpop.f32.mrf.mxu3 }
 0x7cc   : > { %v4369_v49 = vmax.f32 %v4353_v17, 0.0  ;;  %v4271_v22 = vrot.slane %v4157_v33, 1 }
 0x7ce   : > { %4385 = vst [vmem:[#allocation2 + $0x68] sm:$0xff] %v4369_v49  ;;  %v4272_v29 = vsel %vm1928_vm1, %v4270_v59, %v4271_v22  ;;  %v4287_v11 = vsel %vm1928_vm1, %v4271_v22, %v4256_v18  ;;  %v5642_v18 = vld [vmem:[%s8094_s12] sm:$0xff]  ;;  %v5651_v49 = vld [vmem:[%s8090_s8 + $0x8] sm:$0xf0] }
 0x7cf   : > { %v4302_v14 = vsel %vm4254_vm4, 0.0, %v4272_v29  ;;  %v4303_v42 = vsel %vm4255_vm5, 0.0, %v4287_v11  ;;  %4511 = vmatpush.bf16.msrb.mxu0 %v5642_v18 }
 0x7d0   : > { %v4334_v19 = vadd.f32 %v4318_v9, %v4302_v14  ;;  %v4335_v47 = vadd.f32 %v4319_v8, %v4303_v42  ;;  %v5526_v9 = vld [vmem:[%s8090_s8 + $0x20] sm:$0xf]  ;;  %v5655_v8 = vld [vmem:[%s8090_s8 + $0x28] sm:$0xf0] }
 0x7d1   : > { %v5527_v29 = vor.u32 %v5655_v8, %v5526_v9 }
 0x7d2   : > { %v4354_v20 = vadd.f32 %v7620_v45, %v4334_v19  ;;  %v4355_v63 = vadd.f32 %v7620_v45, %v4335_v47 }
 0x7d4   : > { %v4370_v52 = vmax.f32 %v4354_v20, 0.0  ;;  %v4371_v25 = vmax.f32 %v4355_v63, 0.0  ;;  %v5653_v63 = vld [vmem:[%s8090_s8 + $0x1c] sm:$0xf] }
 0x7d5   : > { %v4394_v48 = vld [vmem:[#allocation2 + $0x60] ss:$2 sm:$0xff]  ;;  %v4402_v23 = vld [vmem:[#allocation2 + $0x61] ss:$2 sm:$0xff] }
 0x7d6   : > { %4386 = vst [vmem:[#allocation2 + $0x70] sm:$0xff] %v4370_v52  ;;  %v4410_v43 = vmax.f32 %v4394_v48, %v4402_v23  ;;  %v5520_v52 = vld [vmem:[%s8090_s8 + $0x24] sm:$0xf0]  ;;  %v5650_v48 = vld [vmem:[%s8090_s8 + $0x4] sm:$0xf] }
 0x7d7   : > { %4387 = vst [vmem:[#allocation2 + $0x78] sm:$0xff] %v4371_v25  ;;  %v5523_v25 = vor.u32 %v5653_v63, %v5520_v52  ;;  %v5508_v23 = vld [vmem:[%s8090_s8 + $0xc] sm:$0xf0] }
 0x7de   : > { %v4395_v41 = vld [vmem:[#allocation2 + $0x70] ss:$2 sm:$0xff]  ;;  %v4403_v1 = vld [vmem:[#allocation2 + $0x71] ss:$2 sm:$0xff] }
 0x7df   : > { %v4411_v60 = vmax.f32 %v4395_v41, %v4403_v1  ;;  %v5514_v41 = vld [vmem:[%s8090_s8 + $0x8] sm:$0xf]  ;;  %v5511_v1 = vor.u32 %v5650_v48, %v5508_v23 }
 0x7e1   : > { %v5848_v44 = vpack.i.bf16 %v4411_v60, %v4410_v43 }
 0x7e3   : > { %5849 = vrot.lane.b32.xlu0 %v5848_v44, %s5929_s23  ;;  %s5877_s23 = sshra.s32 %s4931_s30, 4  ;;  %s5878_s23 = int_to_ptr.hbm [resolvable:$true] %s5877_s23 }
 0x7e4   : > { %s5879_s0 = scalar_lea.hbm %s5878_s23, 1  ;;  %p5884_p0 = scmp.lt.s32.totalorder %s5878_s23, %s8099_s17 }
 0x7e5   : > { %p5880_p11 = scmp.ne.s32.totalorder %s5878_s23, %s5879_s0  ;;  %p5885_p1 = scmp.lt.s32.totalorder %s5883_s19, %s5879_s0 }
 0x7e7   : > { %p5881_p12 = pnand %p5880_p11, %p6062_p5  ;;  %p5886_p2 = por %p5885_p1, %p5884_p0 }
 0x7e9   : > { %p5882_p13 = pneg %p5881_p12 }
 0x7eb   : > { %p5887_p3 = pnand %p5886_p2, %p5882_p13 }
 0x7fc   : > { %v5835_v15 = vpop.permute.xlu0 %5834 }
 0x7fd   : > { %v5837_v45 = vunpack.i.h.bf16 %v5835_v15  ;;  %v5836_v2 = vunpack.i.l.bf16 %v5835_v15 }
 0x7ff   : > { %v4429_v31 = vmax.f32 %v7652_v28, %v5837_v45  ;;  %v4428_v56 = vmax.f32 %v7650_v61, %v5836_v2  ;;  %v5661_v28 = vld [vmem:[%s8090_s8 + $0x58] sm:$0xf0]  ;;  %v5659_v61 = vld [vmem:[%s8090_s8 + $0x4c] sm:$0xf] }
 0x800   : > { %v5551_v32 = vor.u32 %v5661_v28, %v5550_v24  ;;  %v5547_v59 = vor.u32 %v5659_v61, %v5544_v10 }
 0x801   : > { %v4436_v7 = vpack.c.bf16 %v4429_v31, %v4428_v56 }
 0x802   : > { %4691 = vmatpush.bf16.msra.mxu3 %v5551_v32  ;;  %4662 = vmatpush.bf16.msrb.mxu2 %v5547_v59 }
 0x803   : > { %4512 = vmatmul.bf16.vlgmr.msrb.gmra.mxu0 %v4436_v7 }
 0x81c   : > { %v5840_v37 = vpop.permute.xlu1 %5839 }
 0x81d   : > { %v5842_v21 = vunpack.i.h.bf16 %v5840_v37  ;;  %v5841_v5 = vunpack.i.l.bf16 %v5840_v37 }
 0x81f   : > { %v4431_v13 = vmax.f32 %v7709_v4, %v5842_v21  ;;  %v4430_v55 = vmax.f32 %v7707_v12, %v5841_v5  ;;  %v5658_v4 = vld [vmem:[%s8090_s8 + $0x40] sm:$0xf0]  ;;  %v5656_v12 = vld [vmem:[%s8090_s8 + $0x34] sm:$0xf]  ;;  %v4717_v21 = vand.u32 1, %v6147_v30  ;;  %v4718_v30 = vand.u32 1, %v6157_v35 }
 0x820   : > { %v5539_v33 = vor.u32 %v5658_v4, %v5538_v53  ;;  %v7900_v4 = vld [vmem:[%s8091_s9] ss:$0 sm:$0xff] }
 0x821   : > { %v4437_v16 = vpack.c.bf16 %v4431_v13, %v4430_v55  ;;  %vm4725_vm6 = vcmp.eq.s32.totalorder %v4717_v21, 0  ;;  %vm4726_vm7 = vcmp.eq.s32.totalorder %v4718_v30, 0  ;;  %v7908_v35 = vld [vmem:[%s8095_s13] ss:$0 sm:$0xff]  ;;  %vm4758_vm8 = vcmp.eq.s32.totalorder %v4718_v30, 1 }
 0x822   : > { %4692 = vmatpush.bf16.msra.mxu3 %v5539_v33 }
 0x823   : > { %4517 = vmatmul.bf16.gmra.mxu0 %v4437_v16 }
 0x824   : > { %v5845_v54 = vpop.permute.xlu2 %5844 }
 0x825   : > { %v5847_v36 = vunpack.i.h.bf16 %v5845_v54  ;;  %v5846_v39 = vunpack.i.l.bf16 %v5845_v54 }
 0x826   : > { %4693 = vmatpush.bf16.msra.mxu3 %v5527_v29 }
 0x827   : > { %v4433_v3 = vmax.f32 %v7768_v50, %v5847_v36  ;;  %v4432_v17 = vmax.f32 %v7766_v46, %v5846_v39  ;;  %v5532_v50 = vld [vmem:[%s8090_s8 + $0x3c] sm:$0xf0] }
 0x828   : > { %v5506_v46 = vld [vmem:[%s8090_s8] sm:$0xf]  ;;  %v5535_v22 = vor.u32 %v5656_v12, %v5532_v50 }
 0x829   : > { %v4438_v58 = vpack.c.bf16 %v4433_v3, %v4432_v17  ;;  %v5507_v40 = vor.u32 %v5651_v49, %v5506_v46 }
 0x82a   : > { %4663 = vmatpush.bf16.msrb.mxu2 %v5535_v22 }
 0x82b   : > { %4636 = vmatpush.bf16.msra.mxu1 %v5507_v40 }
 0x82e   : > { %4664 = vmatpush.bf16.msrb.mxu2 %v5523_v25 }
 0x832   : > { %4665 = vmatpush.bf16.msrb.mxu2 %v5511_v1 }
 0x833   : > { %4522 = vmatmul.bf16.gmra.mxu0 %v4438_v58 }
 0x855   : > { %v5850_v11 = vpop.permute.xlu0 %5849 }
 0x856   : > { %v5852_v14 = vunpack.i.h.bf16 %v5850_v11  ;;  %v5851_v42 = vunpack.i.l.bf16 %v5850_v11  ;;  %v4719_v11 = vand.u32 1, %v6182_v57 }
 0x858   : > { %v4435_v19 = vmax.f32 %v4411_v60, %v5852_v14  ;;  %v4434_v47 = vmax.f32 %v4410_v43, %v5851_v42  ;;  %v5652_v43 = vld [vmem:[%s8090_s8 + $0x10] sm:$0xf0]  ;;  %vm4727_vm0 = vcmp.eq.s32.totalorder %v4719_v11, 0  ;;  %vm4759_vm9 = vcmp.eq.s32.totalorder %v4719_v11, 1 }
 0x859   : > { %v5515_v60 = vor.u32 %v5652_v43, %v5514_v41 }
 0x85a   : > { %v4439_v20 = vpack.c.bf16 %v4435_v19, %v4434_v47 }
 0x85b   : > { %4694 = vmatpush.bf16.msra.mxu3 %v5515_v60 }
 0x85c   : > { %4527 = vmatmul.bf16.gmra.mxu0 %v4439_v20 }
 0x880   : > { %v4513_v18 = vpop.f32.mrf.mxu0 }
 0x888   : > { %v4515_v44 = vpop.f32.mrf.mxu0 }
 0x889   : > { %v4533_v15 = vpack.c.bf16 %v4515_v44, %v4513_v18 }
 0x88b   : > { %5552 = vmatmul.msk.bf16.vlgmr.msra.gmra.mxu1 %vm2901_vm13, %v4533_v15  ;;  %5556 = vmatmul.msk.bf16.vlgmr.msrb.gmra.mxu2 %vm2901_vm13, %v4533_v15 }
 0x88c   : > { %5560 = vmatmul.msk.bf16.vlgmr.msra.gmra.mxu3 %vm2901_vm13, %v4533_v15 }
 0x8a0   : > { %v4518_v45 = vpop.f32.mrf.mxu0 }
 0x8a8   : > { %v4520_v2 = vpop.f32.mrf.mxu0 }
 0x8a9   : > { %v4534_v31 = vpack.c.bf16 %v4520_v2, %v4518_v45 }
 0x8ab   : > { %5553 = vmatmul.msk.bf16.gmra.mxu1 %vm2901_vm13, %v4534_v31  ;;  %5557 = vmatmul.msk.bf16.gmra.mxu2 %vm2901_vm13, %v4534_v31 }
 0x8ac   : > { %5561 = vmatmul.msk.bf16.gmra.mxu3 %vm2901_vm13, %v4534_v31 }
 0x8b0   : > { %v4523_v56 = vpop.f32.mrf.mxu0 }
 0x8b8   : > { %v4525_v7 = vpop.f32.mrf.mxu0 }
 0x8b9   : > { %v4535_v6 = vpack.c.bf16 %v4525_v7, %v4523_v56 }
 0x8bb   : > { %5554 = vmatmul.msk.bf16.gmra.mxu1 %vm2901_vm13, %v4535_v6  ;;  %5558 = vmatmul.msk.bf16.gmra.mxu2 %vm2901_vm13, %v4535_v6 }
 0x8bc   : > { %5562 = vmatmul.msk.bf16.gmra.mxu3 %vm2901_vm13, %v4535_v6 }
 0x8d9   : > { %v4528_v51 = vpop.f32.mrf.mxu0 }
 0x8e1   : > { %v4530_v24 = vpop.f32.mrf.mxu0 }
 0x8e2   : > { %v4536_v34 = vpack.c.bf16 %v4530_v24, %v4528_v51 }
 0x8e4   : > { %5555 = vmatmul.msk.bf16.gmra.mxu1 %vm2901_vm13, %v4536_v34  ;;  %5559 = vmatmul.msk.bf16.gmra.mxu2 %vm2901_vm13, %v4536_v34 }
 0x8e5   : > { %5563 = vmatmul.msk.bf16.gmra.mxu3 %vm2901_vm13, %v4536_v34  ;;  %vm4757_vm13 = vcmp.eq.s32.totalorder %v4717_v21, 1  ;;  %v4716_v21 = vand.u32 1, %v6143_v26 }
 0x8e7   : > { %vm7932_vm11 = vcmp.eq.s32.totalorder %v4716_v21, 1  ;;  %vm4724_vm15 = vcmp.eq.s32.totalorder %v4716_v21, 0 }
 0x908   : > { %v7877_v28 = vpop.f32.mrf.mxu1 }
 0x909   : > { %v4732_v5 = vrot.slane %v7877_v28, 7 }
 0x90e   : > { %v7881_v10 = vpop.f32.mrf.mxu2 }
 0x90f   : > { %v7879_v61 = vpop.f32.mrf.mxu3 }
 0x910   : > { %v4640_v32 = vpop.f32.mrf.mxu1 }
 0x911   : > { %v4733_v37 = vrot.slane %v4640_v32, 7 }
 0x913   : > { %v4746_v16 = vsel %vm1671_vm2, %v4732_v5, %v4733_v37 }
 0x914   : > { %v4749_v3 = vsel %vm4725_vm6, 0.0, %v4746_v16  ;;  %v4764_v16 = vrot.slane %v7879_v61, 1 }
 0x916   : > { %v4669_v13 = vpop.f32.mrf.mxu2 }
 0x917   : > { %v7883_v59 = vpop.f32.mrf.mxu3  ;;  %v4789_v17 = vadd.f32 %v4749_v3, %v4669_v13 }
 0x918   : > { %v4765_v36 = vrot.slane %v7883_v59, 1 }
 0x928   : > { %v4643_v55 = vpop.f32.mrf.mxu1 }
 0x929   : > { %v4734_v58 = vrot.slane %v4643_v55, 7  ;;  %v4720_v55 = vand.u32 1, %v6187_v0  ;;  %v4778_v0 = vsel %vm1928_vm1, %v4764_v16, %v4765_v36 }
 0x92b   : > { %v4745_v46 = vsel %vm1671_vm2, %v4733_v37, %v4734_v58  ;;  %v4721_v37 = vand.u32 1, %v6204_v27  ;;  %vm7940_vm12 = vcmp.eq.s32.totalorder %v4720_v55, 0  ;;  %vm7955_vm3 = vcmp.eq.s32.totalorder %v4720_v55, 1 }
 0x92c   : > { %v4750_v29 = vsel %vm4726_vm7, 0.0, %v4745_v46  ;;  %vm4915_vm7 = vcmask 253952  }
 0x92d   : > { %vm7926_vm10 = vcmp.eq.s32.totalorder %v4721_v37, 0  ;;  %vm7944_vm14 = vcmp.eq.s32.totalorder %v4721_v37, 1 }
 0x92e   : > { %v4672_v50 = vpop.f32.mrf.mxu2 }
 0x92f   : > { %v4701_v54 = vpop.f32.mrf.mxu3  ;;  %v4790_v14 = vadd.f32 %v4750_v29, %v4672_v50 }
 0x930   : > { %v4766_v39 = vrot.slane %v4701_v54, 1  ;;  %v4645_v22 = vpop.f32.mrf.mxu1 }
 0x931   : > { %v4735_v42 = vrot.slane %v4645_v22, 7  ;;  %v4722_v22 = vand.u32 1, %v6209_v38 }
 0x932   : > { %v4777_v53 = vsel %vm1928_vm1, %v4765_v36, %v4766_v39 }
 0x933   : > { %v4781_v12 = vsel %vm4757_vm13, 0.0, %v4777_v53  ;;  %v4744_v52 = vsel %vm1671_vm2, %v4734_v58, %v4735_v42  ;;  %vm4730_vm4 = vcmp.eq.s32.totalorder %v4722_v22, 0  ;;  %vm7978_vm5 = vcmp.eq.s32.totalorder %v4722_v22, 1 }
 0x934   : > { %v4797_v33 = vadd.f32 %v4789_v17, %v4781_v12  ;;  %v4751_v1 = vsel %vm4727_vm0, 0.0, %v4744_v52  ;;  %v5930_v12 = vmov 0  }
 0x935   : > { %5854 = vset.pattern.permute.xlu0 %v5930_v12  ;;  %5853 = vset.pattern.permute.xlu2 %v5930_v12  ;;  %v4852_v12 = vld [vmem:[%s8096_s14] sm:$0xff] }
 0x936   : > { %v4809_v49 = vadd.f32 %v7900_v4, %v4797_v33  ;;  %v4674_v48 = vpop.f32.mrf.mxu2 }
 0x937   : > { %v4703_v40 = vpop.f32.mrf.mxu3  ;;  %v4791_v43 = vadd.f32 %v4751_v1, %v4674_v48 }
 0x938   : > { %v4767_v9 = vrot.slane %v4703_v40, 1  ;;  %v4817_v8 = vmax.f32 %v4809_v49, 0.0  ;;  %v4648_v56 = vpop.f32.mrf.mxu1 }
 0x939   : > { %v4736_v13 = vrot.slane %v4648_v56, 7 }
 0x93a   : > { %v4776_v19 = vsel %vm1928_vm1, %v4766_v39, %v4767_v9  ;;  %v4829_v47 = vmul.f32 %v7908_v35, %v4817_v8 }
 0x93b   : > { %v4782_v20 = vsel %vm4758_vm8, 0.0, %v4776_v19  ;;  %v4743_v33 = vsel %vm1671_vm2, %v4735_v42, %v4736_v13  ;;  %v4780_v42 = vsel %vm7932_vm11, 0.0, %v4778_v0  ;;  %v4907_v0 = vld [vmem:[#allocation3] sm:$0x1] }
 0x93c   : > { %4838 = vadd.xlane.f32.xlu2 %v4829_v47  ;;  %v4798_v63 = vadd.f32 %v4790_v14, %v4782_v20  ;;  %v4752_v19 = vsel %vm7940_vm12, 0.0, %v4743_v33  ;;  %v4723_v20 = vand.u32 1, %v6226_v62 }
 0x93e   : > { %v4810_v25 = vadd.f32 %v7900_v4, %v4798_v63  ;;  %v4677_v7 = vpop.f32.mrf.mxu2  ;;  %vm7982_vm6 = vcmp.eq.s32.totalorder %v4723_v20, 0  ;;  %vm7987_vm13 = vcmp.eq.s32.totalorder %v4723_v20, 1 }
 0x93f   : > { %v4706_v23 = vpop.f32.mrf.mxu3  ;;  %v4792_v52 = vadd.f32 %v4752_v19, %v4677_v7 }
 0x940   : > { %v4768_v57 = vrot.slane %v4706_v23, 1  ;;  %v4818_v41 = vmax.f32 %v4810_v25, 0.0  ;;  %v4650_v6 = vpop.f32.mrf.mxu1 }
 0x941   : > { %v4737_v34 = vrot.slane %v4650_v6, 7 }
 0x942   : > { %v4775_v60 = vsel %vm1928_vm1, %v4767_v9, %v4768_v57  ;;  %v4830_v18 = vmul.f32 %v7908_v35, %v4818_v41 }
 0x943   : > { %v4783_v44 = vsel %vm4759_vm9, 0.0, %v4775_v60  ;;  %v4742_v39 = vsel %vm1671_vm2, %v4736_v13, %v4737_v34 }
 0x944   : > { %4840 = vadd.xlane.f32.xlu0 %v4830_v18  ;;  %v4799_v15 = vadd.f32 %v4791_v43, %v4783_v44  ;;  %v4753_v59 = vsel %vm7926_vm10, 0.0, %v4742_v39 }
 0x946   : > { %v4811_v45 = vadd.f32 %v7900_v4, %v4799_v15  ;;  %v4679_v32 = vpop.f32.mrf.mxu2 }
 0x947   : > { %v4708_v51 = vpop.f32.mrf.mxu3  ;;  %v4793_v50 = vadd.f32 %v4753_v59, %v4679_v32 }
 0x948   : > { %v4819_v2 = vmax.f32 %v4811_v45, 0.0  ;;  %v4769_v17 = vrot.slane %v4708_v51, 1 }
 0x94a   : > { %v4831_v31 = vmul.f32 %v7908_v35, %v4819_v2  ;;  %v4774_v8 = vsel %vm1928_vm1, %v4768_v57, %v4769_v17 }
 0x94b   : > { %v4784_v63 = vsel %vm7955_vm3, 0.0, %v4774_v8 }
 0x94c   : > { %4842 = vadd.xlane.f32.xlu2 %v4831_v31  ;;  %v4800_v43 = vadd.f32 %v4792_v52, %v4784_v63  ;;  %v4858_v52 = vld [vmem:[%s8096_s14 + $0x30] sm:$0xff] }
 0x961   : > { %v4653_v24 = vpop.f32.mrf.mxu1 }
 0x962   : > { %v4738_v46 = vrot.slane %v4653_v24, 7  ;;  %v4812_v24 = vadd.f32 %v7900_v4, %v4800_v43  ;;  %v4859_v43 = vld [vmem:[%s8096_s14 + $0x38] sm:$0xff] }
 0x964   : > { %v4741_v28 = vsel %vm1671_vm2, %v4737_v34, %v4738_v46  ;;  %v4820_v13 = vmax.f32 %v4812_v24, 0.0 }
 0x965   : > { %v4754_v41 = vsel %vm4730_vm4, 0.0, %v4741_v28 }
 0x966   : > { %v4832_v54 = vmul.f32 %v7908_v35, %v4820_v13 }
 0x967   : > { %v4682_v49 = vpop.f32.mrf.mxu2 }
 0x968   : > { %v4711_v27 = vpop.f32.mrf.mxu3  ;;  %v4794_v60 = vadd.f32 %v4754_v41, %v4682_v49 }
 0x969   : > { %v4770_v30 = vrot.slane %v4711_v27, 1  ;;  %v4655_v53 = vpop.f32.mrf.mxu1  ;;  %v4891_v27 = vld [vmem:[%s8097_s15] sm:$0x7] }
 0x96a   : > { %v4739_v36 = vrot.slane %v4655_v53, 7 }
 0x96b   : > { %v4773_v40 = vsel %vm1928_vm1, %v4769_v17, %v4770_v30 }
 0x96c   : > { %v4785_v29 = vsel %vm7944_vm14, 0.0, %v4773_v40  ;;  %v4747_v11 = vsel %vm1671_vm2, %v4739_v36, %v4732_v5  ;;  %v4740_v45 = vsel %vm1671_vm2, %v4738_v46, %v4739_v36  ;;  %v4855_v46 = vld [vmem:[%s8096_s14 + $0x18] sm:$0xff]  ;;  %v4890_v40 = vld [vmem:[%s564_s3] sm:$0x7]  ;;  %vm4898_vm2 = vcmask 256000  }
 0x96d   : > { %v4748_v14 = vsel %vm4724_vm15, 0.0, %v4747_v11  ;;  %v4801_v38 = vadd.f32 %v4793_v50, %v4785_v29  ;;  %v4755_v34 = vsel %vm7982_vm6, 0.0, %v4740_v45 }
 0x96e   : > { %v4788_v47 = vadd.f32 %v4748_v14, %v7881_v10  ;;  %v4857_v14 = vld [vmem:[%s8096_s14 + $0x28] sm:$0xff] }
 0x96f   : > { %v4813_v5 = vadd.f32 %v7900_v4, %v4801_v38  ;;  %v4684_v7 = vpop.f32.mrf.mxu2 }
 0x970   : > { %v4713_v25 = vpop.f32.mrf.mxu3  ;;  %v4796_v48 = vadd.f32 %v4788_v47, %v4780_v42  ;;  %v4795_v37 = vadd.f32 %v4755_v34, %v4684_v7  ;;  %v4856_v42 = vld [vmem:[%s8096_s14 + $0x20] sm:$0xff] }
 0x971   : > { %v4771_v57 = vrot.slane %v4713_v25, 1  ;;  %v4821_v10 = vmax.f32 %v4813_v5, 0.0 }
 0x972   : > { %v4808_v1 = vadd.f32 %v7900_v4, %v4796_v48 }
 0x973   : > { %v4772_v44 = vsel %vm1928_vm1, %v4770_v30, %v4771_v57  ;;  %v4833_v15 = vmul.f32 %v7908_v35, %v4821_v10  ;;  %v4779_v2 = vsel %vm1928_vm1, %v4771_v57, %v4764_v16  ;;  %v4853_v30 = vld [vmem:[%s8096_s14 + $0x8] sm:$0xff]  ;;  %vm4868_vm1 = vcmask 261120  }
 0x974   : > { %v4786_v31 = vsel %vm7978_vm5, 0.0, %v4772_v44  ;;  %v4816_v56 = vmax.f32 %v4808_v1, 0.0  ;;  %v4787_v32 = vsel %vm7987_vm13, 0.0, %v4779_v2 }
 0x975   : > { %4846 = vadd.xlane.f32.xlu2 %v4833_v15  ;;  %v4802_v6 = vadd.f32 %v4794_v60, %v4786_v31  ;;  %v4803_v55 = vadd.f32 %v4795_v37, %v4787_v32 }
 0x976   : > { %v4828_v51 = vmul.f32 %v7908_v35, %v4816_v56 }
 0x977   : > { %v4814_v26 = vadd.f32 %v7900_v4, %v4802_v6  ;;  %v4815_v39 = vadd.f32 %v7900_v4, %v4803_v55  ;;  %v4854_v4 = vld [vmem:[%s8096_s14 + $0x10] sm:$0xff] }
 0x978   : > { %4836 = vadd.xlane.f32.xlu1 %v4828_v51 }
 0x979   : > { %v4822_v21 = vmax.f32 %v4814_v26, 0.0  ;;  %v4823_v3 = vmax.f32 %v4815_v39, 0.0 }
 0x97b   : > { %v4834_v16 = vmul.f32 %v7908_v35, %v4822_v21  ;;  %v4835_v17 = vmul.f32 %v7908_v35, %v4823_v3 }
 0x97d   : > { %4848 = vadd.xlane.f32.xlu0 %v4834_v16 }
 0x980   : > { %4844 = vadd.xlane.f32.xlu1 %v4832_v54 }
 0x988   : > { %4850 = vadd.xlane.f32.xlu1 %v4835_v17 }
 0x98d   : > { %4894 = vperm.xlu2 %5853, %v4891_v27  }
 0x991   : > { %4910 = vperm.xlu0 %5854, %v4907_v0  }
 0x9af   : > { %v4839_v61 = vpop.xlane.xlu2 %4838 }
 0x9b0   : > { %v4861_v33 = vmul.f32 %v4853_v30, %v4839_v61 }
 0x9b2   : > { %v4870_v49 = vsel %vm4868_vm1, %v4861_v33, 0.0 }
 0x9b7   : > { %v4841_v35 = vpop.xlane.xlu0 %4840 }
 0x9b8   : > { %v4862_v36 = vmul.f32 %v4854_v4, %v4841_v35 }
 0x9ba   : > { %v4872_v8 = vsel %vm4868_vm1, %v4862_v36, 0.0 }
 0x9bf   : > { %v4843_v58 = vpop.xlane.xlu2 %4842 }
 0x9c0   : > { %v4863_v29 = vmul.f32 %v4855_v46, %v4843_v58 }
 0x9c2   : > { %v4874_v20 = vsel %vm4868_vm1, %v4863_v29, 0.0 }
 0x9e8   : > { %v4847_v53 = vpop.xlane.xlu2 %4846 }
 0x9e9   : > { %v4865_v63 = vmul.f32 %v4857_v14, %v4847_v53 }
 0x9eb   : > { %v4837_v59 = vpop.xlane.xlu1 %4836  ;;  %v4878_v41 = vsel %vm4868_vm1, %v4865_v63, 0.0 }
 0x9ec   : > { %v4860_v50 = vmul.f32 %v4852_v12, %v4837_v59 }
 0x9ee   : > { %v4869_v22 = vsel %vm4868_vm1, %v4860_v50, 0.0 }
 0x9ef   : > { %v4871_v9 = vadd.f32 %v4870_v49, %v4869_v22 }
 0x9f0   : > { %v4895_v11 = vpop.permute.xlu2 %4894  ;;  %v4849_v25 = vpop.xlane.xlu0 %4848 }
 0x9f1   : > { %v4873_v38 = vadd.f32 %v4872_v8, %v4871_v9  ;;  %v4897_v19 = vmul.f32 %v4895_v11, %v4890_v40  ;;  %v4866_v62 = vmul.f32 %v4858_v52, %v4849_v25 }
 0x9f3   : > { %v4845_v47 = vpop.xlane.xlu1 %4844  ;;  %v4899_v5 = vsel %vm4898_vm2, %v4897_v19, 0.0  ;;  %v4875_v48 = vadd.f32 %v4874_v20, %v4873_v38  ;;  %v4880_v44 = vsel %vm4868_vm1, %v4866_v62, 0.0 }
 0x9f4   : > { %v4864_v28 = vmul.f32 %v4856_v42, %v4845_v47  ;;  %v4900_v10 = vrot.slane %v4899_v5, 4 }
 0x9f6   : > { %v4876_v23 = vsel %vm4868_vm1, %v4864_v28, 0.0  ;;  %v4901_v60 = vadd.f32 %v4900_v10, %v4899_v5 }
 0x9f7   : > { %v4877_v57 = vadd.f32 %v4876_v23, %v4875_v48 }
 0x9f8   : > { %v4902_v31 = vrot.slane %v4901_v60, 2 }
 0x9f9   : > { %v4879_v1 = vadd.f32 %v4878_v41, %v4877_v57 }
 0x9fa   : > { %v4903_v6 = vadd.f32 %v4902_v31, %v4901_v60 }
 0x9fb   : > { %v4851_v18 = vpop.xlane.xlu1 %4850  ;;  %v4881_v45 = vadd.f32 %v4880_v44, %v4879_v1 }
 0x9fc   : > { %v4867_v15 = vmul.f32 %v4859_v43, %v4851_v18  ;;  %v4904_v34 = vrot.slane %v4903_v6, 1 }
 0x9fe   : > { %v4882_v2 = vsel %vm4868_vm1, %v4867_v15, 0.0  ;;  %v4905_v21 = vadd.f32 %v4904_v34, %v4903_v6 }
 0x9ff   : > { %v4883_v56 = vadd.f32 %v4882_v2, %v4881_v45 }
 0xa01   : > { %v4884_v7 = vrot.slane %v4883_v56, 4 }
 0xa03   : > { %v4885_v51 = vadd.f32 %v4884_v7, %v4883_v56  ;;  %v4911_v26 = vpop.permute.xlu0 %4910 }
 0xa04   : > { %v4913_v55 = vperm.slane %v4911_v26, 0 }
 0xa05   : > { %v4886_v24 = vrot.slane %v4885_v51, 2 }
 0xa07   : > { %v4887_v32 = vadd.f32 %v4886_v24, %v4885_v51 }
 0xa09   : > { %v4888_v37 = vrot.slane %v4887_v32, 1 }
 0xa0b   : > { %v4889_v13 = vadd.f32 %v4888_v37, %v4887_v32 }
 0xa0d   : > { %v4906_v16 = vadd.f32 %v4905_v21, %v4889_v13 }
 0xa0f   : > { %v4914_v54 = vadd.f32 %v4913_v55, %v4906_v16 }
 0xa11   : > { %4916 = vst.msk [vmem:[%s555_s25] sm:$0x1] %vm4915_vm7, %v4914_v54 }
 0xa12   : > { %5890 = shalt.err (!%p5887_p3)
}
 0xa13   : > { %5670 = dma.vmem_to_hbm [thread:$0]  (%p6062_p5), %s4929_s22, 16, %s4931_s30, %s4918_s1  }
 0xa14 PF: > { %p5676_p4 = scmp.ge.s32.totalorder %s5925_s29, 2  ;;  %s4942_s18 = sand.u32 1, %s5913_s26  }
 0xa15   : > { %s4943_s24 = scalar_lea.sflag [#allocation5], %s4942_s18 }
 0xa16   : > { %p5673_p7 = pnand %p5676_p4, %p6066_p6 }
 0xa18   : > { %p5674_p8 = pneg %p5673_p7 }
 0xa1a   : > { %5908 = dma.done.wait (%p5674_p8), %s4943_s24, 16  }
 0xa1b   : > { %5910 = vsyncadd (%p5674_p8), %s4943_s24, 4294967280  ;;  %s8179_s29 = sld [smem:[#allocation8_spill]]  ;;  %s8182_s26 = smov %s5917_s27 }
 0xa1c   : > { %s8180_s25 = sld [smem:[#allocation7_spill]] }
 0xa1d   : > { %s8181_s28 = sld [smem:[#allocation9_spill]] }
 0xa21   : > { %p29_p9 = scmp.ge.s32.totalorder %s8179_s29, 5  }
 0xa22   : > { %s8183_s27 = smov %s8180_s25 }
 0xa23   :  { %31 = sbr.rel (!%p29_p9) target bundleno = 8 (0x8), region = 204 }
 0xa28   :  { %4948 = vsyncpa [#allocation5], 1 }
 0xa29   :  { %4950 = vsyncpa [#allocation5 + $0x1], 1 }

</bundles_post_ra>
